<compile_context>
chip_gen: v5e
topology: v5e:2x2
jax: 0.10.0
libtpu: 0.0.40
codegen_flags: <defaults>
</compile_context>

<pallas_src>
import math

import jax
import jax.numpy as jnp
from jax.experimental import pallas as pl
from jax.experimental.pallas import tpu as pltpu

EMBED_DIM = 16        # SGAEmbedding input channels C
DIM = 32              # hidden_dim
NUM_HEADS = 4         # num_attn
HEAD_DIM = DIM // NUM_HEADS
NUM_LAYERS = 2        # num_layers
LN_EPS = 1e-5
NEG_INF = -1e9

# ---- packed weight slab: each logical weight gets its own 128-lane slot so every
#      in-kernel weight slice starts at a lane-tile boundary (no lane relayout).
#      Layers stack along sublanes (row offset = layer * DIM).
_SLOT = 128
W_QKV0 = 0 * _SLOT    # (32, 96)  fused q/k/v, self-attention
W_O0   = 1 * _SLOT    # (32, 32)  output proj, self-attention
W_Q1   = 2 * _SLOT    # (32, 32)  q proj, guided attention
W_KV1  = 3 * _SLOT    # (32, 64)  fused k/v, guided attention
W_O1   = 4 * _SLOT    # (32, 32)  output proj, guided attention
W_FC1  = 5 * _SLOT    # (32, 128) first FFN weight
W_COLS = 6 * _SLOT

# bias / LayerNorm slab rows per layer (each row padded to 128 lanes)
B_QKV0, B_O0, B_Q1, B_KV1, B_O1, B_FC1, B_FC2 = 0, 1, 2, 3, 4, 5, 6
B_G0, B_B0, B_G1, B_B1, B_G2, B_B2 = 7, 8, 9, 10, 11, 12
B_ROWS_PER_LAYER = 16


# ----------------------------------------------------------------- kernel ops ---
def _ln(z, g, b):
    # Parallel-moment LayerNorm: sum(z) and sum(z*z) are independent cross-lane
    # reductions (co-issue on the XLU) instead of mean -> (z-mu)^2 -> mean.
    inv_d = 1.0 / z.shape[-1]
    mu = jnp.sum(z, axis=-1, keepdims=True) * inv_d
    ms = jnp.sum(z * z, axis=-1, keepdims=True) * inv_d
    var = ms - mu * mu
    return (z - mu) * jax.lax.rsqrt(var + LN_EPS) * g + b


def _attend(q, k, v, mask_add):
    # q: (Nq, DIM), k/v: (Nk, DIM), mask_add: (Nq, Nk) additive (-1e9 on forbidden keys).
    scale = 1.0 / math.sqrt(HEAD_DIM)
    contract_last = (((1,), (1,)), ((), ()))        # q @ k^T without a transpose op
    outs = []
    for h in range(NUM_HEADS):                      # static unroll over heads
        lo, hi = h * HEAD_DIM, (h + 1) * HEAD_DIM
        qh, kh, vh = q[:, lo:hi], k[:, lo:hi], v[:, lo:hi]
        s = jax.lax.dot_general(qh, kh, contract_last,
                                preferred_element_type=jnp.float32) * scale
        s = s + mask_add
        m = jnp.max(s, axis=-1, keepdims=True)
        p = jnp.exp(s - m)
        # Flash-style deferred normalization: the PV matmul does not depend on the
        # row-sum, so XLU (sum) + EUP (reciprocal) overlap the MXU push.
        o = jnp.dot(p, vh, preferred_element_type=jnp.float32)
        inv = pl.reciprocal(jnp.sum(p, axis=-1, keepdims=True), approx=True)
        outs.append(o * inv)
    return jnp.concatenate(outs, axis=-1)           # heads stay in vregs, no scratch


# --------------------------------------------------------------- param packing ---
def pack_layer_params(layer_params):
    """Pre-transpose all weights to (in, out) and pack every layer into 3 slabs."""
    w_rows, w2_rows, b_rows = [], [], []
    for p in layer_params:
        (wq0, bq0, wk0, bk0, wv0, bv0, wo0, bo0,
         wq1, bq1, wk1, bk1, wv1, bv1, wo1, bo1,
         w1, b1, w2, b2, g0, be0, g1, be1, g2, be2) = p

        w = jnp.zeros((DIM, W_COLS), jnp.float32)
        w = w.at[:, W_QKV0:W_QKV0 + 3 * DIM].set(
            jnp.concatenate([wq0.T, wk0.T, wv0.T], axis=1))
        w = w.at[:, W_O0:W_O0 + DIM].set(wo0.T)
        w = w.at[:, W_Q1:W_Q1 + DIM].set(wq1.T)
        w = w.at[:, W_KV1:W_KV1 + 2 * DIM].set(jnp.concatenate([wk1.T, wv1.T], axis=1))
        w = w.at[:, W_O1:W_O1 + DIM].set(wo1.T)
        w = w.at[:, W_FC1:W_FC1 + 4 * DIM].set(w1.T)
        w_rows.append(w)

        w2_rows.append(w2.T)                                  # (4*DIM, DIM)

        b = jnp.zeros((B_ROWS_PER_LAYER, 128), jnp.float32)
        rows = [jnp.concatenate([bq0, bk0, bv0], axis=1), bo0, bq1,
                jnp.concatenate([bk1, bv1], axis=1), bo1, b1, b2,
                g0, be0, g1, be1, g2, be2]
        for i, r in enumerate(rows):
            b = b.at[i, :r.shape[1]].set(r[0])
        b_rows.append(b)

    return (jnp.concatenate(w_rows, axis=0),      # (L*32, 768)
            jnp.concatenate(w2_rows, axis=0),     # (L*128, 32)
            jnp.concatenate(b_rows, axis=0))      # (L*16, 128)


# -------------------------------------------------------------------- wrapper ---
def sga_embedding(x4d, y, x_mask, y_mask, params):
    """x4d: (B, C, H, W); y: (B, Ly, DIM); masks: (B, 1, L) with 1.0 = padded key."""
    w_in, b_in, layer_params = params
    num_layers = len(layer_params)
    B, C, Hh, Ww = x4d.shape
    Lx = Hh * Ww
    Ly = y.shape[1]
    n_x, n_y = B * Lx, B * Ly

    def r8(n):
        return ((n + 7) // 8) * 8

    # ---- activation slab layout (one input DMA for all per-call data) ----
    R_X = 0                       # (n_x, C)   flattened x tokens
    R_Y = R_X + r8(n_x)           # (n_y, DIM) flattened y tokens
    R_MS = R_Y + r8(n_y)          # (n_x, n_x) additive self-attn mask (block-diag + pad)
    R_MC = R_MS + r8(n_x)         # (n_x, n_y) additive guided-attn mask
    R_WIN = R_MC + r8(n_x)        # (C, DIM)   input projection weight (pre-transposed)
    R_BIN = R_WIN + r8(C)         # (1, DIM)   input projection bias
    ACT_ROWS = R_BIN + 8

    # flatten tokens; batch is packed along the sublane axis
    x_tok = jnp.transpose(x4d.reshape(B, C, Lx), (0, 2, 1)).reshape(n_x, C)
    y_tok = y.reshape(n_y, DIM)

    # block-diagonal additive masks: cross-batch pairs and padded keys -> -1e9
    qb = jnp.repeat(jnp.arange(B), Lx)
    kbx = jnp.repeat(jnp.arange(B), Lx)
    kby = jnp.repeat(jnp.arange(B), Ly)
    m_self = ((qb[:, None] != kbx[None, :]).astype(jnp.float32) * NEG_INF
              + x_mask.reshape(n_x)[None, :] * NEG_INF)
    m_cross = ((qb[:, None] != kby[None, :]).astype(jnp.float32) * NEG_INF
               + y_mask.reshape(n_y)[None, :] * NEG_INF)

    act = jnp.zeros((ACT_ROWS, 128), jnp.float32)
    act = act.at[R_X:R_X + n_x, :C].set(x_tok)
    act = act.at[R_Y:R_Y + n_y, :DIM].set(y_tok)
    act = act.at[R_MS:R_MS + n_x, :n_x].set(m_self)
    act = act.at[R_MC:R_MC + n_x, :n_y].set(m_cross)
    act = act.at[R_WIN:R_WIN + C, :DIM].set(w_in.T)
    act = act.at[R_BIN:R_BIN + 1, :DIM].set(b_in)

    w_slab, w2_slab, b_slab = pack_layer_params(layer_params)

    # ------------------------------------------------------------------ kernel ---
    def kernel(act_ref, w_ref, w2_ref, b_ref, out_ref):
        x_in = act_ref[R_X:R_X + n_x, :C]
        y_t = act_ref[R_Y:R_Y + n_y, :DIM]
        m_s = act_ref[R_MS:R_MS + n_x, :n_x]
        m_c = act_ref[R_MC:R_MC + n_x, :n_y]
        w_in_t = act_ref[R_WIN:R_WIN + C, :DIM]
        b_in_r = act_ref[R_BIN:R_BIN + 1, :DIM]

        # SGAEmbedding input projection: Linear(embedding_dim -> hidden_dim)
        x = jnp.dot(x_in, w_in_t, preferred_element_type=jnp.float32) + b_in_r

        for l in range(num_layers):                  # layers statically unrolled
            wr = l * DIM
            br = l * B_ROWS_PER_LAYER
            w2r = l * 4 * DIM

            def wslice(col, width):
                return w_ref[wr:wr + DIM, col:col + width]

            def bslice(row, width=DIM):
                return b_ref[br + row:br + row + 1, :width]

            # --- self attention (fused QKV) + residual + LN ---
            qkv = jnp.dot(x, wslice(W_QKV0, 3 * DIM),
                          preferred_element_type=jnp.float32) + bslice(B_QKV0, 3 * DIM)
            att = _attend(qkv[:, :DIM], qkv[:, DIM:2 * DIM], qkv[:, 2 * DIM:], m_s)
            a0 = jnp.dot(att, wslice(W_O0, DIM),
                         preferred_element_type=jnp.float32) + bslice(B_O0)
            x = _ln(x + a0, bslice(B_G0), bslice(B_B0))

            # --- guided (cross) attention (fused KV) + residual + LN ---
            q1 = jnp.dot(x, wslice(W_Q1, DIM),
                         preferred_element_type=jnp.float32) + bslice(B_Q1)
            kv = jnp.dot(y_t, wslice(W_KV1, 2 * DIM),
                         preferred_element_type=jnp.float32) + bslice(B_KV1, 2 * DIM)
            att = _attend(q1, kv[:, :DIM], kv[:, DIM:], m_c)
            a1 = jnp.dot(att, wslice(W_O1, DIM),
                         preferred_element_type=jnp.float32) + bslice(B_O1)
            x = _ln(x + a1, bslice(B_G1), bslice(B_B1))

            # --- position-wise FFN + residual + LN ---
            h = jnp.maximum(
                jnp.dot(x, wslice(W_FC1, 4 * DIM),
                        preferred_element_type=jnp.float32) + bslice(B_FC1, 4 * DIM),
                0.0)
            f = jnp.dot(h, w2_ref[w2r:w2r + 4 * DIM, :],
                        preferred_element_type=jnp.float32) + bslice(B_FC2)
            x = _ln(x + f, bslice(B_G2), bslice(B_B2))

        out_ref[...] = x

    out = pl.pallas_call(
        kernel,
        out_shape=jax.ShapeDtypeStruct((n_x, DIM), jnp.float32),
        grid_spec=pltpu.PrefetchScalarGridSpec(
            num_scalar_prefetch=0,
            grid=(1,),                                 # whole packed batch in one step
            in_specs=[
                pl.BlockSpec(act.shape, lambda i: (0, 0)),      # activation slab
                pl.BlockSpec(w_slab.shape, lambda i: (0, 0)),   # packed layer weights
                pl.BlockSpec(w2_slab.shape, lambda i: (0, 0)),  # FFN second weights
                pl.BlockSpec(b_slab.shape, lambda i: (0, 0)),   # biases / LN params
            ],
            out_specs=pl.BlockSpec((n_x, DIM), lambda i: (0, 0)),
        ),
        compiler_params=pltpu.CompilerParams(dimension_semantics=("arbitrary",)),
    )(act, w_slab, w2_slab, b_slab)

    return out.reshape(B, Lx, DIM)


# ------------------------------------------------------------ params & reference ---
def init_layer_params(key, dim):
    ks = iter(jax.random.split(key, 26))

    def rnd(shape, scale=0.05):
        return jax.random.normal(next(ks), shape, jnp.float32) * scale

    p = []
    for _ in range(2):                   # two MovieMcanMultiHeadAttention blocks
        for _ in range(4):               # q, k, v, merge linears
            p.append(rnd((dim, dim)))                # weight (out, in) — PyTorch layout
            p.append(rnd((1, dim), 0.02))            # bias
    p.append(rnd((4 * dim, dim)))                    # fcn: Linear(dim, 4*dim)
    p.append(rnd((1, 4 * dim), 0.02))
    p.append(rnd((dim, 4 * dim)))                    # fcn: Linear(4*dim, dim)
    p.append(rnd((1, dim), 0.02))
    for _ in range(3):                               # ln_mha[0], ln_mha[1], ln_fcn
        p.append(1.0 + rnd((1, dim), 0.02))          # gamma
        p.append(rnd((1, dim), 0.02))                # beta
    return tuple(p)


def init_params(key, embed_dim, dim, num_layers):
    keys = jax.random.split(key, num_layers + 2)
    w_in = jax.random.normal(keys[0], (dim, embed_dim), jnp.float32) * 0.05
    b_in = jax.random.normal(keys[1], (1, dim), jnp.float32) * 0.02
    layers = tuple(init_layer_params(k, dim) for k in keys[2:])
    return w_in, b_in, layers


def _sga_layer_ref(x, y, x_mask, y_mask, p):
    (wq0, bq0, wk0, bk0, wv0, bv0, wo0, bo0,
     wq1, bq1, wk1, bk1, wv1, bv1, wo1, bo1,
     w1, b1, w2, b2, g0, be0, g1, be1, g2, be2) = p

    def mha(qi, kvi, mask, wq, bq, wk, bk, wv, bv, wo, bo):
        Bb, Lq, D = qi.shape
        Lk = kvi.shape[1]
        q = (qi @ wq.T + bq).reshape(Bb, Lq, NUM_HEADS, HEAD_DIM).transpose(0, 2, 1, 3)
        k = (kvi @ wk.T + bk).reshape(Bb, Lk, NUM_HEADS, HEAD_DIM).transpose(0, 2, 1, 3)
        v = (kvi @ wv.T + bv).reshape(Bb, Lk, NUM_HEADS, HEAD_DIM).transpose(0, 2, 1, 3)
        s = jnp.einsum('bhqd,bhkd->bhqk', q, k) / math.sqrt(HEAD_DIM)
        s = jnp.where(mask[:, :, None, :] > 0.5, NEG_INF, s)
        pr = jax.nn.softmax(s, axis=-1)
        o = jnp.einsum('bhqk,bhkd->bhqd', pr, v).transpose(0, 2, 1, 3).reshape(Bb, Lq, D)
        return o @ wo.T + bo

    def ln(z, g, b):
        mu = z.mean(-1, keepdims=True)
        var = ((z - mu) ** 2).mean(-1, keepdims=True)
        return (z - mu) / jnp.sqrt(var + LN_EPS) * g + b

    x = ln(x + mha(x, x, x_mask, wq0, bq0, wk0, bk0, wv0, bv0, wo0, bo0), g0, be0)
    x = ln(x + mha(x, y, y_mask, wq1, bq1, wk1, bk1, wv1, bv1, wo1, bo1), g1, be1)
    f = jax.nn.relu(x @ w1.T + b1) @ w2.T + b2
    return ln(x + f, g2, be2)


def reference(x4d, y, x_mask, y_mask, params):
    w_in, b_in, layer_params = params
    B, C, Hh, Ww = x4d.shape
    x = jnp.transpose(x4d.reshape(B, C, Hh * Ww), (0, 2, 1))   # (B, L, C)
    x = x @ w_in.T + b_in
    for p in layer_params:
        x = _sga_layer_ref(x, y, x_mask, y_mask, p)
    return x


# ------------------------------------------------------------------------ main ---
if __name__ == "__main__":
    B, Hs, Ws, Ly = 2, 4, 2, 8
    Lx = Hs * Ws
    key = jax.random.PRNGKey(0)
    kx, ky, kp = jax.random.split(key, 3)

    x4d = jax.random.normal(kx, (B, EMBED_DIM, Hs, Ws), jnp.float32)   # (B, C, H, W)
    y = jax.random.normal(ky, (B, Ly, DIM), jnp.float32)

    x_mask = jnp.zeros((B, 1, Lx), jnp.float32)                 # no padded x keys
    y_mask = jnp.zeros((B, 1, Ly), jnp.float32)
    y_mask = y_mask.at[1, 0, Ly - 2:].set(1.0)                  # pad last 2 y keys of batch 1

    params = init_params(kp, EMBED_DIM, DIM, NUM_LAYERS)

    out = jax.block_until_ready(sga_embedding(x4d, y, x_mask, y_mask, params))
    ref = reference(x4d, y, x_mask, y_mask, params)

    assert out.shape == (B, Lx, DIM)
    err = float(jnp.max(jnp.abs(out - ref)))
    assert jnp.allclose(out, ref, atol=5e-3, rtol=5e-3), f"max abs diff {err}"
    print("KERNEL_OK")
</pallas_src>

<mosaic_0001>
module attributes {stable_mosaic.version = 11 : i64} {
  func.func @kernel(%arg0: i32, %arg1: memref<88x128xf32, #tpu.memory_space<vmem>>, %arg2: memref<64x768xf32, #tpu.memory_space<vmem>>, %arg3: memref<256x32xf32, #tpu.memory_space<vmem>>, %arg4: memref<32x128xf32, #tpu.memory_space<vmem>>, %arg5: memref<16x32xf32, #tpu.memory_space<vmem>>) attributes {dimension_semantics = [#tpu.dimension_semantics<arbitrary>], iteration_bounds = array<i64: 1>, scalar_prefetch = 0 : i64, scratch_operands = 0 : i64, tpu.core_type = #tpu.core_type<tc>, window_params = [{pipeline_mode = #tpu.pipeline_mode<synchronous>, transform_indices = @transform_0, window_bounds = array<i64: 88, 128>}, {pipeline_mode = #tpu.pipeline_mode<synchronous>, transform_indices = @transform_1, window_bounds = array<i64: 64, 768>}, {pipeline_mode = #tpu.pipeline_mode<synchronous>, transform_indices = @transform_2, window_bounds = array<i64: 256, 32>}, {pipeline_mode = #tpu.pipeline_mode<synchronous>, transform_indices = @transform_3, window_bounds = array<i64: 32, 128>}, {pipeline_mode = #tpu.pipeline_mode<synchronous>, transform_indices = @transform_4, window_bounds = array<i64: 16, 32>}]} {
    %c0 = arith.constant 0 : index
    %c0_0 = arith.constant 0 : index
    %0 = vector.load %arg1[%c0, %c0_0] : memref<88x128xf32, #tpu.memory_space<vmem>>, vector<16x16xf32>
    %c16 = arith.constant 16 : index
    %c0_1 = arith.constant 0 : index
    %1 = vector.load %arg1[%c16, %c0_1] : memref<88x128xf32, #tpu.memory_space<vmem>>, vector<16x32xf32>
    %c32 = arith.constant 32 : index
    %c0_2 = arith.constant 0 : index
    %2 = vector.load %arg1[%c32, %c0_2] : memref<88x128xf32, #tpu.memory_space<vmem>>, vector<16x16xf32>
    %c48 = arith.constant 48 : index
    %c0_3 = arith.constant 0 : index
    %3 = vector.load %arg1[%c48, %c0_3] : memref<88x128xf32, #tpu.memory_space<vmem>>, vector<16x16xf32>
    %c64 = arith.constant 64 : index
    %c0_4 = arith.constant 0 : index
    %4 = vector.load %arg1[%c64, %c0_4] : memref<88x128xf32, #tpu.memory_space<vmem>>, vector<16x32xf32>
    %c80 = arith.constant 80 : index
    %c0_5 = arith.constant 0 : index
    %5 = vector.load %arg1[%c80, %c0_5] : memref<88x128xf32, #tpu.memory_space<vmem>>, vector<1x32xf32>
    %cst = arith.constant dense<0.000000e+00> : vector<16x32xf32>
    %6 = tpu.matmul %0, %4, %cst {dimension_numbers = #tpu.dot_dimension_numbers<[1], [0], [0], [1], [0, 0, 1, 1], [], []>} : vector<16x16xf32>, vector<16x32xf32>, vector<16x32xf32> -> vector<16x32xf32>
    %7 = vector.broadcast %5 : vector<1x32xf32> to vector<16x32xf32>
    %8 = arith.addf %6, %7 : vector<16x32xf32>
    %c0_6 = arith.constant 0 : index
    %c0_7 = arith.constant 0 : index
    %9 = vector.load %arg2[%c0_6, %c0_7] : memref<64x768xf32, #tpu.memory_space<vmem>>, vector<32x96xf32>
    %cst_8 = arith.constant dense<0.000000e+00> : vector<16x96xf32>
    %10 = tpu.matmul %8, %9, %cst_8 {dimension_numbers = #tpu.dot_dimension_numbers<[1], [0], [0], [1], [0, 0, 1, 1], [], []>} : vector<16x32xf32>, vector<32x96xf32>, vector<16x96xf32> -> vector<16x96xf32>
    %c0_9 = arith.constant 0 : index
    %c0_10 = arith.constant 0 : index
    %11 = vector.load %arg4[%c0_9, %c0_10] : memref<32x128xf32, #tpu.memory_space<vmem>>, vector<1x96xf32>
    %12 = vector.broadcast %11 : vector<1x96xf32> to vector<16x96xf32>
    %13 = arith.addf %10, %12 : vector<16x96xf32>
    %14 = vector.extract_strided_slice %13 {offsets = [0, 0], sizes = [16, 32], strides = [1, 1]} : vector<16x96xf32> to vector<16x32xf32>
    %15 = vector.extract_strided_slice %13 {offsets = [0, 32], sizes = [16, 32], strides = [1, 1]} : vector<16x96xf32> to vector<16x32xf32>
    %16 = vector.extract_strided_slice %13 {offsets = [0, 64], sizes = [16, 32], strides = [1, 1]} : vector<16x96xf32> to vector<16x32xf32>
    %17 = vector.extract_strided_slice %14 {offsets = [0, 0], sizes = [16, 8], strides = [1, 1]} : vector<16x32xf32> to vector<16x8xf32>
    %18 = vector.extract_strided_slice %15 {offsets = [0, 0], sizes = [16, 8], strides = [1, 1]} : vector<16x32xf32> to vector<16x8xf32>
    %19 = vector.extract_strided_slice %16 {offsets = [0, 0], sizes = [16, 8], strides = [1, 1]} : vector<16x32xf32> to vector<16x8xf32>
    %cst_11 = arith.constant dense<0.000000e+00> : vector<16x16xf32>
    %20 = tpu.matmul %17, %18, %cst_11 {dimension_numbers = #tpu.dot_dimension_numbers<[1], [1], [0], [0], [0, 0, 1, 0], [], []>} : vector<16x8xf32>, vector<16x8xf32>, vector<16x16xf32> -> vector<16x16xf32>
    %cst_12 = arith.constant 0.353553385 : f32
    %21 = vector.broadcast %cst_12 : f32 to vector<16x16xf32>
    %22 = arith.mulf %20, %21 : vector<16x16xf32>
    %23 = arith.addf %22, %2 : vector<16x16xf32>
    %cst_13 = arith.constant dense<0xFF800000> : vector<16xf32>
    %24 = vector.multi_reduction <maximumf>, %23, %cst_13 [1] : vector<16x16xf32> to vector<16xf32>
    %25 = vector.shape_cast %24 : vector<16xf32> to vector<16x1xf32>
    %26 = vector.broadcast %25 : vector<16x1xf32> to vector<16x16xf32>
    %27 = arith.subf %23, %26 : vector<16x16xf32>
    %28 = math.exp %27 : vector<16x16xf32>
    %cst_14 = arith.constant dense<0.000000e+00> : vector<16x8xf32>
    %29 = tpu.matmul %28, %19, %cst_14 {dimension_numbers = #tpu.dot_dimension_numbers<[1], [0], [0], [1], [0, 0, 1, 1], [], []>} : vector<16x16xf32>, vector<16x8xf32>, vector<16x8xf32> -> vector<16x8xf32>
    %cst_15 = arith.constant dense<0.000000e+00> : vector<16xf32>
    %30 = vector.multi_reduction <add>, %28, %cst_15 [1] : vector<16x16xf32> to vector<16xf32>
    %31 = vector.shape_cast %30 : vector<16xf32> to vector<16x1xf32>
    %32 = tpu.reciprocal %31 {approx = true} : vector<16x1xf32> -> vector<16x1xf32>
    %33 = vector.broadcast %32 : vector<16x1xf32> to vector<16x8xf32>
    %34 = arith.mulf %29, %33 : vector<16x8xf32>
    %35 = vector.extract_strided_slice %14 {offsets = [0, 8], sizes = [16, 8], strides = [1, 1]} : vector<16x32xf32> to vector<16x8xf32>
    %36 = vector.extract_strided_slice %15 {offsets = [0, 8], sizes = [16, 8], strides = [1, 1]} : vector<16x32xf32> to vector<16x8xf32>
    %37 = vector.extract_strided_slice %16 {offsets = [0, 8], sizes = [16, 8], strides = [1, 1]} : vector<16x32xf32> to vector<16x8xf32>
    %cst_16 = arith.constant dense<0.000000e+00> : vector<16x16xf32>
    %38 = tpu.matmul %35, %36, %cst_16 {dimension_numbers = #tpu.dot_dimension_numbers<[1], [1], [0], [0], [0, 0, 1, 0], [], []>} : vector<16x8xf32>, vector<16x8xf32>, vector<16x16xf32> -> vector<16x16xf32>
    %cst_17 = arith.constant 0.353553385 : f32
    %39 = vector.broadcast %cst_17 : f32 to vector<16x16xf32>
    %40 = arith.mulf %38, %39 : vector<16x16xf32>
    %41 = arith.addf %40, %2 : vector<16x16xf32>
    %cst_18 = arith.constant dense<0xFF800000> : vector<16xf32>
    %42 = vector.multi_reduction <maximumf>, %41, %cst_18 [1] : vector<16x16xf32> to vector<16xf32>
    %43 = vector.shape_cast %42 : vector<16xf32> to vector<16x1xf32>
    %44 = vector.broadcast %43 : vector<16x1xf32> to vector<16x16xf32>
    %45 = arith.subf %41, %44 : vector<16x16xf32>
    %46 = math.exp %45 : vector<16x16xf32>
    %cst_19 = arith.constant dense<0.000000e+00> : vector<16x8xf32>
    %47 = tpu.matmul %46, %37, %cst_19 {dimension_numbers = #tpu.dot_dimension_numbers<[1], [0], [0], [1], [0, 0, 1, 1], [], []>} : vector<16x16xf32>, vector<16x8xf32>, vector<16x8xf32> -> vector<16x8xf32>
    %cst_20 = arith.constant dense<0.000000e+00> : vector<16xf32>
    %48 = vector.multi_reduction <add>, %46, %cst_20 [1] : vector<16x16xf32> to vector<16xf32>
    %49 = vector.shape_cast %48 : vector<16xf32> to vector<16x1xf32>
    %50 = tpu.reciprocal %49 {approx = true} : vector<16x1xf32> -> vector<16x1xf32>
    %51 = vector.broadcast %50 : vector<16x1xf32> to vector<16x8xf32>
    %52 = arith.mulf %47, %51 : vector<16x8xf32>
    %53 = vector.extract_strided_slice %14 {offsets = [0, 16], sizes = [16, 8], strides = [1, 1]} : vector<16x32xf32> to vector<16x8xf32>
    %54 = vector.extract_strided_slice %15 {offsets = [0, 16], sizes = [16, 8], strides = [1, 1]} : vector<16x32xf32> to vector<16x8xf32>
    %55 = vector.extract_strided_slice %16 {offsets = [0, 16], sizes = [16, 8], strides = [1, 1]} : vector<16x32xf32> to vector<16x8xf32>
    %cst_21 = arith.constant dense<0.000000e+00> : vector<16x16xf32>
    %56 = tpu.matmul %53, %54, %cst_21 {dimension_numbers = #tpu.dot_dimension_numbers<[1], [1], [0], [0], [0, 0, 1, 0], [], []>} : vector<16x8xf32>, vector<16x8xf32>, vector<16x16xf32> -> vector<16x16xf32>
    %cst_22 = arith.constant 0.353553385 : f32
    %57 = vector.broadcast %cst_22 : f32 to vector<16x16xf32>
    %58 = arith.mulf %56, %57 : vector<16x16xf32>
    %59 = arith.addf %58, %2 : vector<16x16xf32>
    %cst_23 = arith.constant dense<0xFF800000> : vector<16xf32>
    %60 = vector.multi_reduction <maximumf>, %59, %cst_23 [1] : vector<16x16xf32> to vector<16xf32>
    %61 = vector.shape_cast %60 : vector<16xf32> to vector<16x1xf32>
    %62 = vector.broadcast %61 : vector<16x1xf32> to vector<16x16xf32>
    %63 = arith.subf %59, %62 : vector<16x16xf32>
    %64 = math.exp %63 : vector<16x16xf32>
    %cst_24 = arith.constant dense<0.000000e+00> : vector<16x8xf32>
    %65 = tpu.matmul %64, %55, %cst_24 {dimension_numbers = #tpu.dot_dimension_numbers<[1], [0], [0], [1], [0, 0, 1, 1], [], []>} : vector<16x16xf32>, vector<16x8xf32>, vector<16x8xf32> -> vector<16x8xf32>
    %cst_25 = arith.constant dense<0.000000e+00> : vector<16xf32>
    %66 = vector.multi_reduction <add>, %64, %cst_25 [1] : vector<16x16xf32> to vector<16xf32>
    %67 = vector.shape_cast %66 : vector<16xf32> to vector<16x1xf32>
    %68 = tpu.reciprocal %67 {approx = true} : vector<16x1xf32> -> vector<16x1xf32>
    %69 = vector.broadcast %68 : vector<16x1xf32> to vector<16x8xf32>
    %70 = arith.mulf %65, %69 : vector<16x8xf32>
    %71 = vector.extract_strided_slice %14 {offsets = [0, 24], sizes = [16, 8], strides = [1, 1]} : vector<16x32xf32> to vector<16x8xf32>
    %72 = vector.extract_strided_slice %15 {offsets = [0, 24], sizes = [16, 8], strides = [1, 1]} : vector<16x32xf32> to vector<16x8xf32>
    %73 = vector.extract_strided_slice %16 {offsets = [0, 24], sizes = [16, 8], strides = [1, 1]} : vector<16x32xf32> to vector<16x8xf32>
    %cst_26 = arith.constant dense<0.000000e+00> : vector<16x16xf32>
    %74 = tpu.matmul %71, %72, %cst_26 {dimension_numbers = #tpu.dot_dimension_numbers<[1], [1], [0], [0], [0, 0, 1, 0], [], []>} : vector<16x8xf32>, vector<16x8xf32>, vector<16x16xf32> -> vector<16x16xf32>
    %cst_27 = arith.constant 0.353553385 : f32
    %75 = vector.broadcast %cst_27 : f32 to vector<16x16xf32>
    %76 = arith.mulf %74, %75 : vector<16x16xf32>
    %77 = arith.addf %76, %2 : vector<16x16xf32>
    %cst_28 = arith.constant dense<0xFF800000> : vector<16xf32>
    %78 = vector.multi_reduction <maximumf>, %77, %cst_28 [1] : vector<16x16xf32> to vector<16xf32>
    %79 = vector.shape_cast %78 : vector<16xf32> to vector<16x1xf32>
    %80 = vector.broadcast %79 : vector<16x1xf32> to vector<16x16xf32>
    %81 = arith.subf %77, %80 : vector<16x16xf32>
    %82 = math.exp %81 : vector<16x16xf32>
    %cst_29 = arith.constant dense<0.000000e+00> : vector<16x8xf32>
    %83 = tpu.matmul %82, %73, %cst_29 {dimension_numbers = #tpu.dot_dimension_numbers<[1], [0], [0], [1], [0, 0, 1, 1], [], []>} : vector<16x16xf32>, vector<16x8xf32>, vector<16x8xf32> -> vector<16x8xf32>
    %cst_30 = arith.constant dense<0.000000e+00> : vector<16xf32>
    %84 = vector.multi_reduction <add>, %82, %cst_30 [1] : vector<16x16xf32> to vector<16xf32>
    %85 = vector.shape_cast %84 : vector<16xf32> to vector<16x1xf32>
    %86 = tpu.reciprocal %85 {approx = true} : vector<16x1xf32> -> vector<16x1xf32>
    %87 = vector.broadcast %86 : vector<16x1xf32> to vector<16x8xf32>
    %88 = arith.mulf %83, %87 : vector<16x8xf32>
    %89 = tpu.concatenate %34, %52, %70, %88 in 1 : vector<16x8xf32>, vector<16x8xf32>, vector<16x8xf32>, vector<16x8xf32> -> vector<16x32xf32>
    %c0_31 = arith.constant 0 : index
    %c128 = arith.constant 128 : index
    %90 = vector.load %arg2[%c0_31, %c128] : memref<64x768xf32, #tpu.memory_space<vmem>>, vector<32x32xf32>
    %cst_32 = arith.constant dense<0.000000e+00> : vector<16x32xf32>
    %91 = tpu.matmul %89, %90, %cst_32 {dimension_numbers = #tpu.dot_dimension_numbers<[1], [0], [0], [1], [0, 0, 1, 1], [], []>} : vector<16x32xf32>, vector<32x32xf32>, vector<16x32xf32> -> vector<16x32xf32>
    %c1 = arith.constant 1 : index
    %c0_33 = arith.constant 0 : index
    %92 = vector.load %arg4[%c1, %c0_33] : memref<32x128xf32, #tpu.memory_space<vmem>>, vector<1x32xf32>
    %93 = vector.broadcast %92 : vector<1x32xf32> to vector<16x32xf32>
    %94 = arith.addf %91, %93 : vector<16x32xf32>
    %95 = arith.addf %8, %94 : vector<16x32xf32>
    %c7 = arith.constant 7 : index
    %c0_34 = arith.constant 0 : index
    %96 = vector.load %arg4[%c7, %c0_34] : memref<32x128xf32, #tpu.memory_space<vmem>>, vector<1x32xf32>
    %c8 = arith.constant 8 : index
    %c0_35 = arith.constant 0 : index
    %97 = vector.load %arg4[%c8, %c0_35] : memref<32x128xf32, #tpu.memory_space<vmem>>, vector<1x32xf32>
    %cst_36 = arith.constant dense<0.000000e+00> : vector<16xf32>
    %98 = vector.multi_reduction <add>, %95, %cst_36 [1] : vector<16x32xf32> to vector<16xf32>
    %99 = vector.shape_cast %98 : vector<16xf32> to vector<16x1xf32>
    %cst_37 = arith.constant 3.125000e-02 : f32
    %100 = vector.broadcast %cst_37 : f32 to vector<16x1xf32>
    %101 = arith.mulf %99, %100 : vector<16x1xf32>
    %102 = arith.mulf %95, %95 : vector<16x32xf32>
    %cst_38 = arith.constant dense<0.000000e+00> : vector<16xf32>
    %103 = vector.multi_reduction <add>, %102, %cst_38 [1] : vector<16x32xf32> to vector<16xf32>
    %104 = vector.shape_cast %103 : vector<16xf32> to vector<16x1xf32>
    %cst_39 = arith.constant 3.125000e-02 : f32
    %105 = vector.broadcast %cst_39 : f32 to vector<16x1xf32>
    %106 = arith.mulf %104, %105 : vector<16x1xf32>
    %107 = arith.mulf %101, %101 : vector<16x1xf32>
    %108 = arith.subf %106, %107 : vector<16x1xf32>
    %109 = vector.broadcast %101 : vector<16x1xf32> to vector<16x32xf32>
    %110 = arith.subf %95, %109 : vector<16x32xf32>
    %cst_40 = arith.constant 9.99999974E-6 : f32
    %111 = vector.broadcast %cst_40 : f32 to vector<16x1xf32>
    %112 = arith.addf %108, %111 : vector<16x1xf32>
    %113 = math.rsqrt %112 : vector<16x1xf32>
    %114 = vector.broadcast %113 : vector<16x1xf32> to vector<16x32xf32>
    %115 = arith.mulf %110, %114 : vector<16x32xf32>
    %116 = vector.broadcast %96 : vector<1x32xf32> to vector<16x32xf32>
    %117 = arith.mulf %115, %116 : vector<16x32xf32>
    %118 = vector.broadcast %97 : vector<1x32xf32> to vector<16x32xf32>
    %119 = arith.addf %117, %118 : vector<16x32xf32>
    %c0_41 = arith.constant 0 : index
    %c256 = arith.constant 256 : index
    %120 = vector.load %arg2[%c0_41, %c256] : memref<64x768xf32, #tpu.memory_space<vmem>>, vector<32x32xf32>
    %cst_42 = arith.constant dense<0.000000e+00> : vector<16x32xf32>
    %121 = tpu.matmul %119, %120, %cst_42 {dimension_numbers = #tpu.dot_dimension_numbers<[1], [0], [0], [1], [0, 0, 1, 1], [], []>} : vector<16x32xf32>, vector<32x32xf32>, vector<16x32xf32> -> vector<16x32xf32>
    %c2 = arith.constant 2 : index
    %c0_43 = arith.constant 0 : index
    %122 = vector.load %arg4[%c2, %c0_43] : memref<32x128xf32, #tpu.memory_space<vmem>>, vector<1x32xf32>
    %123 = vector.broadcast %122 : vector<1x32xf32> to vector<16x32xf32>
    %124 = arith.addf %121, %123 : vector<16x32xf32>
    %c0_44 = arith.constant 0 : index
    %c384 = arith.constant 384 : index
    %125 = vector.load %arg2[%c0_44, %c384] : memref<64x768xf32, #tpu.memory_space<vmem>>, vector<32x64xf32>
    %cst_45 = arith.constant dense<0.000000e+00> : vector<16x64xf32>
    %126 = tpu.matmul %1, %125, %cst_45 {dimension_numbers = #tpu.dot_dimension_numbers<[1], [0], [0], [1], [0, 0, 1, 1], [], []>} : vector<16x32xf32>, vector<32x64xf32>, vector<16x64xf32> -> vector<16x64xf32>
    %c3 = arith.constant 3 : index
    %c0_46 = arith.constant 0 : index
    %127 = vector.load %arg4[%c3, %c0_46] : memref<32x128xf32, #tpu.memory_space<vmem>>, vector<1x64xf32>
    %128 = vector.broadcast %127 : vector<1x64xf32> to vector<16x64xf32>
    %129 = arith.addf %126, %128 : vector<16x64xf32>
    %130 = vector.extract_strided_slice %129 {offsets = [0, 0], sizes = [16, 32], strides = [1, 1]} : vector<16x64xf32> to vector<16x32xf32>
    %131 = vector.extract_strided_slice %129 {offsets = [0, 32], sizes = [16, 32], strides = [1, 1]} : vector<16x64xf32> to vector<16x32xf32>
    %132 = vector.extract_strided_slice %124 {offsets = [0, 0], sizes = [16, 8], strides = [1, 1]} : vector<16x32xf32> to vector<16x8xf32>
    %133 = vector.extract_strided_slice %130 {offsets = [0, 0], sizes = [16, 8], strides = [1, 1]} : vector<16x32xf32> to vector<16x8xf32>
    %134 = vector.extract_strided_slice %131 {offsets = [0, 0], sizes = [16, 8], strides = [1, 1]} : vector<16x32xf32> to vector<16x8xf32>
    %cst_47 = arith.constant dense<0.000000e+00> : vector<16x16xf32>
    %135 = tpu.matmul %132, %133, %cst_47 {dimension_numbers = #tpu.dot_dimension_numbers<[1], [1], [0], [0], [0, 0, 1, 0], [], []>} : vector<16x8xf32>, vector<16x8xf32>, vector<16x16xf32> -> vector<16x16xf32>
    %cst_48 = arith.constant 0.353553385 : f32
    %136 = vector.broadcast %cst_48 : f32 to vector<16x16xf32>
    %137 = arith.mulf %135, %136 : vector<16x16xf32>
    %138 = arith.addf %137, %3 : vector<16x16xf32>
    %cst_49 = arith.constant dense<0xFF800000> : vector<16xf32>
    %139 = vector.multi_reduction <maximumf>, %138, %cst_49 [1] : vector<16x16xf32> to vector<16xf32>
    %140 = vector.shape_cast %139 : vector<16xf32> to vector<16x1xf32>
    %141 = vector.broadcast %140 : vector<16x1xf32> to vector<16x16xf32>
    %142 = arith.subf %138, %141 : vector<16x16xf32>
    %143 = math.exp %142 : vector<16x16xf32>
    %cst_50 = arith.constant dense<0.000000e+00> : vector<16x8xf32>
    %144 = tpu.matmul %143, %134, %cst_50 {dimension_numbers = #tpu.dot_dimension_numbers<[1], [0], [0], [1], [0, 0, 1, 1], [], []>} : vector<16x16xf32>, vector<16x8xf32>, vector<16x8xf32> -> vector<16x8xf32>
    %cst_51 = arith.constant dense<0.000000e+00> : vector<16xf32>
    %145 = vector.multi_reduction <add>, %143, %cst_51 [1] : vector<16x16xf32> to vector<16xf32>
    %146 = vector.shape_cast %145 : vector<16xf32> to vector<16x1xf32>
    %147 = tpu.reciprocal %146 {approx = true} : vector<16x1xf32> -> vector<16x1xf32>
    %148 = vector.broadcast %147 : vector<16x1xf32> to vector<16x8xf32>
    %149 = arith.mulf %144, %148 : vector<16x8xf32>
    %150 = vector.extract_strided_slice %124 {offsets = [0, 8], sizes = [16, 8], strides = [1, 1]} : vector<16x32xf32> to vector<16x8xf32>
    %151 = vector.extract_strided_slice %130 {offsets = [0, 8], sizes = [16, 8], strides = [1, 1]} : vector<16x32xf32> to vector<16x8xf32>
    %152 = vector.extract_strided_slice %131 {offsets = [0, 8], sizes = [16, 8], strides = [1, 1]} : vector<16x32xf32> to vector<16x8xf32>
    %cst_52 = arith.constant dense<0.000000e+00> : vector<16x16xf32>
    %153 = tpu.matmul %150, %151, %cst_52 {dimension_numbers = #tpu.dot_dimension_numbers<[1], [1], [0], [0], [0, 0, 1, 0], [], []>} : vector<16x8xf32>, vector<16x8xf32>, vector<16x16xf32> -> vector<16x16xf32>
    %cst_53 = arith.constant 0.353553385 : f32
    %154 = vector.broadcast %cst_53 : f32 to vector<16x16xf32>
    %155 = arith.mulf %153, %154 : vector<16x16xf32>
    %156 = arith.addf %155, %3 : vector<16x16xf32>
    %cst_54 = arith.constant dense<0xFF800000> : vector<16xf32>
    %157 = vector.multi_reduction <maximumf>, %156, %cst_54 [1] : vector<16x16xf32> to vector<16xf32>
    %158 = vector.shape_cast %157 : vector<16xf32> to vector<16x1xf32>
    %159 = vector.broadcast %158 : vector<16x1xf32> to vector<16x16xf32>
    %160 = arith.subf %156, %159 : vector<16x16xf32>
    %161 = math.exp %160 : vector<16x16xf32>
    %cst_55 = arith.constant dense<0.000000e+00> : vector<16x8xf32>
    %162 = tpu.matmul %161, %152, %cst_55 {dimension_numbers = #tpu.dot_dimension_numbers<[1], [0], [0], [1], [0, 0, 1, 1], [], []>} : vector<16x16xf32>, vector<16x8xf32>, vector<16x8xf32> -> vector<16x8xf32>
    %cst_56 = arith.constant dense<0.000000e+00> : vector<16xf32>
    %163 = vector.multi_reduction <add>, %161, %cst_56 [1] : vector<16x16xf32> to vector<16xf32>
    %164 = vector.shape_cast %163 : vector<16xf32> to vector<16x1xf32>
    %165 = tpu.reciprocal %164 {approx = true} : vector<16x1xf32> -> vector<16x1xf32>
    %166 = vector.broadcast %165 : vector<16x1xf32> to vector<16x8xf32>
    %167 = arith.mulf %162, %166 : vector<16x8xf32>
    %168 = vector.extract_strided_slice %124 {offsets = [0, 16], sizes = [16, 8], strides = [1, 1]} : vector<16x32xf32> to vector<16x8xf32>
    %169 = vector.extract_strided_slice %130 {offsets = [0, 16], sizes = [16, 8], strides = [1, 1]} : vector<16x32xf32> to vector<16x8xf32>
    %170 = vector.extract_strided_slice %131 {offsets = [0, 16], sizes = [16, 8], strides = [1, 1]} : vector<16x32xf32> to vector<16x8xf32>
    %cst_57 = arith.constant dense<0.000000e+00> : vector<16x16xf32>
    %171 = tpu.matmul %168, %169, %cst_57 {dimension_numbers = #tpu.dot_dimension_numbers<[1], [1], [0], [0], [0, 0, 1, 0], [], []>} : vector<16x8xf32>, vector<16x8xf32>, vector<16x16xf32> -> vector<16x16xf32>
    %cst_58 = arith.constant 0.353553385 : f32
    %172 = vector.broadcast %cst_58 : f32 to vector<16x16xf32>
    %173 = arith.mulf %171, %172 : vector<16x16xf32>
    %174 = arith.addf %173, %3 : vector<16x16xf32>
    %cst_59 = arith.constant dense<0xFF800000> : vector<16xf32>
    %175 = vector.multi_reduction <maximumf>, %174, %cst_59 [1] : vector<16x16xf32> to vector<16xf32>
    %176 = vector.shape_cast %175 : vector<16xf32> to vector<16x1xf32>
    %177 = vector.broadcast %176 : vector<16x1xf32> to vector<16x16xf32>
    %178 = arith.subf %174, %177 : vector<16x16xf32>
    %179 = math.exp %178 : vector<16x16xf32>
    %cst_60 = arith.constant dense<0.000000e+00> : vector<16x8xf32>
    %180 = tpu.matmul %179, %170, %cst_60 {dimension_numbers = #tpu.dot_dimension_numbers<[1], [0], [0], [1], [0, 0, 1, 1], [], []>} : vector<16x16xf32>, vector<16x8xf32>, vector<16x8xf32> -> vector<16x8xf32>
    %cst_61 = arith.constant dense<0.000000e+00> : vector<16xf32>
    %181 = vector.multi_reduction <add>, %179, %cst_61 [1] : vector<16x16xf32> to vector<16xf32>
    %182 = vector.shape_cast %181 : vector<16xf32> to vector<16x1xf32>
    %183 = tpu.reciprocal %182 {approx = true} : vector<16x1xf32> -> vector<16x1xf32>
    %184 = vector.broadcast %183 : vector<16x1xf32> to vector<16x8xf32>
    %185 = arith.mulf %180, %184 : vector<16x8xf32>
    %186 = vector.extract_strided_slice %124 {offsets = [0, 24], sizes = [16, 8], strides = [1, 1]} : vector<16x32xf32> to vector<16x8xf32>
    %187 = vector.extract_strided_slice %130 {offsets = [0, 24], sizes = [16, 8], strides = [1, 1]} : vector<16x32xf32> to vector<16x8xf32>
    %188 = vector.extract_strided_slice %131 {offsets = [0, 24], sizes = [16, 8], strides = [1, 1]} : vector<16x32xf32> to vector<16x8xf32>
    %cst_62 = arith.constant dense<0.000000e+00> : vector<16x16xf32>
    %189 = tpu.matmul %186, %187, %cst_62 {dimension_numbers = #tpu.dot_dimension_numbers<[1], [1], [0], [0], [0, 0, 1, 0], [], []>} : vector<16x8xf32>, vector<16x8xf32>, vector<16x16xf32> -> vector<16x16xf32>
    %cst_63 = arith.constant 0.353553385 : f32
    %190 = vector.broadcast %cst_63 : f32 to vector<16x16xf32>
    %191 = arith.mulf %189, %190 : vector<16x16xf32>
    %192 = arith.addf %191, %3 : vector<16x16xf32>
    %cst_64 = arith.constant dense<0xFF800000> : vector<16xf32>
    %193 = vector.multi_reduction <maximumf>, %192, %cst_64 [1] : vector<16x16xf32> to vector<16xf32>
    %194 = vector.shape_cast %193 : vector<16xf32> to vector<16x1xf32>
    %195 = vector.broadcast %194 : vector<16x1xf32> to vector<16x16xf32>
    %196 = arith.subf %192, %195 : vector<16x16xf32>
    %197 = math.exp %196 : vector<16x16xf32>
    %cst_65 = arith.constant dense<0.000000e+00> : vector<16x8xf32>
    %198 = tpu.matmul %197, %188, %cst_65 {dimension_numbers = #tpu.dot_dimension_numbers<[1], [0], [0], [1], [0, 0, 1, 1], [], []>} : vector<16x16xf32>, vector<16x8xf32>, vector<16x8xf32> -> vector<16x8xf32>
    %cst_66 = arith.constant dense<0.000000e+00> : vector<16xf32>
    %199 = vector.multi_reduction <add>, %197, %cst_66 [1] : vector<16x16xf32> to vector<16xf32>
    %200 = vector.shape_cast %199 : vector<16xf32> to vector<16x1xf32>
    %201 = tpu.reciprocal %200 {approx = true} : vector<16x1xf32> -> vector<16x1xf32>
    %202 = vector.broadcast %201 : vector<16x1xf32> to vector<16x8xf32>
    %203 = arith.mulf %198, %202 : vector<16x8xf32>
    %204 = tpu.concatenate %149, %167, %185, %203 in 1 : vector<16x8xf32>, vector<16x8xf32>, vector<16x8xf32>, vector<16x8xf32> -> vector<16x32xf32>
    %c0_67 = arith.constant 0 : index
    %c512 = arith.constant 512 : index
    %205 = vector.load %arg2[%c0_67, %c512] : memref<64x768xf32, #tpu.memory_space<vmem>>, vector<32x32xf32>
    %cst_68 = arith.constant dense<0.000000e+00> : vector<16x32xf32>
    %206 = tpu.matmul %204, %205, %cst_68 {dimension_numbers = #tpu.dot_dimension_numbers<[1], [0], [0], [1], [0, 0, 1, 1], [], []>} : vector<16x32xf32>, vector<32x32xf32>, vector<16x32xf32> -> vector<16x32xf32>
    %c4 = arith.constant 4 : index
    %c0_69 = arith.constant 0 : index
    %207 = vector.load %arg4[%c4, %c0_69] : memref<32x128xf32, #tpu.memory_space<vmem>>, vector<1x32xf32>
    %208 = vector.broadcast %207 : vector<1x32xf32> to vector<16x32xf32>
    %209 = arith.addf %206, %208 : vector<16x32xf32>
    %210 = arith.addf %119, %209 : vector<16x32xf32>
    %c9 = arith.constant 9 : index
    %c0_70 = arith.constant 0 : index
    %211 = vector.load %arg4[%c9, %c0_70] : memref<32x128xf32, #tpu.memory_space<vmem>>, vector<1x32xf32>
    %c10 = arith.constant 10 : index
    %c0_71 = arith.constant 0 : index
    %212 = vector.load %arg4[%c10, %c0_71] : memref<32x128xf32, #tpu.memory_space<vmem>>, vector<1x32xf32>
    %cst_72 = arith.constant dense<0.000000e+00> : vector<16xf32>
    %213 = vector.multi_reduction <add>, %210, %cst_72 [1] : vector<16x32xf32> to vector<16xf32>
    %214 = vector.shape_cast %213 : vector<16xf32> to vector<16x1xf32>
    %cst_73 = arith.constant 3.125000e-02 : f32
    %215 = vector.broadcast %cst_73 : f32 to vector<16x1xf32>
    %216 = arith.mulf %214, %215 : vector<16x1xf32>
    %217 = arith.mulf %210, %210 : vector<16x32xf32>
    %cst_74 = arith.constant dense<0.000000e+00> : vector<16xf32>
    %218 = vector.multi_reduction <add>, %217, %cst_74 [1] : vector<16x32xf32> to vector<16xf32>
    %219 = vector.shape_cast %218 : vector<16xf32> to vector<16x1xf32>
    %cst_75 = arith.constant 3.125000e-02 : f32
    %220 = vector.broadcast %cst_75 : f32 to vector<16x1xf32>
    %221 = arith.mulf %219, %220 : vector<16x1xf32>
    %222 = arith.mulf %216, %216 : vector<16x1xf32>
    %223 = arith.subf %221, %222 : vector<16x1xf32>
    %224 = vector.broadcast %216 : vector<16x1xf32> to vector<16x32xf32>
    %225 = arith.subf %210, %224 : vector<16x32xf32>
    %cst_76 = arith.constant 9.99999974E-6 : f32
    %226 = vector.broadcast %cst_76 : f32 to vector<16x1xf32>
    %227 = arith.addf %223, %226 : vector<16x1xf32>
    %228 = math.rsqrt %227 : vector<16x1xf32>
    %229 = vector.broadcast %228 : vector<16x1xf32> to vector<16x32xf32>
    %230 = arith.mulf %225, %229 : vector<16x32xf32>
    %231 = vector.broadcast %211 : vector<1x32xf32> to vector<16x32xf32>
    %232 = arith.mulf %230, %231 : vector<16x32xf32>
    %233 = vector.broadcast %212 : vector<1x32xf32> to vector<16x32xf32>
    %234 = arith.addf %232, %233 : vector<16x32xf32>
    %c0_77 = arith.constant 0 : index
    %c640 = arith.constant 640 : index
    %235 = vector.load %arg2[%c0_77, %c640] : memref<64x768xf32, #tpu.memory_space<vmem>>, vector<32x128xf32>
    %cst_78 = arith.constant dense<0.000000e+00> : vector<16x128xf32>
    %236 = tpu.matmul %234, %235, %cst_78 {dimension_numbers = #tpu.dot_dimension_numbers<[1], [0], [0], [1], [0, 0, 1, 1], [], []>} : vector<16x32xf32>, vector<32x128xf32>, vector<16x128xf32> -> vector<16x128xf32>
    %c5 = arith.constant 5 : index
    %c0_79 = arith.constant 0 : index
    %237 = vector.load %arg4[%c5, %c0_79] : memref<32x128xf32, #tpu.memory_space<vmem>>, vector<1x128xf32>
    %238 = vector.broadcast %237 : vector<1x128xf32> to vector<16x128xf32>
    %239 = arith.addf %236, %238 : vector<16x128xf32>
    %cst_80 = arith.constant 0.000000e+00 : f32
    %240 = vector.broadcast %cst_80 : f32 to vector<16x128xf32>
    %241 = arith.maximumf %239, %240 : vector<16x128xf32>
    %c0_81 = arith.constant 0 : index
    %c0_82 = arith.constant 0 : index
    %242 = vector.load %arg3[%c0_81, %c0_82] : memref<256x32xf32, #tpu.memory_space<vmem>>, vector<128x32xf32>
    %cst_83 = arith.constant dense<0.000000e+00> : vector<16x32xf32>
    %243 = tpu.matmul %241, %242, %cst_83 {dimension_numbers = #tpu.dot_dimension_numbers<[1], [0], [0], [1], [0, 0, 1, 1], [], []>} : vector<16x128xf32>, vector<128x32xf32>, vector<16x32xf32> -> vector<16x32xf32>
    %c6 = arith.constant 6 : index
    %c0_84 = arith.constant 0 : index
    %244 = vector.load %arg4[%c6, %c0_84] : memref<32x128xf32, #tpu.memory_space<vmem>>, vector<1x32xf32>
    %245 = vector.broadcast %244 : vector<1x32xf32> to vector<16x32xf32>
    %246 = arith.addf %243, %245 : vector<16x32xf32>
    %247 = arith.addf %234, %246 : vector<16x32xf32>
    %c11 = arith.constant 11 : index
    %c0_85 = arith.constant 0 : index
    %248 = vector.load %arg4[%c11, %c0_85] : memref<32x128xf32, #tpu.memory_space<vmem>>, vector<1x32xf32>
    %c12 = arith.constant 12 : index
    %c0_86 = arith.constant 0 : index
    %249 = vector.load %arg4[%c12, %c0_86] : memref<32x128xf32, #tpu.memory_space<vmem>>, vector<1x32xf32>
    %cst_87 = arith.constant dense<0.000000e+00> : vector<16xf32>
    %250 = vector.multi_reduction <add>, %247, %cst_87 [1] : vector<16x32xf32> to vector<16xf32>
    %251 = vector.shape_cast %250 : vector<16xf32> to vector<16x1xf32>
    %cst_88 = arith.constant 3.125000e-02 : f32
    %252 = vector.broadcast %cst_88 : f32 to vector<16x1xf32>
    %253 = arith.mulf %251, %252 : vector<16x1xf32>
    %254 = arith.mulf %247, %247 : vector<16x32xf32>
    %cst_89 = arith.constant dense<0.000000e+00> : vector<16xf32>
    %255 = vector.multi_reduction <add>, %254, %cst_89 [1] : vector<16x32xf32> to vector<16xf32>
    %256 = vector.shape_cast %255 : vector<16xf32> to vector<16x1xf32>
    %cst_90 = arith.constant 3.125000e-02 : f32
    %257 = vector.broadcast %cst_90 : f32 to vector<16x1xf32>
    %258 = arith.mulf %256, %257 : vector<16x1xf32>
    %259 = arith.mulf %253, %253 : vector<16x1xf32>
    %260 = arith.subf %258, %259 : vector<16x1xf32>
    %261 = vector.broadcast %253 : vector<16x1xf32> to vector<16x32xf32>
    %262 = arith.subf %247, %261 : vector<16x32xf32>
    %cst_91 = arith.constant 9.99999974E-6 : f32
    %263 = vector.broadcast %cst_91 : f32 to vector<16x1xf32>
    %264 = arith.addf %260, %263 : vector<16x1xf32>
    %265 = math.rsqrt %264 : vector<16x1xf32>
    %266 = vector.broadcast %265 : vector<16x1xf32> to vector<16x32xf32>
    %267 = arith.mulf %262, %266 : vector<16x32xf32>
    %268 = vector.broadcast %248 : vector<1x32xf32> to vector<16x32xf32>
    %269 = arith.mulf %267, %268 : vector<16x32xf32>
    %270 = vector.broadcast %249 : vector<1x32xf32> to vector<16x32xf32>
    %271 = arith.addf %269, %270 : vector<16x32xf32>
    %c32_92 = arith.constant 32 : index
    %c0_93 = arith.constant 0 : index
    %272 = vector.load %arg2[%c32_92, %c0_93] : memref<64x768xf32, #tpu.memory_space<vmem>>, vector<32x96xf32>
    %cst_94 = arith.constant dense<0.000000e+00> : vector<16x96xf32>
    %273 = tpu.matmul %271, %272, %cst_94 {dimension_numbers = #tpu.dot_dimension_numbers<[1], [0], [0], [1], [0, 0, 1, 1], [], []>} : vector<16x32xf32>, vector<32x96xf32>, vector<16x96xf32> -> vector<16x96xf32>
    %c16_95 = arith.constant 16 : index
    %c0_96 = arith.constant 0 : index
    %274 = vector.load %arg4[%c16_95, %c0_96] : memref<32x128xf32, #tpu.memory_space<vmem>>, vector<1x96xf32>
    %275 = vector.broadcast %274 : vector<1x96xf32> to vector<16x96xf32>
    %276 = arith.addf %273, %275 : vector<16x96xf32>
    %277 = vector.extract_strided_slice %276 {offsets = [0, 0], sizes = [16, 32], strides = [1, 1]} : vector<16x96xf32> to vector<16x32xf32>
    %278 = vector.extract_strided_slice %276 {offsets = [0, 32], sizes = [16, 32], strides = [1, 1]} : vector<16x96xf32> to vector<16x32xf32>
    %279 = vector.extract_strided_slice %276 {offsets = [0, 64], sizes = [16, 32], strides = [1, 1]} : vector<16x96xf32> to vector<16x32xf32>
    %280 = vector.extract_strided_slice %277 {offsets = [0, 0], sizes = [16, 8], strides = [1, 1]} : vector<16x32xf32> to vector<16x8xf32>
    %281 = vector.extract_strided_slice %278 {offsets = [0, 0], sizes = [16, 8], strides = [1, 1]} : vector<16x32xf32> to vector<16x8xf32>
    %282 = vector.extract_strided_slice %279 {offsets = [0, 0], sizes = [16, 8], strides = [1, 1]} : vector<16x32xf32> to vector<16x8xf32>
    %cst_97 = arith.constant dense<0.000000e+00> : vector<16x16xf32>
    %283 = tpu.matmul %280, %281, %cst_97 {dimension_numbers = #tpu.dot_dimension_numbers<[1], [1], [0], [0], [0, 0, 1, 0], [], []>} : vector<16x8xf32>, vector<16x8xf32>, vector<16x16xf32> -> vector<16x16xf32>
    %cst_98 = arith.constant 0.353553385 : f32
    %284 = vector.broadcast %cst_98 : f32 to vector<16x16xf32>
    %285 = arith.mulf %283, %284 : vector<16x16xf32>
    %286 = arith.addf %285, %2 : vector<16x16xf32>
    %cst_99 = arith.constant dense<0xFF800000> : vector<16xf32>
    %287 = vector.multi_reduction <maximumf>, %286, %cst_99 [1] : vector<16x16xf32> to vector<16xf32>
    %288 = vector.shape_cast %287 : vector<16xf32> to vector<16x1xf32>
    %289 = vector.broadcast %288 : vector<16x1xf32> to vector<16x16xf32>
    %290 = arith.subf %286, %289 : vector<16x16xf32>
    %291 = math.exp %290 : vector<16x16xf32>
    %cst_100 = arith.constant dense<0.000000e+00> : vector<16x8xf32>
    %292 = tpu.matmul %291, %282, %cst_100 {dimension_numbers = #tpu.dot_dimension_numbers<[1], [0], [0], [1], [0, 0, 1, 1], [], []>} : vector<16x16xf32>, vector<16x8xf32>, vector<16x8xf32> -> vector<16x8xf32>
    %cst_101 = arith.constant dense<0.000000e+00> : vector<16xf32>
    %293 = vector.multi_reduction <add>, %291, %cst_101 [1] : vector<16x16xf32> to vector<16xf32>
    %294 = vector.shape_cast %293 : vector<16xf32> to vector<16x1xf32>
    %295 = tpu.reciprocal %294 {approx = true} : vector<16x1xf32> -> vector<16x1xf32>
    %296 = vector.broadcast %295 : vector<16x1xf32> to vector<16x8xf32>
    %297 = arith.mulf %292, %296 : vector<16x8xf32>
    %298 = vector.extract_strided_slice %277 {offsets = [0, 8], sizes = [16, 8], strides = [1, 1]} : vector<16x32xf32> to vector<16x8xf32>
    %299 = vector.extract_strided_slice %278 {offsets = [0, 8], sizes = [16, 8], strides = [1, 1]} : vector<16x32xf32> to vector<16x8xf32>
    %300 = vector.extract_strided_slice %279 {offsets = [0, 8], sizes = [16, 8], strides = [1, 1]} : vector<16x32xf32> to vector<16x8xf32>
    %cst_102 = arith.constant dense<0.000000e+00> : vector<16x16xf32>
    %301 = tpu.matmul %298, %299, %cst_102 {dimension_numbers = #tpu.dot_dimension_numbers<[1], [1], [0], [0], [0, 0, 1, 0], [], []>} : vector<16x8xf32>, vector<16x8xf32>, vector<16x16xf32> -> vector<16x16xf32>
    %cst_103 = arith.constant 0.353553385 : f32
    %302 = vector.broadcast %cst_103 : f32 to vector<16x16xf32>
    %303 = arith.mulf %301, %302 : vector<16x16xf32>
    %304 = arith.addf %303, %2 : vector<16x16xf32>
    %cst_104 = arith.constant dense<0xFF800000> : vector<16xf32>
    %305 = vector.multi_reduction <maximumf>, %304, %cst_104 [1] : vector<16x16xf32> to vector<16xf32>
    %306 = vector.shape_cast %305 : vector<16xf32> to vector<16x1xf32>
    %307 = vector.broadcast %306 : vector<16x1xf32> to vector<16x16xf32>
    %308 = arith.subf %304, %307 : vector<16x16xf32>
    %309 = math.exp %308 : vector<16x16xf32>
    %cst_105 = arith.constant dense<0.000000e+00> : vector<16x8xf32>
    %310 = tpu.matmul %309, %300, %cst_105 {dimension_numbers = #tpu.dot_dimension_numbers<[1], [0], [0], [1], [0, 0, 1, 1], [], []>} : vector<16x16xf32>, vector<16x8xf32>, vector<16x8xf32> -> vector<16x8xf32>
    %cst_106 = arith.constant dense<0.000000e+00> : vector<16xf32>
    %311 = vector.multi_reduction <add>, %309, %cst_106 [1] : vector<16x16xf32> to vector<16xf32>
    %312 = vector.shape_cast %311 : vector<16xf32> to vector<16x1xf32>
    %313 = tpu.reciprocal %312 {approx = true} : vector<16x1xf32> -> vector<16x1xf32>
    %314 = vector.broadcast %313 : vector<16x1xf32> to vector<16x8xf32>
    %315 = arith.mulf %310, %314 : vector<16x8xf32>
    %316 = vector.extract_strided_slice %277 {offsets = [0, 16], sizes = [16, 8], strides = [1, 1]} : vector<16x32xf32> to vector<16x8xf32>
    %317 = vector.extract_strided_slice %278 {offsets = [0, 16], sizes = [16, 8], strides = [1, 1]} : vector<16x32xf32> to vector<16x8xf32>
    %318 = vector.extract_strided_slice %279 {offsets = [0, 16], sizes = [16, 8], strides = [1, 1]} : vector<16x32xf32> to vector<16x8xf32>
    %cst_107 = arith.constant dense<0.000000e+00> : vector<16x16xf32>
    %319 = tpu.matmul %316, %317, %cst_107 {dimension_numbers = #tpu.dot_dimension_numbers<[1], [1], [0], [0], [0, 0, 1, 0], [], []>} : vector<16x8xf32>, vector<16x8xf32>, vector<16x16xf32> -> vector<16x16xf32>
    %cst_108 = arith.constant 0.353553385 : f32
    %320 = vector.broadcast %cst_108 : f32 to vector<16x16xf32>
    %321 = arith.mulf %319, %320 : vector<16x16xf32>
    %322 = arith.addf %321, %2 : vector<16x16xf32>
    %cst_109 = arith.constant dense<0xFF800000> : vector<16xf32>
    %323 = vector.multi_reduction <maximumf>, %322, %cst_109 [1] : vector<16x16xf32> to vector<16xf32>
    %324 = vector.shape_cast %323 : vector<16xf32> to vector<16x1xf32>
    %325 = vector.broadcast %324 : vector<16x1xf32> to vector<16x16xf32>
    %326 = arith.subf %322, %325 : vector<16x16xf32>
    %327 = math.exp %326 : vector<16x16xf32>
    %cst_110 = arith.constant dense<0.000000e+00> : vector<16x8xf32>
    %328 = tpu.matmul %327, %318, %cst_110 {dimension_numbers = #tpu.dot_dimension_numbers<[1], [0], [0], [1], [0, 0, 1, 1], [], []>} : vector<16x16xf32>, vector<16x8xf32>, vector<16x8xf32> -> vector<16x8xf32>
    %cst_111 = arith.constant dense<0.000000e+00> : vector<16xf32>
    %329 = vector.multi_reduction <add>, %327, %cst_111 [1] : vector<16x16xf32> to vector<16xf32>
    %330 = vector.shape_cast %329 : vector<16xf32> to vector<16x1xf32>
    %331 = tpu.reciprocal %330 {approx = true} : vector<16x1xf32> -> vector<16x1xf32>
    %332 = vector.broadcast %331 : vector<16x1xf32> to vector<16x8xf32>
    %333 = arith.mulf %328, %332 : vector<16x8xf32>
    %334 = vector.extract_strided_slice %277 {offsets = [0, 24], sizes = [16, 8], strides = [1, 1]} : vector<16x32xf32> to vector<16x8xf32>
    %335 = vector.extract_strided_slice %278 {offsets = [0, 24], sizes = [16, 8], strides = [1, 1]} : vector<16x32xf32> to vector<16x8xf32>
    %336 = vector.extract_strided_slice %279 {offsets = [0, 24], sizes = [16, 8], strides = [1, 1]} : vector<16x32xf32> to vector<16x8xf32>
    %cst_112 = arith.constant dense<0.000000e+00> : vector<16x16xf32>
    %337 = tpu.matmul %334, %335, %cst_112 {dimension_numbers = #tpu.dot_dimension_numbers<[1], [1], [0], [0], [0, 0, 1, 0], [], []>} : vector<16x8xf32>, vector<16x8xf32>, vector<16x16xf32> -> vector<16x16xf32>
    %cst_113 = arith.constant 0.353553385 : f32
    %338 = vector.broadcast %cst_113 : f32 to vector<16x16xf32>
    %339 = arith.mulf %337, %338 : vector<16x16xf32>
    %340 = arith.addf %339, %2 : vector<16x16xf32>
    %cst_114 = arith.constant dense<0xFF800000> : vector<16xf32>
    %341 = vector.multi_reduction <maximumf>, %340, %cst_114 [1] : vector<16x16xf32> to vector<16xf32>
    %342 = vector.shape_cast %341 : vector<16xf32> to vector<16x1xf32>
    %343 = vector.broadcast %342 : vector<16x1xf32> to vector<16x16xf32>
    %344 = arith.subf %340, %343 : vector<16x16xf32>
    %345 = math.exp %344 : vector<16x16xf32>
    %cst_115 = arith.constant dense<0.000000e+00> : vector<16x8xf32>
    %346 = tpu.matmul %345, %336, %cst_115 {dimension_numbers = #tpu.dot_dimension_numbers<[1], [0], [0], [1], [0, 0, 1, 1], [], []>} : vector<16x16xf32>, vector<16x8xf32>, vector<16x8xf32> -> vector<16x8xf32>
    %cst_116 = arith.constant dense<0.000000e+00> : vector<16xf32>
    %347 = vector.multi_reduction <add>, %345, %cst_116 [1] : vector<16x16xf32> to vector<16xf32>
    %348 = vector.shape_cast %347 : vector<16xf32> to vector<16x1xf32>
    %349 = tpu.reciprocal %348 {approx = true} : vector<16x1xf32> -> vector<16x1xf32>
    %350 = vector.broadcast %349 : vector<16x1xf32> to vector<16x8xf32>
    %351 = arith.mulf %346, %350 : vector<16x8xf32>
    %352 = tpu.concatenate %297, %315, %333, %351 in 1 : vector<16x8xf32>, vector<16x8xf32>, vector<16x8xf32>, vector<16x8xf32> -> vector<16x32xf32>
    %c32_117 = arith.constant 32 : index
    %c128_118 = arith.constant 128 : index
    %353 = vector.load %arg2[%c32_117, %c128_118] : memref<64x768xf32, #tpu.memory_space<vmem>>, vector<32x32xf32>
    %cst_119 = arith.constant dense<0.000000e+00> : vector<16x32xf32>
    %354 = tpu.matmul %352, %353, %cst_119 {dimension_numbers = #tpu.dot_dimension_numbers<[1], [0], [0], [1], [0, 0, 1, 1], [], []>} : vector<16x32xf32>, vector<32x32xf32>, vector<16x32xf32> -> vector<16x32xf32>
    %c17 = arith.constant 17 : index
    %c0_120 = arith.constant 0 : index
    %355 = vector.load %arg4[%c17, %c0_120] : memref<32x128xf32, #tpu.memory_space<vmem>>, vector<1x32xf32>
    %356 = vector.broadcast %355 : vector<1x32xf32> to vector<16x32xf32>
    %357 = arith.addf %354, %356 : vector<16x32xf32>
    %358 = arith.addf %271, %357 : vector<16x32xf32>
    %c23 = arith.constant 23 : index
    %c0_121 = arith.constant 0 : index
    %359 = vector.load %arg4[%c23, %c0_121] : memref<32x128xf32, #tpu.memory_space<vmem>>, vector<1x32xf32>
    %c24 = arith.constant 24 : index
    %c0_122 = arith.constant 0 : index
    %360 = vector.load %arg4[%c24, %c0_122] : memref<32x128xf32, #tpu.memory_space<vmem>>, vector<1x32xf32>
    %cst_123 = arith.constant dense<0.000000e+00> : vector<16xf32>
    %361 = vector.multi_reduction <add>, %358, %cst_123 [1] : vector<16x32xf32> to vector<16xf32>
    %362 = vector.shape_cast %361 : vector<16xf32> to vector<16x1xf32>
    %cst_124 = arith.constant 3.125000e-02 : f32
    %363 = vector.broadcast %cst_124 : f32 to vector<16x1xf32>
    %364 = arith.mulf %362, %363 : vector<16x1xf32>
    %365 = arith.mulf %358, %358 : vector<16x32xf32>
    %cst_125 = arith.constant dense<0.000000e+00> : vector<16xf32>
    %366 = vector.multi_reduction <add>, %365, %cst_125 [1] : vector<16x32xf32> to vector<16xf32>
    %367 = vector.shape_cast %366 : vector<16xf32> to vector<16x1xf32>
    %cst_126 = arith.constant 3.125000e-02 : f32
    %368 = vector.broadcast %cst_126 : f32 to vector<16x1xf32>
    %369 = arith.mulf %367, %368 : vector<16x1xf32>
    %370 = arith.mulf %364, %364 : vector<16x1xf32>
    %371 = arith.subf %369, %370 : vector<16x1xf32>
    %372 = vector.broadcast %364 : vector<16x1xf32> to vector<16x32xf32>
    %373 = arith.subf %358, %372 : vector<16x32xf32>
    %cst_127 = arith.constant 9.99999974E-6 : f32
    %374 = vector.broadcast %cst_127 : f32 to vector<16x1xf32>
    %375 = arith.addf %371, %374 : vector<16x1xf32>
    %376 = math.rsqrt %375 : vector<16x1xf32>
    %377 = vector.broadcast %376 : vector<16x1xf32> to vector<16x32xf32>
    %378 = arith.mulf %373, %377 : vector<16x32xf32>
    %379 = vector.broadcast %359 : vector<1x32xf32> to vector<16x32xf32>
    %380 = arith.mulf %378, %379 : vector<16x32xf32>
    %381 = vector.broadcast %360 : vector<1x32xf32> to vector<16x32xf32>
    %382 = arith.addf %380, %381 : vector<16x32xf32>
    %c32_128 = arith.constant 32 : index
    %c256_129 = arith.constant 256 : index
    %383 = vector.load %arg2[%c32_128, %c256_129] : memref<64x768xf32, #tpu.memory_space<vmem>>, vector<32x32xf32>
    %cst_130 = arith.constant dense<0.000000e+00> : vector<16x32xf32>
    %384 = tpu.matmul %382, %383, %cst_130 {dimension_numbers = #tpu.dot_dimension_numbers<[1], [0], [0], [1], [0, 0, 1, 1], [], []>} : vector<16x32xf32>, vector<32x32xf32>, vector<16x32xf32> -> vector<16x32xf32>
    %c18 = arith.constant 18 : index
    %c0_131 = arith.constant 0 : index
    %385 = vector.load %arg4[%c18, %c0_131] : memref<32x128xf32, #tpu.memory_space<vmem>>, vector<1x32xf32>
    %386 = vector.broadcast %385 : vector<1x32xf32> to vector<16x32xf32>
    %387 = arith.addf %384, %386 : vector<16x32xf32>
    %c32_132 = arith.constant 32 : index
    %c384_133 = arith.constant 384 : index
    %388 = vector.load %arg2[%c32_132, %c384_133] : memref<64x768xf32, #tpu.memory_space<vmem>>, vector<32x64xf32>
    %cst_134 = arith.constant dense<0.000000e+00> : vector<16x64xf32>
    %389 = tpu.matmul %1, %388, %cst_134 {dimension_numbers = #tpu.dot_dimension_numbers<[1], [0], [0], [1], [0, 0, 1, 1], [], []>} : vector<16x32xf32>, vector<32x64xf32>, vector<16x64xf32> -> vector<16x64xf32>
    %c19 = arith.constant 19 : index
    %c0_135 = arith.constant 0 : index
    %390 = vector.load %arg4[%c19, %c0_135] : memref<32x128xf32, #tpu.memory_space<vmem>>, vector<1x64xf32>
    %391 = vector.broadcast %390 : vector<1x64xf32> to vector<16x64xf32>
    %392 = arith.addf %389, %391 : vector<16x64xf32>
    %393 = vector.extract_strided_slice %392 {offsets = [0, 0], sizes = [16, 32], strides = [1, 1]} : vector<16x64xf32> to vector<16x32xf32>
    %394 = vector.extract_strided_slice %392 {offsets = [0, 32], sizes = [16, 32], strides = [1, 1]} : vector<16x64xf32> to vector<16x32xf32>
    %395 = vector.extract_strided_slice %387 {offsets = [0, 0], sizes = [16, 8], strides = [1, 1]} : vector<16x32xf32> to vector<16x8xf32>
    %396 = vector.extract_strided_slice %393 {offsets = [0, 0], sizes = [16, 8], strides = [1, 1]} : vector<16x32xf32> to vector<16x8xf32>
    %397 = vector.extract_strided_slice %394 {offsets = [0, 0], sizes = [16, 8], strides = [1, 1]} : vector<16x32xf32> to vector<16x8xf32>
    %cst_136 = arith.constant dense<0.000000e+00> : vector<16x16xf32>
    %398 = tpu.matmul %395, %396, %cst_136 {dimension_numbers = #tpu.dot_dimension_numbers<[1], [1], [0], [0], [0, 0, 1, 0], [], []>} : vector<16x8xf32>, vector<16x8xf32>, vector<16x16xf32> -> vector<16x16xf32>
    %cst_137 = arith.constant 0.353553385 : f32
    %399 = vector.broadcast %cst_137 : f32 to vector<16x16xf32>
    %400 = arith.mulf %398, %399 : vector<16x16xf32>
    %401 = arith.addf %400, %3 : vector<16x16xf32>
    %cst_138 = arith.constant dense<0xFF800000> : vector<16xf32>
    %402 = vector.multi_reduction <maximumf>, %401, %cst_138 [1] : vector<16x16xf32> to vector<16xf32>
    %403 = vector.shape_cast %402 : vector<16xf32> to vector<16x1xf32>
    %404 = vector.broadcast %403 : vector<16x1xf32> to vector<16x16xf32>
    %405 = arith.subf %401, %404 : vector<16x16xf32>
    %406 = math.exp %405 : vector<16x16xf32>
    %cst_139 = arith.constant dense<0.000000e+00> : vector<16x8xf32>
    %407 = tpu.matmul %406, %397, %cst_139 {dimension_numbers = #tpu.dot_dimension_numbers<[1], [0], [0], [1], [0, 0, 1, 1], [], []>} : vector<16x16xf32>, vector<16x8xf32>, vector<16x8xf32> -> vector<16x8xf32>
    %cst_140 = arith.constant dense<0.000000e+00> : vector<16xf32>
    %408 = vector.multi_reduction <add>, %406, %cst_140 [1] : vector<16x16xf32> to vector<16xf32>
    %409 = vector.shape_cast %408 : vector<16xf32> to vector<16x1xf32>
    %410 = tpu.reciprocal %409 {approx = true} : vector<16x1xf32> -> vector<16x1xf32>
    %411 = vector.broadcast %410 : vector<16x1xf32> to vector<16x8xf32>
    %412 = arith.mulf %407, %411 : vector<16x8xf32>
    %413 = vector.extract_strided_slice %387 {offsets = [0, 8], sizes = [16, 8], strides = [1, 1]} : vector<16x32xf32> to vector<16x8xf32>
    %414 = vector.extract_strided_slice %393 {offsets = [0, 8], sizes = [16, 8], strides = [1, 1]} : vector<16x32xf32> to vector<16x8xf32>
    %415 = vector.extract_strided_slice %394 {offsets = [0, 8], sizes = [16, 8], strides = [1, 1]} : vector<16x32xf32> to vector<16x8xf32>
    %cst_141 = arith.constant dense<0.000000e+00> : vector<16x16xf32>
    %416 = tpu.matmul %413, %414, %cst_141 {dimension_numbers = #tpu.dot_dimension_numbers<[1], [1], [0], [0], [0, 0, 1, 0], [], []>} : vector<16x8xf32>, vector<16x8xf32>, vector<16x16xf32> -> vector<16x16xf32>
    %cst_142 = arith.constant 0.353553385 : f32
    %417 = vector.broadcast %cst_142 : f32 to vector<16x16xf32>
    %418 = arith.mulf %416, %417 : vector<16x16xf32>
    %419 = arith.addf %418, %3 : vector<16x16xf32>
    %cst_143 = arith.constant dense<0xFF800000> : vector<16xf32>
    %420 = vector.multi_reduction <maximumf>, %419, %cst_143 [1] : vector<16x16xf32> to vector<16xf32>
    %421 = vector.shape_cast %420 : vector<16xf32> to vector<16x1xf32>
    %422 = vector.broadcast %421 : vector<16x1xf32> to vector<16x16xf32>
    %423 = arith.subf %419, %422 : vector<16x16xf32>
    %424 = math.exp %423 : vector<16x16xf32>
    %cst_144 = arith.constant dense<0.000000e+00> : vector<16x8xf32>
    %425 = tpu.matmul %424, %415, %cst_144 {dimension_numbers = #tpu.dot_dimension_numbers<[1], [0], [0], [1], [0, 0, 1, 1], [], []>} : vector<16x16xf32>, vector<16x8xf32>, vector<16x8xf32> -> vector<16x8xf32>
    %cst_145 = arith.constant dense<0.000000e+00> : vector<16xf32>
    %426 = vector.multi_reduction <add>, %424, %cst_145 [1] : vector<16x16xf32> to vector<16xf32>
    %427 = vector.shape_cast %426 : vector<16xf32> to vector<16x1xf32>
    %428 = tpu.reciprocal %427 {approx = true} : vector<16x1xf32> -> vector<16x1xf32>
    %429 = vector.broadcast %428 : vector<16x1xf32> to vector<16x8xf32>
    %430 = arith.mulf %425, %429 : vector<16x8xf32>
    %431 = vector.extract_strided_slice %387 {offsets = [0, 16], sizes = [16, 8], strides = [1, 1]} : vector<16x32xf32> to vector<16x8xf32>
    %432 = vector.extract_strided_slice %393 {offsets = [0, 16], sizes = [16, 8], strides = [1, 1]} : vector<16x32xf32> to vector<16x8xf32>
    %433 = vector.extract_strided_slice %394 {offsets = [0, 16], sizes = [16, 8], strides = [1, 1]} : vector<16x32xf32> to vector<16x8xf32>
    %cst_146 = arith.constant dense<0.000000e+00> : vector<16x16xf32>
    %434 = tpu.matmul %431, %432, %cst_146 {dimension_numbers = #tpu.dot_dimension_numbers<[1], [1], [0], [0], [0, 0, 1, 0], [], []>} : vector<16x8xf32>, vector<16x8xf32>, vector<16x16xf32> -> vector<16x16xf32>
    %cst_147 = arith.constant 0.353553385 : f32
    %435 = vector.broadcast %cst_147 : f32 to vector<16x16xf32>
    %436 = arith.mulf %434, %435 : vector<16x16xf32>
    %437 = arith.addf %436, %3 : vector<16x16xf32>
    %cst_148 = arith.constant dense<0xFF800000> : vector<16xf32>
    %438 = vector.multi_reduction <maximumf>, %437, %cst_148 [1] : vector<16x16xf32> to vector<16xf32>
    %439 = vector.shape_cast %438 : vector<16xf32> to vector<16x1xf32>
    %440 = vector.broadcast %439 : vector<16x1xf32> to vector<16x16xf32>
    %441 = arith.subf %437, %440 : vector<16x16xf32>
    %442 = math.exp %441 : vector<16x16xf32>
    %cst_149 = arith.constant dense<0.000000e+00> : vector<16x8xf32>
    %443 = tpu.matmul %442, %433, %cst_149 {dimension_numbers = #tpu.dot_dimension_numbers<[1], [0], [0], [1], [0, 0, 1, 1], [], []>} : vector<16x16xf32>, vector<16x8xf32>, vector<16x8xf32> -> vector<16x8xf32>
    %cst_150 = arith.constant dense<0.000000e+00> : vector<16xf32>
    %444 = vector.multi_reduction <add>, %442, %cst_150 [1] : vector<16x16xf32> to vector<16xf32>
    %445 = vector.shape_cast %444 : vector<16xf32> to vector<16x1xf32>
    %446 = tpu.reciprocal %445 {approx = true} : vector<16x1xf32> -> vector<16x1xf32>
    %447 = vector.broadcast %446 : vector<16x1xf32> to vector<16x8xf32>
    %448 = arith.mulf %443, %447 : vector<16x8xf32>
    %449 = vector.extract_strided_slice %387 {offsets = [0, 24], sizes = [16, 8], strides = [1, 1]} : vector<16x32xf32> to vector<16x8xf32>
    %450 = vector.extract_strided_slice %393 {offsets = [0, 24], sizes = [16, 8], strides = [1, 1]} : vector<16x32xf32> to vector<16x8xf32>
    %451 = vector.extract_strided_slice %394 {offsets = [0, 24], sizes = [16, 8], strides = [1, 1]} : vector<16x32xf32> to vector<16x8xf32>
    %cst_151 = arith.constant dense<0.000000e+00> : vector<16x16xf32>
    %452 = tpu.matmul %449, %450, %cst_151 {dimension_numbers = #tpu.dot_dimension_numbers<[1], [1], [0], [0], [0, 0, 1, 0], [], []>} : vector<16x8xf32>, vector<16x8xf32>, vector<16x16xf32> -> vector<16x16xf32>
    %cst_152 = arith.constant 0.353553385 : f32
    %453 = vector.broadcast %cst_152 : f32 to vector<16x16xf32>
    %454 = arith.mulf %452, %453 : vector<16x16xf32>
    %455 = arith.addf %454, %3 : vector<16x16xf32>
    %cst_153 = arith.constant dense<0xFF800000> : vector<16xf32>
    %456 = vector.multi_reduction <maximumf>, %455, %cst_153 [1] : vector<16x16xf32> to vector<16xf32>
    %457 = vector.shape_cast %456 : vector<16xf32> to vector<16x1xf32>
    %458 = vector.broadcast %457 : vector<16x1xf32> to vector<16x16xf32>
    %459 = arith.subf %455, %458 : vector<16x16xf32>
    %460 = math.exp %459 : vector<16x16xf32>
    %cst_154 = arith.constant dense<0.000000e+00> : vector<16x8xf32>
    %461 = tpu.matmul %460, %451, %cst_154 {dimension_numbers = #tpu.dot_dimension_numbers<[1], [0], [0], [1], [0, 0, 1, 1], [], []>} : vector<16x16xf32>, vector<16x8xf32>, vector<16x8xf32> -> vector<16x8xf32>
    %cst_155 = arith.constant dense<0.000000e+00> : vector<16xf32>
    %462 = vector.multi_reduction <add>, %460, %cst_155 [1] : vector<16x16xf32> to vector<16xf32>
    %463 = vector.shape_cast %462 : vector<16xf32> to vector<16x1xf32>
    %464 = tpu.reciprocal %463 {approx = true} : vector<16x1xf32> -> vector<16x1xf32>
    %465 = vector.broadcast %464 : vector<16x1xf32> to vector<16x8xf32>
    %466 = arith.mulf %461, %465 : vector<16x8xf32>
    %467 = tpu.concatenate %412, %430, %448, %466 in 1 : vector<16x8xf32>, vector<16x8xf32>, vector<16x8xf32>, vector<16x8xf32> -> vector<16x32xf32>
    %c32_156 = arith.constant 32 : index
    %c512_157 = arith.constant 512 : index
    %468 = vector.load %arg2[%c32_156, %c512_157] : memref<64x768xf32, #tpu.memory_space<vmem>>, vector<32x32xf32>
    %cst_158 = arith.constant dense<0.000000e+00> : vector<16x32xf32>
    %469 = tpu.matmul %467, %468, %cst_158 {dimension_numbers = #tpu.dot_dimension_numbers<[1], [0], [0], [1], [0, 0, 1, 1], [], []>} : vector<16x32xf32>, vector<32x32xf32>, vector<16x32xf32> -> vector<16x32xf32>
    %c20 = arith.constant 20 : index
    %c0_159 = arith.constant 0 : index
    %470 = vector.load %arg4[%c20, %c0_159] : memref<32x128xf32, #tpu.memory_space<vmem>>, vector<1x32xf32>
    %471 = vector.broadcast %470 : vector<1x32xf32> to vector<16x32xf32>
    %472 = arith.addf %469, %471 : vector<16x32xf32>
    %473 = arith.addf %382, %472 : vector<16x32xf32>
    %c25 = arith.constant 25 : index
    %c0_160 = arith.constant 0 : index
    %474 = vector.load %arg4[%c25, %c0_160] : memref<32x128xf32, #tpu.memory_space<vmem>>, vector<1x32xf32>
    %c26 = arith.constant 26 : index
    %c0_161 = arith.constant 0 : index
    %475 = vector.load %arg4[%c26, %c0_161] : memref<32x128xf32, #tpu.memory_space<vmem>>, vector<1x32xf32>
    %cst_162 = arith.constant dense<0.000000e+00> : vector<16xf32>
    %476 = vector.multi_reduction <add>, %473, %cst_162 [1] : vector<16x32xf32> to vector<16xf32>
    %477 = vector.shape_cast %476 : vector<16xf32> to vector<16x1xf32>
    %cst_163 = arith.constant 3.125000e-02 : f32
    %478 = vector.broadcast %cst_163 : f32 to vector<16x1xf32>
    %479 = arith.mulf %477, %478 : vector<16x1xf32>
    %480 = arith.mulf %473, %473 : vector<16x32xf32>
    %cst_164 = arith.constant dense<0.000000e+00> : vector<16xf32>
    %481 = vector.multi_reduction <add>, %480, %cst_164 [1] : vector<16x32xf32> to vector<16xf32>
    %482 = vector.shape_cast %481 : vector<16xf32> to vector<16x1xf32>
    %cst_165 = arith.constant 3.125000e-02 : f32
    %483 = vector.broadcast %cst_165 : f32 to vector<16x1xf32>
    %484 = arith.mulf %482, %483 : vector<16x1xf32>
    %485 = arith.mulf %479, %479 : vector<16x1xf32>
    %486 = arith.subf %484, %485 : vector<16x1xf32>
    %487 = vector.broadcast %479 : vector<16x1xf32> to vector<16x32xf32>
    %488 = arith.subf %473, %487 : vector<16x32xf32>
    %cst_166 = arith.constant 9.99999974E-6 : f32
    %489 = vector.broadcast %cst_166 : f32 to vector<16x1xf32>
    %490 = arith.addf %486, %489 : vector<16x1xf32>
    %491 = math.rsqrt %490 : vector<16x1xf32>
    %492 = vector.broadcast %491 : vector<16x1xf32> to vector<16x32xf32>
    %493 = arith.mulf %488, %492 : vector<16x32xf32>
    %494 = vector.broadcast %474 : vector<1x32xf32> to vector<16x32xf32>
    %495 = arith.mulf %493, %494 : vector<16x32xf32>
    %496 = vector.broadcast %475 : vector<1x32xf32> to vector<16x32xf32>
    %497 = arith.addf %495, %496 : vector<16x32xf32>
    %c32_167 = arith.constant 32 : index
    %c640_168 = arith.constant 640 : index
    %498 = vector.load %arg2[%c32_167, %c640_168] : memref<64x768xf32, #tpu.memory_space<vmem>>, vector<32x128xf32>
    %cst_169 = arith.constant dense<0.000000e+00> : vector<16x128xf32>
    %499 = tpu.matmul %497, %498, %cst_169 {dimension_numbers = #tpu.dot_dimension_numbers<[1], [0], [0], [1], [0, 0, 1, 1], [], []>} : vector<16x32xf32>, vector<32x128xf32>, vector<16x128xf32> -> vector<16x128xf32>
    %c21 = arith.constant 21 : index
    %c0_170 = arith.constant 0 : index
    %500 = vector.load %arg4[%c21, %c0_170] : memref<32x128xf32, #tpu.memory_space<vmem>>, vector<1x128xf32>
    %501 = vector.broadcast %500 : vector<1x128xf32> to vector<16x128xf32>
    %502 = arith.addf %499, %501 : vector<16x128xf32>
    %cst_171 = arith.constant 0.000000e+00 : f32
    %503 = vector.broadcast %cst_171 : f32 to vector<16x128xf32>
    %504 = arith.maximumf %502, %503 : vector<16x128xf32>
    %c128_172 = arith.constant 128 : index
    %c0_173 = arith.constant 0 : index
    %505 = vector.load %arg3[%c128_172, %c0_173] : memref<256x32xf32, #tpu.memory_space<vmem>>, vector<128x32xf32>
    %cst_174 = arith.constant dense<0.000000e+00> : vector<16x32xf32>
    %506 = tpu.matmul %504, %505, %cst_174 {dimension_numbers = #tpu.dot_dimension_numbers<[1], [0], [0], [1], [0, 0, 1, 1], [], []>} : vector<16x128xf32>, vector<128x32xf32>, vector<16x32xf32> -> vector<16x32xf32>
    %c22 = arith.constant 22 : index
    %c0_175 = arith.constant 0 : index
    %507 = vector.load %arg4[%c22, %c0_175] : memref<32x128xf32, #tpu.memory_space<vmem>>, vector<1x32xf32>
    %508 = vector.broadcast %507 : vector<1x32xf32> to vector<16x32xf32>
    %509 = arith.addf %506, %508 : vector<16x32xf32>
    %510 = arith.addf %497, %509 : vector<16x32xf32>
    %c27 = arith.constant 27 : index
    %c0_176 = arith.constant 0 : index
    %511 = vector.load %arg4[%c27, %c0_176] : memref<32x128xf32, #tpu.memory_space<vmem>>, vector<1x32xf32>
    %c28 = arith.constant 28 : index
    %c0_177 = arith.constant 0 : index
    %512 = vector.load %arg4[%c28, %c0_177] : memref<32x128xf32, #tpu.memory_space<vmem>>, vector<1x32xf32>
    %cst_178 = arith.constant dense<0.000000e+00> : vector<16xf32>
    %513 = vector.multi_reduction <add>, %510, %cst_178 [1] : vector<16x32xf32> to vector<16xf32>
    %514 = vector.shape_cast %513 : vector<16xf32> to vector<16x1xf32>
    %cst_179 = arith.constant 3.125000e-02 : f32
    %515 = vector.broadcast %cst_179 : f32 to vector<16x1xf32>
    %516 = arith.mulf %514, %515 : vector<16x1xf32>
    %517 = arith.mulf %510, %510 : vector<16x32xf32>
    %cst_180 = arith.constant dense<0.000000e+00> : vector<16xf32>
    %518 = vector.multi_reduction <add>, %517, %cst_180 [1] : vector<16x32xf32> to vector<16xf32>
    %519 = vector.shape_cast %518 : vector<16xf32> to vector<16x1xf32>
    %cst_181 = arith.constant 3.125000e-02 : f32
    %520 = vector.broadcast %cst_181 : f32 to vector<16x1xf32>
    %521 = arith.mulf %519, %520 : vector<16x1xf32>
    %522 = arith.mulf %516, %516 : vector<16x1xf32>
    %523 = arith.subf %521, %522 : vector<16x1xf32>
    %524 = vector.broadcast %516 : vector<16x1xf32> to vector<16x32xf32>
    %525 = arith.subf %510, %524 : vector<16x32xf32>
    %cst_182 = arith.constant 9.99999974E-6 : f32
    %526 = vector.broadcast %cst_182 : f32 to vector<16x1xf32>
    %527 = arith.addf %523, %526 : vector<16x1xf32>
    %528 = math.rsqrt %527 : vector<16x1xf32>
    %529 = vector.broadcast %528 : vector<16x1xf32> to vector<16x32xf32>
    %530 = arith.mulf %525, %529 : vector<16x32xf32>
    %531 = vector.broadcast %511 : vector<1x32xf32> to vector<16x32xf32>
    %532 = arith.mulf %530, %531 : vector<16x32xf32>
    %533 = vector.broadcast %512 : vector<1x32xf32> to vector<16x32xf32>
    %534 = arith.addf %532, %533 : vector<16x32xf32>
    %c0_183 = arith.constant 0 : index
    %c0_184 = arith.constant 0 : index
    %535 = vector.load %arg5[%c0_183, %c0_184] : memref<16x32xf32, #tpu.memory_space<vmem>>, vector<16x32xf32>
    tpu.vector_store %arg5[%c0_183, %c0_184], %534 {strides = array<i32>} : memref<16x32xf32, #tpu.memory_space<vmem>>, vector<16x32xf32>,
    return
  }
  func.func @transform_0(%arg0: i32) -> (i32, i32) {
    %c0_i32 = arith.constant 0 : i32
    %c0_i32_0 = arith.constant 0 : i32
    %c0_i32_1 = arith.constant 0 : i32
    return %c0_i32, %c0_i32_0 : i32, i32
  }
  func.func @transform_1(%arg0: i32) -> (i32, i32) {
    %c0_i32 = arith.constant 0 : i32
    %c0_i32_0 = arith.constant 0 : i32
    %c0_i32_1 = arith.constant 0 : i32
    return %c0_i32, %c0_i32_0 : i32, i32
  }
  func.func @transform_2(%arg0: i32) -> (i32, i32) {
    %c0_i32 = arith.constant 0 : i32
    %c0_i32_0 = arith.constant 0 : i32
    %c0_i32_1 = arith.constant 0 : i32
    return %c0_i32, %c0_i32_0 : i32, i32
  }
  func.func @transform_3(%arg0: i32) -> (i32, i32) {
    %c0_i32 = arith.constant 0 : i32
    %c0_i32_0 = arith.constant 0 : i32
    %c0_i32_1 = arith.constant 0 : i32
    return %c0_i32, %c0_i32_0 : i32, i32
  }
  func.func @transform_4(%arg0: i32) -> (i32, i32) {
    %c0_i32 = arith.constant 0 : i32
    %c0_i32_0 = arith.constant 0 : i32
    %c0_i32_1 = arith.constant 0 : i32
    return %c0_i32, %c0_i32_0 : i32, i32
  }
}

</mosaic_0001>

<bundles_post_ra>
// kernel: tpu_custom_call.1
= control target key start
LH: loop header
LB: loop body
LE: loop exit
PB: predicated region body
PF: predicated region fallthrough
CT: control target
= control target key end

     0   :  { %9 = vsyncpa [#allocation3], 0  ;;  %s3886_s0 = inlined_call_operand.vmem [shape: f32[88,128], index: 0, kind: input, shape index: {}]   ;;  %s3887_s1 = inlined_call_operand.hbm [shape: f32[64,768], index: 1, kind: input, shape index: {}]   ;;  %s3888_s2 = inlined_call_operand.vmem [shape: f32[256,32], index: 2, kind: input, shape index: {}]   ;;  %s3889_s3 = inlined_call_operand.vmem [shape: f32[32,128], index: 3, kind: input, shape index: {}]   ;;  %s3890_s4 = inlined_call_operand.hbm [shape: f32[16,32], index: 4, kind: output, shape index: {}]  }
   0x1   :  { %10 = vsyncpa [#allocation4], 0  ;;  %s17_s17 = sshll.u32 %s3887_s1, 4  ;;  %s3117_s18 = smov [#allocation2]   ;;  %s18_s17 = int_to_ptr.hbm [resolvable:$true] %s17_s17 }
   0x2   :  { %s19_s19 = sshll.u32 %s3117_s18, 4  ;;  %s3118_s20 = smov 768   ;;  %s20_s19 = int_to_ptr.vmem [resolvable:$true] %s19_s19 }
   0x3   :  { %s3119_s21 = smov 48  }
   0x4   :  { %25 = dma.hbm_to_vmem [thread:$0]  %s18_s17, 6144, %s20_s19, [#allocation3], %s3118_s20, %s3118_s20, %s3119_s21  }
   0x5   :  { %3113 = dma.done.wait [#allocation3], 6144  }
   0x6   :  { %3114 = vsyncadd [#allocation3], 4294961152  ;;  %v43_v0 = vld [vmem:[%s3886_s0 + $0x48] sm:$0xff]  ;;  %v42_v1 = vld [vmem:[%s3886_s0 + $0x40] sm:$0xff]  ;;  %vm46_vm0 = vcmask 130048   ;;  %vm82_vm1 = vcmask 261120  }
   0x7   :  { %67 = vmatpush.msra.mxu0 %v43_v0  ;;  %v34_v2 = vld [vmem:[%s3886_s0] sm:$0xff]  ;;  %v79_v3 = vld [vmem:[#allocation2 + $0x90] sm:$0xff]  ;;  %v35_v5 = vld [vmem:[%s3886_s0 + $0x8] sm:$0xff]  ;;  %s3120_s7 = smov 120   ;;  %s3121_s8 = smov 88   ;;  %vm118_vm2 = vcmask 64512  }
   0x8   :  { %v78_v4 = vld [vmem:[#allocation2 + $0x60] sm:$0xff]  ;;  %101 = vmatpush.msra.mxu1 %v79_v3  ;;  %v77_v6 = vld [vmem:[#allocation2 + $0x30] sm:$0xff]  ;;  %s3122_s9 = smov 96   ;;  %s3123_s10 = smov 80   ;;  %v39_v42 = vld [vmem:[%s3886_s0 + $0x28] sm:$0xff]  ;;  %vm539_vm3 = vcmask 195584  }
   0x9   :  { %68 = vmatpush.msra.mxu0 %v42_v1  ;;  %v76_v7 = vld [vmem:[#allocation2] sm:$0xff]  ;;  %v2880_v8 = vld [vmem:[%s3886_s0 + $0x50] ss:$0 sm:$0xff]  ;;  %s3124_s11 = smov 112   ;;  %s3125_s12 = smov 72  }
   0xa   :  { %2656 = vmatmul.msk.f32.vlgmr.msra.gmra.mxu0 %vm46_vm0, %v34_v2  ;;  %102 = vmatpush.msra.mxu1 %v78_v4  ;;  %v2881_v13 = vld [vmem:[%s3889_s3] ss:$0 sm:$0xff]  ;;  %s3126_s13 = smov 104   ;;  %s3127_s14 = smov 64  }
   0xb   :  { %v38_v37 = vld [vmem:[%s3886_s0 + $0x20] sm:$0xff]  ;;  %s3128_s19 = smov 56   ;;  %s3129_s20 = smov 40  }
   0xc   :  { %103 = vmatpush.msra.mxu1 %v77_v6  ;;  %s3130_s22 = smov 8   ;;  %s3131_s23 = smov 16  }
   0xd   :  { %s3132_s24 = smov 24   ;;  %s2643_s18 = sshll.u32 %s3890_s4, 4  ;;  %s2644_s18 = int_to_ptr.hbm [resolvable:$true] %s2643_s18 }
   0xe   :  { %104 = vmatpush.msra.mxu1 %v76_v7  ;;  %s3133_s25 = smov [#allocation5]  }
  0x12   :  { %2657 = vmatmul.msk.f32.gmra.mxu0 %vm46_vm0, %v35_v5 }
  0x87   :  { %v70_v9 = vpop.f32.mrf.mxu0 }
  0x88   :  { %v3181_v10 = vadd.f32 %v2880_v8, %v70_v9 }
  0x8a   :  { %2658 = vmatmul.msk.f32.vlgmr.msra.gmra.mxu1 %vm82_vm1, %v3181_v10 }
  0x8f   :  { %v73_v11 = vpop.f32.mrf.mxu0 }
  0x90   :  { %v3185_v12 = vadd.f32 %v2880_v8, %v73_v11 }
  0x92   :  { %2659 = vmatmul.msk.f32.gmra.mxu1 %vm82_vm1, %v3185_v12 }
 0x107   :  { %v106_v14 = vpop.f32.mrf.mxu1 }
 0x108   :  { %v107_v15 = vadd.f32 %v2881_v13, %v106_v14 }
 0x10a   :  { %211 = vrot.lane.b32.xlu2 %v107_v15, %s3120_s7 }
 0x10f   :  { %v109_v16 = vpop.f32.mrf.mxu1 }
 0x110   :  { %v110_v17 = vadd.f32 %v2881_v13, %v109_v16 }
 0x112   :  { %217 = vrot.lane.b32.xlu1 %v110_v17, %s3121_s8  ;;  %116 = vrot.lane.b32.xlu0 %v110_v17, %s3122_s9  ;;  %v3206_v18 = vpack.i.bf16 %v107_v15, %v110_v17 }
 0x113   :  { %317 = vrot.lane.b32.xlu2 %v110_v17, %s3123_s10 }
 0x11a   :  { %215 = vrot.lane.b32.xlu1 %v107_v15, %s3121_s8  ;;  %114 = vrot.lane.b32.xlu0 %v107_v15, %s3122_s9 }
 0x11b   :  { %311 = vrot.lane.b32.xlu2 %v107_v15, %s3124_s11 }
 0x122   :  { %213 = vrot.lane.b32.xlu1 %v110_v17, %s3120_s7  ;;  %315 = vrot.lane.b32.xlu0 %v107_v15, %s3123_s10 }
 0x123   :  { %415 = vrot.lane.b32.xlu2 %v107_v15, %s3125_s12 }
 0x12a   :  { %417 = vrot.lane.b32.xlu1 %v110_v17, %s3125_s12  ;;  %313 = vrot.lane.b32.xlu0 %v110_v17, %s3124_s11 }
 0x132   :  { %413 = vrot.lane.b32.xlu1 %v110_v17, %s3126_s13  ;;  %411 = vrot.lane.b32.xlu0 %v107_v15, %s3126_s13 }
 0x13a   :  { %2801 = vrot.lane.b32.xlu1 %v3206_v18, %s3127_s14 }
 0x164   :  { %v212_v19 = vpop.permute.xlu2 %211 }
 0x16d   :  { %v318_v20 = vpop.permute.xlu2 %317 }
 0x16e   :  { %2672 = vmatpush.xpose.msk.msrb.mxu1 %vm118_vm2, %v318_v20 }
 0x175   :  { %v312_v27 = vpop.permute.xlu2 %311 }
 0x17d   :  { %v416_v30 = vpop.permute.xlu2 %415 }
 0x184   :  { %v218_v21 = vpop.permute.xlu1 %217  ;;  %v117_v22 = vpop.permute.xlu0 %116 }
 0x185   :  { %2660 = vmatpush.xpose.msk.msrb.mxu0 %vm118_vm2, %v117_v22  ;;  %2778 = vmatpush.xpose.msk.msra.mxu2 %vm118_vm2, %v117_v22 }
 0x18c   :  { %v216_v23 = vpop.permute.xlu1 %215  ;;  %v115_v24 = vpop.permute.xlu0 %114 }
 0x18d   :  { %2661 = vmatpush.xpose.msk.msrb.mxu0 %vm118_vm2, %v115_v24  ;;  %2779 = vmatpush.xpose.msk.msra.mxu2 %vm118_vm2, %v115_v24 }
 0x190   :  { %2662 = vmatmul.msk.f32.vlgmr.msrb.gmra.mxu0 %vm118_vm2, %v107_v15  ;;  %2663 = vmatmul.msk.f32.vlgmr.msra.gmra.mxu2 %vm118_vm2, %v110_v17 }
 0x191   :  { %2666 = vmatpush.xpose.msk.msra.mxu0 %vm118_vm2, %v218_v21 }
 0x194   :  { %v214_v25 = vpop.permute.xlu1 %213  ;;  %v316_v26 = vpop.permute.xlu0 %315 }
 0x195   :  { %2667 = vmatpush.xpose.msk.msra.mxu0 %vm118_vm2, %v216_v23  ;;  %2673 = vmatpush.xpose.msk.msrb.mxu1 %vm118_vm2, %v316_v26 }
 0x198   :  { %2668 = vmatmul.msk.f32.vlgmr.msra.gmra.mxu0 %vm118_vm2, %v212_v19  ;;  %2674 = vmatmul.msk.f32.vlgmr.msrb.gmra.mxu1 %vm118_vm2, %v312_v27 }
 0x19c   :  { %v418_v28 = vpop.permute.xlu1 %417  ;;  %v314_v29 = vpop.permute.xlu0 %313 }
 0x19d   :  { %2678 = vmatpush.xpose.msk.msrb.mxu0 %vm118_vm2, %v418_v28 }
 0x1a0   :  { %2669 = vmatmul.msk.f32.gmra.mxu0 %vm118_vm2, %v214_v25  ;;  %2675 = vmatmul.msk.f32.gmra.mxu1 %vm118_vm2, %v314_v29 }
 0x1a1   :  { %2679 = vmatpush.xpose.msk.msrb.mxu0 %vm118_vm2, %v416_v30 }
 0x1a4   :  { %v414_v31 = vpop.permute.xlu1 %413  ;;  %v412_v32 = vpop.permute.xlu0 %411 }
 0x1a8   :  { %2680 = vmatmul.msk.f32.vlgmr.msrb.gmra.mxu0 %vm118_vm2, %v412_v32 }
 0x1ac   :  { %v2802_v33 = vpop.permute.xlu1 %2801 }
 0x1ad   :  { %v2803_v34 = vunpack.i.l.bf16 %v2802_v33  ;;  %v2804_v35 = vunpack.i.h.bf16 %v2802_v33 }
 0x1af   :  { %192 = vmatpush.msra.mxu3 %v2803_v34 }
 0x1b0   :  { %2681 = vmatmul.msk.f32.gmra.mxu0 %vm118_vm2, %v414_v31 }
 0x1b1   :  { %193 = vmatpush.msra.mxu3 %v2804_v35 }
 0x20d   :  { %v144_v36 = vpop.f32.mrf.mxu0 }
 0x20e   :  { %v150_v38 = vmul.f32 0.35355338, %v144_v36 }
 0x210   :  { %v152_v39 = vadd.f32 %v150_v38, %v38_v37 }
 0x212   :  { %v154_v40 = vsel %vm46_vm0, %v152_v39, -inf }
 0x213   :  { %v147_v41 = vpop.f32.mrf.mxu2  ;;  %155 = vmax.xlane.f32.xlu2 %v154_v40 }
 0x214   :  { %v151_v43 = vmul.f32 0.35355338, %v147_v41 }
 0x215   :  { %v244_v44 = vpop.f32.mrf.mxu0  ;;  %v344_v45 = vpop.f32.mrf.mxu1 }
 0x216   :  { %v250_v46 = vmul.f32 0.35355338, %v244_v44  ;;  %v153_v47 = vadd.f32 %v151_v43, %v39_v42  ;;  %v350_v48 = vmul.f32 0.35355338, %v344_v45 }
 0x218   :  { %v157_v49 = vsel %vm46_vm0, %v153_v47, -inf  ;;  %v252_v50 = vadd.f32 %v250_v46, %v38_v37  ;;  %v352_v52 = vadd.f32 %v350_v48, %v38_v37 }
 0x219   :  { %158 = vmax.xlane.f32.xlu0 %v157_v49 }
 0x21a   :  { %v254_v51 = vsel %vm46_vm0, %v252_v50, -inf  ;;  %v354_v56 = vsel %vm46_vm0, %v352_v52, -inf }
 0x21b   :  { %255 = vmax.xlane.f32.xlu1 %v254_v51 }
 0x21d   :  { %v247_v53 = vpop.f32.mrf.mxu0  ;;  %v347_v54 = vpop.f32.mrf.mxu1 }
 0x21e   :  { %v351_v55 = vmul.f32 0.35355338, %v347_v54  ;;  %v251_v3 = vmul.f32 0.35355338, %v247_v53 }
 0x220   :  { %v353_v57 = vadd.f32 %v351_v55, %v39_v42  ;;  %v3251_v4 = vadd.f32 %v251_v3, %v39_v42 }
 0x221   :  { %355 = vmax.xlane.f32.xlu0 %v354_v56 }
 0x222   :  { %v357_v60 = vsel %vm46_vm0, %v353_v57, -inf  ;;  %v257_v5 = vsel %vm46_vm0, %v3251_v4, -inf }
 0x225   :  { %v444_v58 = vpop.f32.mrf.mxu0 }
 0x226   :  { %v450_v59 = vmul.f32 0.35355338, %v444_v58 }
 0x228   :  { %v3239_v61 = vadd.f32 %v450_v59, %v38_v37 }
 0x229   :  { %358 = vmax.xlane.f32.xlu0 %v357_v60 }
 0x22a   :  { %v454_v62 = vsel %vm46_vm0, %v3239_v61, -inf }
 0x22b   :  { %2806 = vrot.lane.b32.xlu2 %v3206_v18, %s3128_s19  ;;  %455 = vmax.xlane.f32.xlu1 %v454_v62 }
 0x22d   :  { %v447_v63 = vpop.f32.mrf.mxu0 }
 0x22e   :  { %v451_v0 = vmul.f32 0.35355338, %v447_v63 }
 0x230   :  { %v3245_v1 = vadd.f32 %v451_v0, %v39_v42 }
 0x232   :  { %v457_v2 = vsel %vm46_vm0, %v3245_v1, -inf }
 0x233   :  { %458 = vmax.xlane.f32.xlu1 %v457_v2 }
 0x23d   :  { %2811 = vrot.lane.b32.xlu0 %v3206_v18, %s3119_s21 }
 0x254   :  { %258 = vmax.xlane.f32.xlu2 %v257_v5 }
 0x26c   :  { %2816 = vrot.lane.b32.xlu2 %v3206_v18, %s3129_s20 }
 0x286   :  { %v156_v6 = vpop.xlane.xlu2 %155 }
 0x287   :  { %v160_v7 = vsub.f32 %v152_v39, %v156_v6 }
 0x289   :  { %v162_v8 = vmul.f32 1.442695, %v160_v7 }
 0x28b   :  { %2907 = vpow2.f32 %v162_v8 }
 0x28c   :  { %v159_v9 = vpop.xlane.xlu0 %158 }
 0x28d   :  { %v161_v11 = vsub.f32 %v153_v47, %v159_v9 }
 0x28e   :  { %v256_v13 = vpop.xlane.xlu1 %255  ;;  %v2807_v14 = vpop.permute.xlu2 %2806 }
 0x28f   :  { %v164_v15 = vmul.f32 1.442695, %v161_v11  ;;  %v260_v16 = vsub.f32 %v252_v50, %v256_v13  ;;  %v2808_v17 = vunpack.i.l.bf16 %v2807_v14  ;;  %v2809_v21 = vunpack.i.h.bf16 %v2807_v14 }
 0x291   :  { %v2908_v19 = vpop.eup %2907  ;;  %v262_v20 = vmul.f32 1.442695, %v260_v16  ;;  %292 = vmatpush.msrb.mxu3 %v2808_v17  ;;  %2909 = vpow2.f32 %v164_v15 }
 0x292   :  { %2664 = vmatmul.msk.f32.vlgmr.msra.gmra.mxu3 %vm46_vm0, %v2908_v19  ;;  %v201_v37 = vsel %vm46_vm0, %v2908_v19, 0.0 }
 0x293   :  { %2911 = vpow2.f32 %v262_v20  ;;  %293 = vmatpush.msrb.mxu3 %v2809_v21 }
 0x294   :  { %v356_v18 = vpop.xlane.xlu0 %355 }
 0x295   :  { %v360_v22 = vsub.f32 %v352_v52, %v356_v18 }
 0x297   :  { %v362_v23 = vmul.f32 1.442695, %v360_v22  ;;  %v2910_v24 = vpop.eup %2909 }
 0x298   :  { %v204_v43 = vsel %vm46_vm0, %v2910_v24, 0.0 }
 0x299   :  { %v2912_v25 = vpop.eup %2911  ;;  %2913 = vpow2.f32 %v362_v23  ;;  %v545_v23 = vld [vmem:[#allocation2 + $0x98] sm:$0xff] }
 0x29a   :  { %2665 = vmatmul.msk.f32.gmra.mxu3 %vm46_vm0, %v2910_v24  ;;  %v301_v26 = vsel %vm46_vm0, %v2912_v25, 0.0  ;;  %v544_v24 = vld [vmem:[#allocation2 + $0x68] sm:$0xff]  ;;  %566 = vmatpush.msra.mxu1 %v545_v23 }
 0x29b   :  { %302 = vadd.xlane.f32.xlu1 %v301_v26  ;;  %v542_v26 = vld [vmem:[#allocation2 + $0x8] sm:$0xff] }
 0x29c   :  { %v359_v27 = vpop.xlane.xlu0 %358  ;;  %567 = vmatpush.msra.mxu1 %v544_v24 }
 0x29d   :  { %v361_v28 = vsub.f32 %v353_v57, %v359_v27 }
 0x29e   :  { %v456_v34 = vpop.xlane.xlu1 %455 }
 0x29f   :  { %v2914_v29 = vpop.eup %2913  ;;  %v364_v30 = vmul.f32 1.442695, %v361_v28  ;;  %v460_v35 = vsub.f32 %v3239_v61, %v456_v34 }
 0x2a0   :  { %v401_v31 = vsel %vm46_vm0, %v2914_v29, 0.0 }
 0x2a1   :  { %2915 = vpow2.f32 %v364_v30  ;;  %402 = vadd.xlane.f32.xlu2 %v401_v31  ;;  %v462_v40 = vmul.f32 1.442695, %v460_v35 }
 0x2a2   :  { %2670 = vmatmul.msk.f32.vlgmr.msrb.gmra.mxu3 %vm46_vm0, %v2912_v25  ;;  %v543_v25 = vld [vmem:[#allocation2 + $0x38] sm:$0xff] }
 0x2a3   :  { %2917 = vpow2.f32 %v462_v40  ;;  %568 = vmatpush.msra.mxu1 %v543_v25 }
 0x2a5   :  { %569 = vmatpush.msra.mxu1 %v542_v26 }
 0x2a6   :  { %v459_v41 = vpop.xlane.xlu1 %458 }
 0x2a7   :  { %v2916_v32 = vpop.eup %2915  ;;  %v461_v42 = vsub.f32 %v3245_v1, %v459_v41 }
 0x2a8   :  { %v404_v33 = vsel %vm46_vm0, %v2916_v32, 0.0 }
 0x2a9   :  { %405 = vadd.xlane.f32.xlu1 %v404_v33  ;;  %v464_v44 = vmul.f32 1.442695, %v461_v42  ;;  %v2918_v45 = vpop.eup %2917 }
 0x2aa   :  { %v501_v46 = vsel %vm46_vm0, %v2918_v45, 0.0 }
 0x2ab   :  { %2919 = vpow2.f32 %v464_v44  ;;  %v672_v44 = vld [vmem:[#allocation2 + $0x78] sm:$0xff] }
 0x2af   :  { %v2812_v36 = vpop.permute.xlu0 %2811 }
 0x2b0   :  { %v2813_v38 = vunpack.i.l.bf16 %v2812_v36  ;;  %v2814_v39 = vunpack.i.h.bf16 %v2812_v36 }
 0x2b1   :  { %202 = vadd.xlane.f32.xlu1 %v201_v37  ;;  %v2920_v47 = vpop.eup %2919 }
 0x2b2   :  { %392 = vmatpush.msrb.mxu2 %v2813_v38  ;;  %2780 = vmatpush.msra.mxu3 %v2813_v38  ;;  %v504_v50 = vsel %vm46_vm0, %v2920_v47, 0.0 }
 0x2b4   :  { %393 = vmatpush.msrb.mxu2 %v2814_v39  ;;  %2781 = vmatpush.msra.mxu3 %v2814_v39 }
 0x2b5   :  { %2676 = vmatmul.msk.f32.vlgmr.msrb.gmra.mxu2 %vm46_vm0, %v2914_v29 }
 0x2b9   :  { %205 = vadd.xlane.f32.xlu1 %v204_v43  ;;  %v673_v43 = vld [vmem:[#allocation2 + $0xa8] sm:$0xff] }
 0x2ba   :  { %694 = vmatpush.msra.mxu0 %v673_v43 }
 0x2bc   :  { %695 = vmatpush.msra.mxu0 %v672_v44 }
 0x2c1   :  { %502 = vadd.xlane.f32.xlu1 %v501_v46  ;;  %v670_v46 = vld [vmem:[#allocation2 + $0x18] sm:$0xff] }
 0x2c7   :  { %v259_v48 = vpop.xlane.xlu2 %258 }
 0x2c8   :  { %v261_v49 = vsub.f32 %v3251_v4, %v259_v48  ;;  %v2882_v48 = vld [vmem:[%s3889_s3 + $0x1] ss:$0 sm:$0xff] }
 0x2c9   :  { %505 = vadd.xlane.f32.xlu1 %v504_v50 }
 0x2ca   :  { %v264_v51 = vmul.f32 1.442695, %v261_v49 }
 0x2cc   :  { %2921 = vpow2.f32 %v264_v51 }
 0x2cf   :  { %v2817_v52 = vpop.permute.xlu2 %2816 }
 0x2d0   :  { %v2818_v53 = vunpack.i.l.bf16 %v2817_v52  ;;  %v2819_v55 = vunpack.i.h.bf16 %v2817_v52 }
 0x2d2   :  { %v2922_v54 = vpop.eup %2921  ;;  %492 = vmatpush.msrb.mxu3 %v2818_v53 }
 0x2d3   :  { %2671 = vmatmul.msk.f32.gmra.mxu3 %vm46_vm0, %v2922_v54  ;;  %v304_v56 = vsel %vm46_vm0, %v2922_v54, 0.0 }
 0x2d4   :  { %305 = vadd.xlane.f32.xlu0 %v304_v56  ;;  %493 = vmatpush.msrb.mxu3 %v2819_v55 }
 0x2db   :  { %2677 = vmatmul.msk.f32.vlgmr.msra.gmra.mxu3 %vm46_vm0, %v2916_v32 }
 0x2e3   :  { %2682 = vmatmul.msk.f32.vlgmr.msrb.gmra.mxu3 %vm46_vm0, %v2918_v45  ;;  %v671_v45 = vld [vmem:[#allocation2 + $0x48] sm:$0xff] }
 0x2e4   :  { %696 = vmatpush.msra.mxu0 %v671_v45  ;;  %v2886_v45 = vld [vmem:[%s3889_s3 + $0x2] ss:$0 sm:$0xff] }
 0x2e6   :  { %697 = vmatpush.msra.mxu0 %v670_v46 }
 0x2eb   :  { %2683 = vmatmul.msk.f32.gmra.mxu3 %vm46_vm0, %v2920_v47  ;;  %v36_v47 = vld [vmem:[%s3886_s0 + $0x10] sm:$0xff] }
 0x2ec   :  { %2688 = vmatmul.msk.f32.vlgmr.msra.gmra.mxu0 %vm82_vm1, %v36_v47 }
 0x30e   :  { %v303_v58 = vpop.xlane.xlu1 %302 }
 0x30f   :  { %2923 = vrcp.f32 %v303_v58 }
 0x314   :  { %v403_v63 = vpop.xlane.xlu2 %402 }
 0x315   :  { %v195_v57 = vpop.f32.mrf.mxu3  ;;  %v2924_v60 = vpop.eup %2923  ;;  %2925 = vrcp.f32 %v403_v63 }
 0x31b   :  { %v2926_v0 = vpop.eup %2925 }
 0x31c   :  { %v406_v3 = vpop.xlane.xlu1 %405 }
 0x31d   :  { %v3276_v59 = vpop.f32.mrf.mxu3 }
 0x324   :  { %v203_v4 = vpop.xlane.xlu1 %202 }
 0x325   :  { %v295_v61 = vpop.f32.mrf.mxu3 }
 0x326   :  { %v309_v62 = vmul.f32 %v2924_v60, %v295_v61  ;;  %v37_v60 = vld [vmem:[%s3886_s0 + $0x18] sm:$0xff]  ;;  %v638_v61 = vld [vmem:[#allocation2 + $0xa0] sm:$0xff] }
 0x327   :  { %2689 = vmatmul.msk.f32.gmra.mxu0 %vm82_vm1, %v37_v60  ;;  %659 = vmatpush.msra.mxu2 %v638_v61  ;;  %v3364_v61 = vld [vmem:[%s3886_s0 + $0x30] sm:$0xff] }
 0x328   :  { %513 = vrot.lane.b32.xlu1 %v309_v62, %s3130_s22  ;;  %v636_v62 = vld [vmem:[#allocation2 + $0x40] sm:$0xff] }
 0x32c   :  { %v206_v6 = vpop.xlane.xlu1 %205 }
 0x334   :  { %v503_v11 = vpop.xlane.xlu1 %502 }
 0x338   :  { %v395_v1 = vpop.f32.mrf.mxu2 }
 0x339   :  { %v409_v2 = vmul.f32 %v2926_v0, %v395_v1  ;;  %v635_v0 = vld [vmem:[#allocation2 + $0x10] sm:$0xff] }
 0x33b   :  { %521 = vrot.lane.b32.xlu2 %v409_v2, %s3131_s23 }
 0x33c   :  { %v506_v16 = vpop.xlane.xlu1 %505 }
 0x347   :  { %v306_v5 = vpop.xlane.xlu0 %305 }
 0x348   :  { %2927 = vrcp.f32 %v306_v5 }
 0x349   :  { %2929 = vrcp.f32 %v406_v3 }
 0x34a   :  { %2931 = vrcp.f32 %v503_v11 }
 0x34b   :  { %2933 = vrcp.f32 %v506_v16 }
 0x34c   :  { %2935 = vrcp.f32 %v203_v4 }
 0x34d   :  { %2937 = vrcp.f32 %v206_v6 }
 0x34e   :  { %v2928_v7 = vpop.eup %2927 }
 0x34f   :  { %v2930_v13 = vpop.eup %2929 }
 0x350   :  { %v2932_v17 = vpop.eup %2931 }
 0x351   :  { %v2934_v21 = vpop.eup %2933 }
 0x352   :  { %v2936_v27 = vpop.eup %2935 }
 0x353   :  { %v209_v29 = vmul.f32 %v2936_v27, %v195_v57  ;;  %v2938_v35 = vpop.eup %2937 }
 0x354   :  { %v210_v37 = vmul.f32 %v2938_v35, %v3276_v59 }
 0x356   :  { %v298_v8 = vpop.f32.mrf.mxu3 }
 0x357   :  { %v310_v9 = vmul.f32 %v2928_v7, %v298_v8 }
 0x359   :  { %515 = vrot.lane.b32.xlu2 %v310_v9, %s3130_s22  ;;  %v2885_v9 = vld [vmem:[%s3889_s3 + $0x3] ss:$0 sm:$0xff] }
 0x35e   :  { %v398_v14 = vpop.f32.mrf.mxu3 }
 0x35f   :  { %v410_v15 = vmul.f32 %v2930_v13, %v398_v14 }
 0x361   :  { %523 = vrot.lane.b32.xlu1 %v410_v15, %s3131_s23 }
 0x366   :  { %v495_v19 = vpop.f32.mrf.mxu3 }
 0x367   :  { %v509_v20 = vmul.f32 %v2932_v17, %v495_v19 }
 0x369   :  { %529 = vrot.lane.b32.xlu0 %v509_v20, %s3132_s24  ;;  %v699_v13 = vpop.f32.mrf.mxu0 }
 0x36a   :  { %v700_v16 = vadd.f32 %v2885_v9, %v699_v13 }
 0x36e   :  { %v498_v18 = vpop.f32.mrf.mxu3 }
 0x36f   :  { %v510_v22 = vmul.f32 %v2934_v21, %v498_v18 }
 0x371   :  { %531 = vrot.lane.b32.xlu0 %v510_v22, %s3132_s24 }
 0x395   :  { %v522_v30 = vpop.permute.xlu2 %521 }
 0x39a   :  { %v514_v28 = vpop.permute.xlu1 %513 }
 0x39b   :  { %v535_v31 = vsel %vm118_vm2, %v209_v29, %v514_v28  ;;  %v2883_v28 = vld [vmem:[%s3889_s3 + $0x7] ss:$0 sm:$0xff] }
 0x39c   :  { %v537_v33 = vsel %vm46_vm0, %v535_v31, %v522_v30 }
 0x3a4   :  { %v702_v43 = vpop.f32.mrf.mxu0 }
 0x3a5   :  { %v703_v44 = vadd.f32 %v2885_v9, %v702_v43 }
 0x3a7   :  { %2690 = vmatpush.xpose.msk.msra.mxu3 %vm118_vm2, %v703_v44 }
 0x3ab   :  { %2691 = vmatpush.xpose.msk.msra.mxu3 %vm118_vm2, %v700_v16 }
 0x3b3   :  { %v516_v36 = vpop.permute.xlu2 %515 }
 0x3b4   :  { %v536_v39 = vsel %vm118_vm2, %v210_v37, %v516_v36 }
 0x3d3   :  { %v524_v38 = vpop.permute.xlu1 %523 }
 0x3d4   :  { %v538_v40 = vsel %vm46_vm0, %v536_v39, %v524_v38 }
 0x3db   :  { %v530_v32 = vpop.permute.xlu0 %529 }
 0x3dc   :  { %v540_v34 = vsel %vm539_vm3, %v537_v33, %v530_v32  ;;  %v2884_v32 = vld [vmem:[%s3889_s3 + $0x8] ss:$0 sm:$0xff] }
 0x3dd   :  { %2684 = vmatmul.msk.f32.vlgmr.msra.gmra.mxu1 %vm82_vm1, %v540_v34 }
 0x3e3   :  { %v532_v41 = vpop.permute.xlu0 %531 }
 0x3e4   :  { %v541_v42 = vsel %vm539_vm3, %v538_v40, %v532_v41 }
 0x3e5   :  { %2685 = vmatmul.msk.f32.gmra.mxu1 %vm82_vm1, %v541_v42 }
 0x45a   :  { %v571_v49 = vpop.f32.mrf.mxu1 }
 0x45b   :  { %v572_v50 = vadd.f32 %v2882_v48, %v571_v49 }
 0x45d   :  { %v577_v51 = vadd.f32 %v572_v50, %v3181_v10  ;;  %v2825_v50 = vpack.i.bf16 %v700_v16, %v703_v44 }
 0x45f   :  { %v581_v52 = vsel %vm82_vm1, %v577_v51, 0.0  ;;  %v589_v53 = vmul.f32 %v577_v51, %v577_v51 }
 0x460   :  { %582 = vadd.xlane.f32.xlu2 %v581_v52 }
 0x461   :  { %v591_v54 = vsel %vm82_vm1, %v589_v53, 0.0 }
 0x462   :  { %592 = vadd.xlane.f32.xlu1 %v591_v54  ;;  %v574_v55 = vpop.f32.mrf.mxu1 }
 0x463   :  { %v575_v56 = vadd.f32 %v2882_v48, %v574_v55 }
 0x465   :  { %v3304_v57 = vadd.f32 %v575_v56, %v3185_v12  ;;  %v637_v12 = vld [vmem:[#allocation2 + $0x70] sm:$0xff] }
 0x466   :  { %660 = vmatpush.msra.mxu2 %v637_v12 }
 0x467   :  { %v584_v58 = vsel %vm82_vm1, %v3304_v57, 0.0  ;;  %v590_v59 = vmul.f32 %v3304_v57, %v3304_v57 }
 0x468   :  { %585 = vadd.xlane.f32.xlu0 %v584_v58  ;;  %661 = vmatpush.msra.mxu2 %v636_v62 }
 0x469   :  { %v594_v10 = vsel %vm82_vm1, %v590_v59, 0.0 }
 0x46a   :  { %595 = vadd.xlane.f32.xlu2 %v594_v10  ;;  %662 = vmatpush.msra.mxu2 %v635_v0 }
 0x47b   :  { %807 = vrot.lane.b32.xlu1 %v703_v44, %s3120_s7 }
 0x47c   :  { %805 = vrot.lane.b32.xlu0 %v700_v16, %s3120_s7 }
 0x483   :  { %907 = vrot.lane.b32.xlu1 %v703_v44, %s3124_s11 }
 0x484   :  { %1007 = vrot.lane.b32.xlu0 %v703_v44, %s3126_s13 }
 0x48b   :  { %1005 = vrot.lane.b32.xlu1 %v700_v16, %s3126_s13 }
 0x4d3   :  { %v583_v63 = vpop.xlane.xlu2 %582 }
 0x4d4   :  { %v587_v1 = vmul.f32 0.03125, %v583_v63 }
 0x4d5   :  { %v593_v2 = vpop.xlane.xlu1 %592 }
 0x4d6   :  { %v599_v3 = vmul.f32 %v587_v1, %v587_v1  ;;  %v597_v4 = vmul.f32 0.03125, %v593_v2  ;;  %v603_v27 = vsub.f32 %v577_v51, %v587_v1 }
 0x4d8   :  { %v601_v5 = vsub.f32 %v597_v4, %v599_v3  ;;  %v3375_v3 = vld [vmem:[%s3886_s0 + $0x38] sm:$0xff] }
 0x4da   :  { %v605_v6 = vadd.f32 1e-05, %v601_v5 }
 0x4db   :  { %v586_v7 = vpop.xlane.xlu0 %585 }
 0x4dc   :  { %2939 = vrsqrt.f32 %v605_v6  ;;  %v588_v8 = vmul.f32 0.03125, %v586_v7  ;;  %vm613_vm5 = vweird.f32 %v605_v6 }
 0x4dd   :  { %v596_v11 = vpop.xlane.xlu2 %595 }
 0x4de   :  { %v600_v14 = vmul.f32 %v588_v8, %v588_v8  ;;  %v598_v15 = vmul.f32 0.03125, %v596_v11  ;;  %v604_v38 = vsub.f32 %v3304_v57, %v588_v8 }
 0x4e0   :  { %v602_v17 = vsub.f32 %v598_v15, %v600_v14 }
 0x4e2   :  { %v2940_v19 = vpop.eup %2939  ;;  %v606_v20 = vadd.f32 1e-05, %v602_v17 }
 0x4e3   :  { %v608_v21 = vmul.f32 %v2940_v19, %v605_v6  ;;  %vm614_vm4 = vweird.f32 %v2940_v19 }
 0x4e4   :  { %2941 = vrsqrt.f32 %v606_v20  ;;  %vm615_vm6 = vmor %vm613_vm5, %vm614_vm4  ;;  %vm623_vm8 = vweird.f32 %v606_v20 }
 0x4e5   :  { %v609_v18 = vmul.f32 %v2940_v19, %v608_v21 }
 0x4e7   :  { %v610_v22 = vmul.f32 0.5, %v609_v18 }
 0x4e9   :  { %v611_v23 = vsub.f32 1.5, %v610_v22 }
 0x4ea   :  { %v2942_v24 = vpop.eup %2941 }
 0x4eb   :  { %v612_v25 = vmul.f32 %v2940_v19, %v611_v23  ;;  %v618_v26 = vmul.f32 %v2942_v24, %v606_v20  ;;  %vm624_vm7 = vweird.f32 %v2942_v24 }
 0x4ec   :  { %vm625_vm9 = vmor %vm623_vm8, %vm624_vm7 }
 0x4ed   :  { %v616_v29 = vsel %vm615_vm6, %v2940_v19, %v612_v25  ;;  %v619_v30 = vmul.f32 %v2942_v24, %v618_v26  ;;  %v808_v51 = vpop.permute.xlu1 %807 }
 0x4ee   :  { %v627_v31 = vmul.f32 %v616_v29, %v603_v27  ;;  %2696 = vmatpush.xpose.msk.msrb.mxu2 %vm118_vm2, %v808_v51  ;;  %v806_v52 = vpop.permute.xlu0 %805 }
 0x4ef   :  { %v620_v33 = vmul.f32 0.5, %v619_v30 }
 0x4f0   :  { %v630_v34 = vmul.f32 %v2883_v28, %v627_v31 }
 0x4f1   :  { %v621_v35 = vsub.f32 1.5, %v620_v33 }
 0x4f2   :  { %v3325_v36 = vadd.f32 %v2884_v32, %v630_v34  ;;  %2697 = vmatpush.xpose.msk.msrb.mxu2 %vm118_vm2, %v806_v52 }
 0x4f3   :  { %v622_v37 = vmul.f32 %v2942_v24, %v621_v35 }
 0x4f4   :  { %2686 = vmatmul.msk.f32.vlgmr.msra.gmra.mxu2 %vm82_vm1, %v3325_v36 }
 0x4f5   :  { %v626_v39 = vsel %vm625_vm9, %v2942_v24, %v622_v37  ;;  %v908_v53 = vpop.permute.xlu1 %907 }
 0x4f6   :  { %v628_v40 = vmul.f32 %v626_v39, %v604_v38  ;;  %2702 = vmatpush.xpose.msk.msrb.mxu3 %vm118_vm2, %v908_v53  ;;  %v1008_v54 = vpop.permute.xlu0 %1007 }
 0x4f7   :  { %2708 = vmatpush.xpose.msk.msra.mxu2 %vm118_vm2, %v1008_v54 }
 0x4f8   :  { %v631_v41 = vmul.f32 %v2883_v28, %v628_v40 }
 0x4fa   :  { %v3330_v42 = vadd.f32 %v2884_v32, %v631_v41 }
 0x4fc   :  { %2687 = vmatmul.msk.f32.gmra.mxu2 %vm82_vm1, %v3330_v42 }
 0x4fd   :  { %v1006_v55 = vpop.permute.xlu1 %1005 }
 0x4fe   :  { %2709 = vmatpush.xpose.msk.msra.mxu2 %vm118_vm2, %v1006_v55 }
 0x577   :  { %v664_v46 = vpop.f32.mrf.mxu2 }
 0x578   :  { %v665_v47 = vadd.f32 %v2886_v45, %v664_v46 }
 0x57a   :  { %801 = vrot.lane.b32.xlu2 %v665_v47, %s3120_s7  ;;  %2692 = vmatmul.msk.f32.vlgmr.msra.gmra.mxu3 %vm118_vm2, %v665_v47 }
 0x57f   :  { %v667_v48 = vpop.f32.mrf.mxu2 }
 0x580   :  { %v668_v49 = vadd.f32 %v2886_v45, %v667_v48 }
 0x582   :  { %905 = vrot.lane.b32.xlu2 %v700_v16, %s3124_s11  ;;  %903 = vrot.lane.b32.xlu1 %v668_v49, %s3124_s11 }
 0x583   :  { %803 = vrot.lane.b32.xlu0 %v668_v49, %s3120_s7  ;;  %2693 = vmatmul.msk.f32.gmra.mxu3 %vm118_vm2, %v668_v49 }
 0x58a   :  { %1001 = vrot.lane.b32.xlu2 %v665_v47, %s3126_s13 }
 0x58b   :  { %901 = vrot.lane.b32.xlu0 %v665_v47, %s3124_s11 }
 0x593   :  { %1003 = vrot.lane.b32.xlu0 %v668_v49, %s3126_s13 }
 0x59b   :  { %2826 = vrot.lane.b32.xlu0 %v2825_v50, %s3121_s8 }
 0x5d4   :  { %v802_v56 = vpop.permute.xlu2 %801 }
 0x5d5   :  { %2698 = vmatmul.msk.f32.vlgmr.msrb.gmra.mxu2 %vm118_vm2, %v802_v56 }
 0x5dc   :  { %v906_v57 = vpop.permute.xlu2 %905 }
 0x5dd   :  { %2703 = vmatpush.xpose.msk.msrb.mxu3 %vm118_vm2, %v906_v57 }
 0x5e4   :  { %v1002_v59 = vpop.permute.xlu2 %1001 }
 0x5f4   :  { %v904_v0 = vpop.permute.xlu1 %903 }
 0x5f5   :  { %v804_v58 = vpop.permute.xlu0 %803 }
 0x5f6   :  { %2699 = vmatmul.msk.f32.gmra.mxu2 %vm118_vm2, %v804_v58 }
 0x5fd   :  { %v902_v10 = vpop.permute.xlu0 %901  ;;  %v734_v60 = vpop.f32.mrf.mxu3 }
 0x5fe   :  { %v740_v12 = vmul.f32 0.35355338, %v734_v60  ;;  %2704 = vmatmul.msk.f32.vlgmr.msrb.gmra.mxu3 %vm118_vm2, %v902_v10  ;;  %2710 = vmatmul.msk.f32.vlgmr.msra.gmra.mxu2 %vm118_vm2, %v1002_v59 }
 0x600   :  { %v742_v62 = vadd.f32 %v740_v12, %v3364_v61 }
 0x602   :  { %v744_v63 = vsel %vm46_vm0, %v742_v62, -inf }
 0x603   :  { %745 = vmax.xlane.f32.xlu2 %v744_v63 }
 0x605   :  { %v1004_v1 = vpop.permute.xlu0 %1003 }
 0x606   :  { %v737_v2 = vpop.f32.mrf.mxu3  ;;  %2705 = vmatmul.msk.f32.gmra.mxu3 %vm118_vm2, %v904_v0  ;;  %2711 = vmatmul.msk.f32.gmra.mxu2 %vm118_vm2, %v1004_v1 }
 0x607   :  { %v741_v4 = vmul.f32 0.35355338, %v737_v2 }
 0x609   :  { %v743_v5 = vadd.f32 %v741_v4, %v3375_v3 }
 0x60b   :  { %v747_v6 = vsel %vm46_vm0, %v743_v5, -inf }
 0x60c   :  { %748 = vmax.xlane.f32.xlu0 %v747_v6 }
 0x60d   :  { %v2827_v7 = vpop.permute.xlu0 %2826 }
 0x60e   :  { %v2828_v8 = vunpack.i.l.bf16 %v2827_v7  ;;  %v2829_v9 = vunpack.i.h.bf16 %v2827_v7 }
 0x610   :  { %882 = vmatpush.msrb.mxu0 %v2828_v8 }
 0x612   :  { %883 = vmatpush.msrb.mxu0 %v2829_v9 }
 0x61b   :  { %2821 = vrot.lane.b32.xlu2 %v2825_v50, %s3122_s9 }
 0x620   :  { %2831 = vrot.lane.b32.xlu0 %v2825_v50, %s3123_s10 }
 0x628   :  { %2836 = vrot.lane.b32.xlu0 %v2825_v50, %s3125_s12 }
 0x658   :  { %v834_v11 = vpop.f32.mrf.mxu2 }
 0x659   :  { %v840_v13 = vmul.f32 0.35355338, %v834_v11 }
 0x65b   :  { %v842_v14 = vadd.f32 %v840_v13, %v3364_v61 }
 0x65d   :  { %v844_v15 = vsel %vm46_vm0, %v842_v14, -inf }
 0x65e   :  { %845 = vmax.xlane.f32.xlu1 %v844_v15 }
 0x676   :  { %v746_v16 = vpop.xlane.xlu2 %745 }
 0x677   :  { %v750_v17 = vsub.f32 %v742_v62, %v746_v16 }
 0x679   :  { %v752_v19 = vmul.f32 1.442695, %v750_v17  ;;  %v837_v21 = vpop.f32.mrf.mxu2 }
 0x67a   :  { %v841_v30 = vmul.f32 0.35355338, %v837_v21 }
 0x67b   :  { %2943 = vpow2.f32 %v752_v19 }
 0x67c   :  { %v843_v35 = vadd.f32 %v841_v30, %v3375_v3 }
 0x67e   :  { %v2822_v20 = vpop.permute.xlu2 %2821  ;;  %v847_v40 = vsel %vm46_vm0, %v843_v35, -inf }
 0x67f   :  { %v749_v18 = vpop.xlane.xlu0 %748  ;;  %v2823_v22 = vunpack.i.l.bf16 %v2822_v20  ;;  %v2824_v24 = vunpack.i.h.bf16 %v2822_v20 }
 0x680   :  { %v751_v23 = vsub.f32 %v743_v5, %v749_v18 }
 0x681   :  { %v934_v25 = vpop.f32.mrf.mxu3  ;;  %782 = vmatpush.msrb.mxu1 %v2823_v22  ;;  %v3384_v28 = vpop.eup %2943 }
 0x682   :  { %v754_v26 = vmul.f32 1.442695, %v751_v23  ;;  %v940_v27 = vmul.f32 0.35355338, %v934_v25  ;;  %v1034_v32 = vpop.f32.mrf.mxu2  ;;  %v791_v22 = vsel %vm46_vm0, %v3384_v28, 0.0 }
 0x683   :  { %783 = vmatpush.msrb.mxu1 %v2824_v24  ;;  %v1040_v39 = vmul.f32 0.35355338, %v1034_v32 }
 0x684   :  { %2694 = vmatmul.msk.f32.vlgmr.msrb.gmra.mxu1 %vm46_vm0, %v3384_v28  ;;  %v942_v29 = vadd.f32 %v940_v27, %v3364_v61  ;;  %2945 = vpow2.f32 %v754_v26 }
 0x685   :  { %v1042_v44 = vadd.f32 %v1040_v39, %v3364_v61 }
 0x686   :  { %v944_v31 = vsel %vm46_vm0, %v942_v29, -inf }
 0x687   :  { %945 = vmax.xlane.f32.xlu1 %v944_v31  ;;  %v1044_v50 = vsel %vm46_vm0, %v1042_v44, -inf }
 0x689   :  { %v937_v33 = vpop.f32.mrf.mxu3 }
 0x68a   :  { %v941_v34 = vmul.f32 0.35355338, %v937_v33  ;;  %v2946_v37 = vpop.eup %2945  ;;  %v1037_v45 = vpop.f32.mrf.mxu2 }
 0x68b   :  { %v1041_v47 = vmul.f32 0.35355338, %v1037_v45  ;;  %v794_v49 = vsel %vm46_vm0, %v2946_v37, 0.0 }
 0x68c   :  { %2695 = vmatmul.msk.f32.gmra.mxu1 %vm46_vm0, %v2946_v37  ;;  %v943_v38 = vadd.f32 %v941_v34, %v3375_v3 }
 0x68d   :  { %v1043_v52 = vadd.f32 %v1041_v47, %v3375_v3 }
 0x68e   :  { %v947_v41 = vsel %vm46_vm0, %v943_v38, -inf }
 0x68f   :  { %848 = vmax.xlane.f32.xlu1 %v847_v40  ;;  %948 = vmax.xlane.f32.xlu2 %v947_v41  ;;  %v1047_v55 = vsel %vm46_vm0, %v1043_v52, -inf }
 0x692   :  { %v2832_v43 = vpop.permute.xlu0 %2831 }
 0x693   :  { %v2833_v46 = vunpack.i.l.bf16 %v2832_v43  ;;  %v2834_v48 = vunpack.i.h.bf16 %v2832_v43 }
 0x695   :  { %982 = vmatpush.msra.mxu1 %v2833_v46 }
 0x697   :  { %795 = vadd.xlane.f32.xlu2 %v794_v49  ;;  %1045 = vmax.xlane.f32.xlu1 %v1044_v50 }
 0x698   :  { %983 = vmatpush.msra.mxu1 %v2834_v48 }
 0x69a   :  { %v2837_v51 = vpop.permute.xlu0 %2836 }
 0x69b   :  { %v2838_v53 = vunpack.i.l.bf16 %v2837_v51  ;;  %v2839_v54 = vunpack.i.h.bf16 %v2837_v51 }
 0x69d   :  { %1082 = vmatpush.msra.mxu0 %v2838_v53  ;;  %v1133_v53 = vld [vmem:[#allocation2 + $0x80] sm:$0xff] }
 0x69f   :  { %1083 = vmatpush.msra.mxu0 %v2839_v54  ;;  %1048 = vmax.xlane.f32.xlu1 %v1047_v55  ;;  %v1132_v54 = vld [vmem:[#allocation2 + $0x50] sm:$0xff]  ;;  %v1131_v55 = vld [vmem:[#allocation2 + $0x20] sm:$0xff] }
 0x6d1   :  { %v846_v56 = vpop.xlane.xlu1 %845 }
 0x6d2   :  { %v850_v57 = vsub.f32 %v842_v14, %v846_v56 }
 0x6d4   :  { %v852_v58 = vmul.f32 1.442695, %v850_v57 }
 0x6d6   :  { %2947 = vpow2.f32 %v852_v58 }
 0x6dc   :  { %v2948_v59 = vpop.eup %2947 }
 0x6dd   :  { %2700 = vmatmul.msk.f32.vlgmr.msrb.gmra.mxu0 %vm46_vm0, %v2948_v59  ;;  %v891_v10 = vsel %vm46_vm0, %v2948_v59, 0.0 }
 0x6de   :  { %892 = vadd.xlane.f32.xlu1 %v891_v10 }
 0x6fa   :  { %v946_v60 = vpop.xlane.xlu1 %945 }
 0x6fb   :  { %v950_v61 = vsub.f32 %v942_v29, %v946_v60 }
 0x6fd   :  { %v952_v12 = vmul.f32 1.442695, %v950_v61 }
 0x6ff   :  { %2949 = vpow2.f32 %v952_v12 }
 0x701   :  { %v785_v27 = vpop.f32.mrf.mxu1 }
 0x702   :  { %v849_v62 = vpop.xlane.xlu1 %848  ;;  %v949_v63 = vpop.xlane.xlu2 %948 }
 0x703   :  { %v851_v0 = vsub.f32 %v843_v35, %v849_v62  ;;  %v951_v1 = vsub.f32 %v943_v38, %v949_v63 }
 0x705   :  { %v2950_v2 = vpop.eup %2949  ;;  %v854_v3 = vmul.f32 1.442695, %v851_v0  ;;  %v954_v4 = vmul.f32 1.442695, %v951_v1 }
 0x706   :  { %2706 = vmatmul.msk.f32.vlgmr.msra.gmra.mxu1 %vm46_vm0, %v2950_v2  ;;  %v991_v5 = vsel %vm46_vm0, %v2950_v2, 0.0 }
 0x707   :  { %2951 = vpow2.f32 %v854_v3  ;;  %992 = vadd.xlane.f32.xlu0 %v991_v5 }
 0x708   :  { %2953 = vpow2.f32 %v954_v4 }
 0x709   :  { %v788_v30 = vpop.f32.mrf.mxu1 }
 0x70a   :  { %v1046_v6 = vpop.xlane.xlu1 %1045  ;;  %v796_v39 = vpop.xlane.xlu2 %795 }
 0x70b   :  { %v1050_v7 = vsub.f32 %v1042_v44, %v1046_v6 }
 0x70d   :  { %v2952_v8 = vpop.eup %2951  ;;  %v1052_v9 = vmul.f32 1.442695, %v1050_v7  ;;  %v2887_v7 = vld [vmem:[%s3889_s3 + $0x4] ss:$0 sm:$0xff] }
 0x70e   :  { %v2954_v11 = vpop.eup %2953  ;;  %2701 = vmatmul.msk.f32.gmra.mxu0 %vm46_vm0, %v2952_v8  ;;  %v894_v13 = vsel %vm46_vm0, %v2952_v8, 0.0 }
 0x70f   :  { %2955 = vpow2.f32 %v1052_v9  ;;  %2707 = vmatmul.msk.f32.gmra.mxu1 %vm46_vm0, %v2954_v11  ;;  %895 = vadd.xlane.f32.xlu1 %v894_v13  ;;  %v994_v19 = vsel %vm46_vm0, %v2954_v11, 0.0 }
 0x712   :  { %v1049_v14 = vpop.xlane.xlu1 %1048 }
 0x713   :  { %v1051_v15 = vsub.f32 %v1043_v52, %v1049_v14  ;;  %v1134_v52 = vld [vmem:[#allocation2 + $0xb0] sm:$0xff] }
 0x714   :  { %1155 = vmatpush.msra.mxu3 %v1134_v52 }
 0x715   :  { %v2956_v16 = vpop.eup %2955  ;;  %v1054_v17 = vmul.f32 1.442695, %v1051_v15 }
 0x716   :  { %2712 = vmatmul.msk.f32.vlgmr.msra.gmra.mxu0 %vm46_vm0, %v2956_v16  ;;  %v1091_v18 = vsel %vm46_vm0, %v2956_v16, 0.0  ;;  %1156 = vmatpush.msra.mxu3 %v1133_v53 }
 0x717   :  { %2957 = vpow2.f32 %v1054_v17  ;;  %995 = vadd.xlane.f32.xlu1 %v994_v19 }
 0x718   :  { %1157 = vmatpush.msra.mxu3 %v1132_v54  ;;  %v1268_v54 = vld [vmem:[%s3888_s2 + $0x38] sm:$0xff] }
 0x71a   :  { %1158 = vmatpush.msra.mxu3 %v1131_v55 }
 0x71d   :  { %v2958_v20 = vpop.eup %2957 }
 0x71e   :  { %2713 = vmatmul.msk.f32.gmra.mxu0 %vm46_vm0, %v2958_v20  ;;  %v1094_v21 = vsel %vm46_vm0, %v2958_v20, 0.0 }
 0x71f   :  { %1095 = vadd.xlane.f32.xlu2 %v1094_v21  ;;  %1092 = vadd.xlane.f32.xlu1 %v1091_v18  ;;  %v1227_v18 = vld [vmem:[#allocation2 + $0xb8] sm:$0xff] }
 0x720   :  { %1248 = vmatpush.msrb.mxu1 %v1227_v18 }
 0x727   :  { %792 = vadd.xlane.f32.xlu1 %v791_v22  ;;  %v1226_v22 = vld [vmem:[#allocation2 + $0x88] sm:$0xff] }
 0x728   :  { %1249 = vmatpush.msrb.mxu1 %v1226_v22  ;;  %v2891_v22 = vld [vmem:[%s3889_s3 + $0x6] ss:$0 sm:$0xff] }
 0x751   :  { %v893_v23 = vpop.xlane.xlu1 %892 }
 0x752   :  { %2959 = vrcp.f32 %v893_v23  ;;  %v1225_v23 = vld [vmem:[#allocation2 + $0x58] sm:$0xff] }
 0x753   :  { %1250 = vmatpush.msrb.mxu1 %v1225_v23 }
 0x758   :  { %v2960_v24 = vpop.eup %2959 }
 0x75a   :  { %v885_v25 = vpop.f32.mrf.mxu0 }
 0x75b   :  { %v899_v26 = vmul.f32 %v2960_v24, %v885_v25  ;;  %v1224_v25 = vld [vmem:[#allocation2 + $0x28] sm:$0xff] }
 0x75c   :  { %1251 = vmatpush.msrb.mxu1 %v1224_v25 }
 0x75d   :  { %1103 = vrot.lane.b32.xlu1 %v899_v26, %s3130_s22 }
 0x77a   :  { %v993_v29 = vpop.xlane.xlu0 %992 }
 0x77b   :  { %2961 = vrcp.f32 %v993_v29 }
 0x781   :  { %v2962_v32 = vpop.eup %2961 }
 0x782   :  { %v896_v31 = vpop.xlane.xlu1 %895 }
 0x783   :  { %v985_v33 = vpop.f32.mrf.mxu1  ;;  %2963 = vrcp.f32 %v896_v31 }
 0x784   :  { %v999_v34 = vmul.f32 %v2962_v32, %v985_v33 }
 0x786   :  { %1111 = vrot.lane.b32.xlu2 %v999_v34, %s3131_s23  ;;  %v1276_v34 = vld [vmem:[%s3888_s2 + $0x78] sm:$0xff] }
 0x787   :  { %1279 = vmatpush.msrb.mxu2 %v1276_v34 }
 0x789   :  { %v2964_v35 = vpop.eup %2963 }
 0x78a   :  { %v996_v28 = vpop.xlane.xlu1 %995 }
 0x78b   :  { %2965 = vrcp.f32 %v996_v28  ;;  %v888_v37 = vpop.f32.mrf.mxu0  ;;  %v1275_v28 = vld [vmem:[%s3888_s2 + $0x70] sm:$0xff] }
 0x78c   :  { %v900_v38 = vmul.f32 %v2964_v35, %v888_v37  ;;  %v988_v41 = vpop.f32.mrf.mxu1  ;;  %1280 = vmatpush.msrb.mxu2 %v1275_v28  ;;  %v1363_v28 = vld [vmem:[#allocation2 + $0x150] sm:$0xff] }
 0x78d   :  { %1384 = vmatpush.msrb.mxu0 %v1363_v28 }
 0x78e   :  { %1105 = vrot.lane.b32.xlu1 %v900_v38, %s3130_s22 }
 0x791   :  { %v2966_v40 = vpop.eup %2965 }
 0x792   :  { %v1000_v43 = vmul.f32 %v2966_v40, %v988_v41  ;;  %v1093_v44 = vpop.xlane.xlu1 %1092  ;;  %v1096_v46 = vpop.xlane.xlu2 %1095  ;;  %v1273_v41 = vld [vmem:[%s3888_s2 + $0x60] sm:$0xff] }
 0x793   :  { %2967 = vrcp.f32 %v1093_v44  ;;  %v1085_v45 = vpop.f32.mrf.mxu0 }
 0x794   :  { %1113 = vrot.lane.b32.xlu2 %v1000_v43, %s3131_s23  ;;  %2969 = vrcp.f32 %v1096_v46 }
 0x799   :  { %v2968_v47 = vpop.eup %2967 }
 0x79a   :  { %v1099_v48 = vmul.f32 %v2968_v47, %v1085_v45  ;;  %v2970_v50 = vpop.eup %2969  ;;  %v793_v56 = vpop.xlane.xlu1 %792  ;;  %v1272_v45 = vld [vmem:[%s3888_s2 + $0x58] sm:$0xff]  ;;  %v1271_v47 = vld [vmem:[%s3888_s2 + $0x50] sm:$0xff] }
 0x79b   :  { %v1088_v49 = vpop.f32.mrf.mxu0  ;;  %2971 = vrcp.f32 %v793_v56 }
 0x79c   :  { %1119 = vrot.lane.b32.xlu0 %v1099_v48, %s3132_s24  ;;  %v1100_v51 = vmul.f32 %v2970_v50, %v1088_v49  ;;  %2973 = vrcp.f32 %v796_v39  ;;  %v1274_v39 = vld [vmem:[%s3888_s2 + $0x68] sm:$0xff] }
 0x79d   :  { %1281 = vmatpush.msrb.mxu2 %v1274_v39  ;;  %v1270_v49 = vld [vmem:[%s3888_s2 + $0x48] sm:$0xff]  ;;  %v1360_v39 = vld [vmem:[#allocation2 + $0xc0] sm:$0xff] }
 0x79f   :  { %1282 = vmatpush.msrb.mxu2 %v1273_v41 }
 0x7a1   :  { %v2972_v57 = vpop.eup %2971  ;;  %1283 = vmatpush.msrb.mxu2 %v1272_v45 }
 0x7a2   :  { %v799_v59 = vmul.f32 %v2972_v57, %v785_v27  ;;  %v2974_v61 = vpop.eup %2973 }
 0x7a3   :  { %v800_v1 = vmul.f32 %v2974_v61, %v788_v30  ;;  %1284 = vmatpush.msrb.mxu2 %v1271_v47 }
 0x7a4   :  { %1121 = vrot.lane.b32.xlu0 %v1100_v51, %s3132_s24  ;;  %v1269_v51 = vld [vmem:[%s3888_s2 + $0x40] sm:$0xff] }
 0x7a5   :  { %1285 = vmatpush.msrb.mxu2 %v1270_v49 }
 0x7a7   :  { %1286 = vmatpush.msrb.mxu2 %v1269_v51 }
 0x7a9   :  { %1287 = vmatpush.msrb.mxu2 %v1268_v54 }
 0x7cf   :  { %v1104_v58 = vpop.permute.xlu1 %1103 }
 0x7d0   :  { %v1125_v60 = vsel %vm118_vm2, %v799_v59, %v1104_v58  ;;  %v2888_v58 = vld [vmem:[%s3889_s3 + $0x9] ss:$0 sm:$0xff]  ;;  %v1267_v59 = vld [vmem:[%s3888_s2 + $0x30] sm:$0xff] }
 0x7d1   :  { %1288 = vmatpush.msrb.mxu2 %v1267_v59 }
 0x7e0   :  { %v1112_v10 = vpop.permute.xlu2 %1111 }
 0x7e1   :  { %v1127_v12 = vsel %vm46_vm0, %v1125_v60, %v1112_v10 }
 0x7ee   :  { %v1114_v3 = vpop.permute.xlu2 %1113 }
 0x800   :  { %v1106_v0 = vpop.permute.xlu1 %1105 }
 0x801   :  { %v1126_v2 = vsel %vm118_vm2, %v800_v1, %v1106_v0  ;;  %v1265_v1 = vld [vmem:[%s3888_s2 + $0x20] sm:$0xff] }
 0x802   :  { %v1128_v5 = vsel %vm46_vm0, %v1126_v2, %v1114_v3 }
 0x80e   :  { %v1120_v62 = vpop.permute.xlu0 %1119 }
 0x80f   :  { %v1129_v63 = vsel %vm539_vm3, %v1127_v12, %v1120_v62  ;;  %v2889_v12 = vld [vmem:[%s3889_s3 + $0xa] ss:$0 sm:$0xff] }
 0x810   :  { %2714 = vmatmul.msk.f32.vlgmr.msra.gmra.mxu3 %vm82_vm1, %v1129_v63  ;;  %v1266_v62 = vld [vmem:[%s3888_s2 + $0x28] sm:$0xff] }
 0x811   :  { %1289 = vmatpush.msrb.mxu2 %v1266_v62 }
 0x813   :  { %1290 = vmatpush.msrb.mxu2 %v1265_v1  ;;  %v2893_v1 = vld [vmem:[%s3889_s3 + $0xc] ss:$0 sm:$0xff] }
 0x816   :  { %v1122_v4 = vpop.permute.xlu0 %1121 }
 0x817   :  { %v1130_v6 = vsel %vm539_vm3, %v1128_v5, %v1122_v4  ;;  %v1264_v4 = vld [vmem:[%s3888_s2 + $0x18] sm:$0xff] }
 0x818   :  { %2715 = vmatmul.msk.f32.gmra.mxu3 %vm82_vm1, %v1130_v6  ;;  %1291 = vmatpush.msrb.mxu2 %v1264_v4 }
 0x893   :  { %v1160_v8 = vpop.f32.mrf.mxu3 }
 0x894   :  { %v1161_v9 = vadd.f32 %v2887_v7, %v1160_v8 }
 0x896   :  { %v3432_v11 = vadd.f32 %v1161_v9, %v3325_v36 }
 0x898   :  { %v1170_v13 = vsel %vm82_vm1, %v3432_v11, 0.0  ;;  %v1178_v14 = vmul.f32 %v3432_v11, %v3432_v11 }
 0x899   :  { %1171 = vadd.xlane.f32.xlu1 %v1170_v13  ;;  %v1263_v13 = vld [vmem:[%s3888_s2 + $0x10] sm:$0xff] }
 0x89a   :  { %v1180_v15 = vsel %vm82_vm1, %v1178_v14, 0.0  ;;  %1292 = vmatpush.msrb.mxu2 %v1263_v13  ;;  %v1262_v14 = vld [vmem:[%s3888_s2 + $0x8] sm:$0xff] }
 0x89b   :  { %1181 = vadd.xlane.f32.xlu2 %v1180_v15  ;;  %v1163_v16 = vpop.f32.mrf.mxu3  ;;  %v1261_v15 = vld [vmem:[%s3888_s2] sm:$0xff] }
 0x89c   :  { %v1164_v17 = vadd.f32 %v2887_v7, %v1163_v16  ;;  %1293 = vmatpush.msrb.mxu2 %v1262_v14  ;;  %v2890_v16 = vld [vmem:[%s3889_s3 + $0x5] ss:$0 sm:$0xff]  ;;  %v2894_v14 = vld [vmem:[%s3889_s3 + $0x10] ss:$0 sm:$0xff] }
 0x89e   :  { %v3440_v19 = vadd.f32 %v1164_v17, %v3330_v42  ;;  %1294 = vmatpush.msrb.mxu2 %v1261_v15 }
 0x8a0   :  { %v1173_v20 = vsel %vm82_vm1, %v3440_v19, 0.0  ;;  %v1179_v36 = vmul.f32 %v3440_v19, %v3440_v19 }
 0x8a1   :  { %1174 = vadd.xlane.f32.xlu0 %v1173_v20 }
 0x8a2   :  { %v1183_v21 = vsel %vm82_vm1, %v1179_v36, 0.0 }
 0x8a3   :  { %1184 = vadd.xlane.f32.xlu1 %v1183_v21 }
 0x90c   :  { %v1172_v24 = vpop.xlane.xlu1 %1171 }
 0x90d   :  { %v1176_v42 = vmul.f32 0.03125, %v1172_v24 }
 0x90e   :  { %v1182_v26 = vpop.xlane.xlu2 %1181 }
 0x90f   :  { %v1188_v27 = vmul.f32 %v1176_v42, %v1176_v42  ;;  %v1186_v29 = vmul.f32 0.03125, %v1182_v26  ;;  %v1192_v57 = vsub.f32 %v3432_v11, %v1176_v42 }
 0x911   :  { %v1190_v30 = vsub.f32 %v1186_v29, %v1188_v27 }
 0x913   :  { %v1194_v31 = vadd.f32 1e-05, %v1190_v30 }
 0x914   :  { %v1175_v32 = vpop.xlane.xlu0 %1174 }
 0x915   :  { %2975 = vrsqrt.f32 %v1194_v31  ;;  %v1177_v33 = vmul.f32 0.03125, %v1175_v32  ;;  %vm1202_vm11 = vweird.f32 %v1194_v31 }
 0x916   :  { %v1185_v35 = vpop.xlane.xlu1 %1184 }
 0x917   :  { %v1189_v37 = vmul.f32 %v1177_v33, %v1177_v33  ;;  %v1187_v38 = vmul.f32 0.03125, %v1185_v35  ;;  %v1193_v6 = vsub.f32 %v3440_v19, %v1177_v33  ;;  %v1362_v35 = vld [vmem:[#allocation2 + $0x120] sm:$0xff] }
 0x918   :  { %1385 = vmatpush.msrb.mxu0 %v1362_v35 }
 0x919   :  { %v1191_v40 = vsub.f32 %v1187_v38, %v1189_v37  ;;  %v1361_v37 = vld [vmem:[#allocation2 + $0xf0] sm:$0xff] }
 0x91a   :  { %1386 = vmatpush.msrb.mxu0 %v1361_v37 }
 0x91b   :  { %v2976_v43 = vpop.eup %2975  ;;  %v1195_v44 = vadd.f32 1e-05, %v1191_v40 }
 0x91c   :  { %v1197_v46 = vmul.f32 %v2976_v43, %v1194_v31  ;;  %vm1203_vm10 = vweird.f32 %v2976_v43  ;;  %1387 = vmatpush.msrb.mxu0 %v1360_v39 }
 0x91d   :  { %2977 = vrsqrt.f32 %v1195_v44  ;;  %vm1204_vm12 = vmor %vm1202_vm11, %vm1203_vm10  ;;  %vm1212_vm14 = vweird.f32 %v1195_v44 }
 0x91e   :  { %v1198_v48 = vmul.f32 %v2976_v43, %v1197_v46 }
 0x920   :  { %v1199_v50 = vmul.f32 0.5, %v1198_v48 }
 0x922   :  { %v1200_v52 = vsub.f32 1.5, %v1199_v50 }
 0x923   :  { %v2978_v53 = vpop.eup %2977 }
 0x924   :  { %v1201_v55 = vmul.f32 %v2976_v43, %v1200_v52  ;;  %v1207_v56 = vmul.f32 %v2978_v53, %v1195_v44  ;;  %vm1213_vm13 = vweird.f32 %v2978_v53 }
 0x925   :  { %vm1214_vm15 = vmor %vm1212_vm14, %vm1213_vm13 }
 0x926   :  { %v1205_v10 = vsel %vm1204_vm12, %v2976_v43, %v1201_v55  ;;  %v1208_v60 = vmul.f32 %v2978_v53, %v1207_v56 }
 0x927   :  { %v1216_v61 = vmul.f32 %v1205_v10, %v1192_v57 }
 0x928   :  { %v1209_v63 = vmul.f32 0.5, %v1208_v60 }
 0x929   :  { %v1219_v0 = vmul.f32 %v2888_v58, %v1216_v61 }
 0x92a   :  { %v1210_v2 = vsub.f32 1.5, %v1209_v63 }
 0x92b   :  { %v1222_v3 = vadd.f32 %v2889_v12, %v1219_v0 }
 0x92c   :  { %v1211_v5 = vmul.f32 %v2978_v53, %v1210_v2 }
 0x92d   :  { %2716 = vmatmul.msk.f32.vlgmr.msrb.gmra.mxu1 %vm82_vm1, %v1222_v3 }
 0x92e   :  { %v1215_v7 = vsel %vm1214_vm15, %v2978_v53, %v1211_v5 }
 0x92f   :  { %v1217_v8 = vmul.f32 %v1215_v7, %v1193_v6 }
 0x931   :  { %v1220_v9 = vmul.f32 %v2888_v58, %v1217_v8 }
 0x933   :  { %v1223_v11 = vadd.f32 %v2889_v12, %v1220_v9  ;;  %v2892_v12 = vld [vmem:[%s3889_s3 + $0xb] ss:$0 sm:$0xff] }
 0x935   :  { %2717 = vmatmul.msk.f32.gmra.mxu1 %vm82_vm1, %v1223_v11 }
 0x9aa   :  { %v1253_v17 = vpop.f32.mrf.mxu1 }
 0x9ab   :  { %v1254_v19 = vadd.f32 %v2890_v16, %v1253_v17 }
 0x9ad   :  { %v1259_v20 = vmax.f32 %v1254_v19, 0.0 }
 0x9af   :  { %1295 = vmatmul.f32.vlgmr.msrb.gmra.mxu2 %v1259_v20 }
 0x9b2   :  { %v1256_v36 = vpop.f32.mrf.mxu1 }
 0x9b3   :  { %v1257_v21 = vadd.f32 %v2890_v16, %v1256_v36 }
 0x9b5   :  { %v1260_v18 = vmax.f32 %v1257_v21, 0.0 }
 0x9b7   :  { %1298 = vmatmul.f32.gmra.mxu2 %v1260_v18 }
 0xa32   :  { %v1296_v23 = vpop.f32.mrf.mxu2 }
 0xa33   :  { %v1297_v24 = vadd.f32 %v2891_v22, %v1296_v23 }
 0xa35   :  { %v1302_v25 = vadd.f32 %v1297_v24, %v1222_v3 }
 0xa37   :  { %v1306_v42 = vsel %vm82_vm1, %v1302_v25, 0.0  ;;  %v1314_v26 = vmul.f32 %v1302_v25, %v1302_v25 }
 0xa38   :  { %1307 = vadd.xlane.f32.xlu2 %v1306_v42 }
 0xa39   :  { %v1316_v27 = vsel %vm82_vm1, %v1314_v26, 0.0 }
 0xa3a   :  { %1317 = vadd.xlane.f32.xlu0 %v1316_v27  ;;  %v1299_v29 = vpop.f32.mrf.mxu2 }
 0xa3b   :  { %v1300_v30 = vadd.f32 %v2891_v22, %v1299_v29 }
 0xa3d   :  { %v1303_v31 = vadd.f32 %v1300_v30, %v1223_v11 }
 0xa3f   :  { %v1309_v32 = vsel %vm82_vm1, %v1303_v31, 0.0  ;;  %v1315_v33 = vmul.f32 %v1303_v31, %v1303_v31 }
 0xa40   :  { %1310 = vadd.xlane.f32.xlu1 %v1309_v32 }
 0xa41   :  { %v1319_v34 = vsel %vm82_vm1, %v1315_v33, 0.0 }
 0xa42   :  { %1320 = vadd.xlane.f32.xlu2 %v1319_v34  ;;  %v3562_v34 = vld [vmem:[%s3886_s0 + $0x20] sm:$0xff] }
 0xaab   :  { %v1308_v38 = vpop.xlane.xlu2 %1307 }
 0xaac   :  { %v1312_v40 = vmul.f32 0.03125, %v1308_v38 }
 0xaad   :  { %v1318_v41 = vpop.xlane.xlu0 %1317 }
 0xaae   :  { %v1324_v43 = vmul.f32 %v1312_v40, %v1312_v40  ;;  %v1322_v44 = vmul.f32 0.03125, %v1318_v41  ;;  %v1328_v61 = vsub.f32 %v1302_v25, %v1312_v40 }
 0xab0   :  { %v1326_v45 = vsub.f32 %v1322_v44, %v1324_v43  ;;  %v3571_v44 = vld [vmem:[%s3886_s0 + $0x28] sm:$0xff] }
 0xab2   :  { %v1330_v46 = vadd.f32 1e-05, %v1326_v45 }
 0xab3   :  { %v1311_v47 = vpop.xlane.xlu1 %1310 }
 0xab4   :  { %2979 = vrsqrt.f32 %v1330_v46  ;;  %v1313_v48 = vmul.f32 0.03125, %v1311_v47  ;;  %vm1338_vm5 = vweird.f32 %v1330_v46 }
 0xab5   :  { %v1321_v49 = vpop.xlane.xlu2 %1320 }
 0xab6   :  { %v1325_v50 = vmul.f32 %v1313_v48, %v1313_v48  ;;  %v1323_v51 = vmul.f32 0.03125, %v1321_v49  ;;  %v1329_v7 = vsub.f32 %v1303_v31, %v1313_v48 }
 0xab8   :  { %v1327_v52 = vsub.f32 %v1323_v51, %v1325_v50 }
 0xaba   :  { %v2980_v53 = vpop.eup %2979  ;;  %v1331_v54 = vadd.f32 1e-05, %v1327_v52 }
 0xabb   :  { %v1333_v55 = vmul.f32 %v2980_v53, %v1330_v46  ;;  %vm1339_vm4 = vweird.f32 %v2980_v53 }
 0xabc   :  { %2981 = vrsqrt.f32 %v1331_v54  ;;  %vm1340_vm6 = vmor %vm1338_vm5, %vm1339_vm4  ;;  %vm1348_vm8 = vweird.f32 %v1331_v54 }
 0xabd   :  { %v1334_v56 = vmul.f32 %v2980_v53, %v1333_v55 }
 0xabf   :  { %v1335_v57 = vmul.f32 0.5, %v1334_v56 }
 0xac1   :  { %v1336_v58 = vsub.f32 1.5, %v1335_v57 }
 0xac2   :  { %v2982_v59 = vpop.eup %2981 }
 0xac3   :  { %v1337_v10 = vmul.f32 %v2980_v53, %v1336_v58  ;;  %v1343_v60 = vmul.f32 %v2982_v59, %v1331_v54  ;;  %vm1349_vm7 = vweird.f32 %v2982_v59 }
 0xac4   :  { %vm1350_vm9 = vmor %vm1348_vm8, %vm1349_vm7 }
 0xac5   :  { %v1341_v62 = vsel %vm1340_vm6, %v2980_v53, %v1337_v10  ;;  %v1344_v63 = vmul.f32 %v2982_v59, %v1343_v60 }
 0xac6   :  { %v1352_v0 = vmul.f32 %v1341_v62, %v1328_v61 }
 0xac7   :  { %v1345_v2 = vmul.f32 0.5, %v1344_v63 }
 0xac8   :  { %v1355_v3 = vmul.f32 %v2892_v12, %v1352_v0 }
 0xac9   :  { %v1346_v4 = vsub.f32 1.5, %v1345_v2 }
 0xaca   :  { %v3521_v5 = vadd.f32 %v2893_v1, %v1355_v3 }
 0xacb   :  { %v1347_v6 = vmul.f32 %v2982_v59, %v1346_v4 }
 0xacc   :  { %2718 = vmatmul.msk.f32.vlgmr.msrb.gmra.mxu0 %vm82_vm1, %v3521_v5 }
 0xacd   :  { %v1351_v8 = vsel %vm1350_vm9, %v2982_v59, %v1347_v6 }
 0xace   :  { %v1353_v9 = vmul.f32 %v1351_v8, %v1329_v7 }
 0xad0   :  { %v1356_v11 = vmul.f32 %v2892_v12, %v1353_v9 }
 0xad2   :  { %v3525_v13 = vadd.f32 %v2893_v1, %v1356_v11 }
 0xad4   :  { %2719 = vmatmul.msk.f32.gmra.mxu0 %vm82_vm1, %v3525_v13 }
 0xb49   :  { %v1389_v15 = vpop.f32.mrf.mxu0 }
 0xb4a   :  { %v1390_v16 = vadd.f32 %v2894_v14, %v1389_v15 }
 0xb4c   :  { %1493 = vrot.lane.b32.xlu2 %v1390_v16, %s3120_s7  ;;  %1397 = vrot.lane.b32.xlu1 %v1390_v16, %s3122_s9 }
 0xb51   :  { %v1392_v17 = vpop.f32.mrf.mxu0 }
 0xb52   :  { %v1393_v19 = vadd.f32 %v2894_v14, %v1392_v17 }
 0xb54   :  { %1399 = vrot.lane.b32.xlu0 %v1393_v19, %s3122_s9  ;;  %1597 = vrot.lane.b32.xlu2 %v1390_v16, %s3123_s10  ;;  %v3537_v20 = vpack.i.bf16 %v1390_v16, %v1393_v19 }
 0xb55   :  { %1497 = vrot.lane.b32.xlu1 %v1390_v16, %s3121_s8 }
 0xb5c   :  { %1499 = vrot.lane.b32.xlu2 %v1393_v19, %s3121_s8 }
 0xb5d   :  { %2841 = vrot.lane.b32.xlu1 %v3537_v20, %s3127_s14  ;;  %s3134_s14 = smov 128  }
 0xb64   :  { %1599 = vrot.lane.b32.xlu2 %v1393_v19, %s3123_s10 }
 0xb65   :  { %1495 = vrot.lane.b32.xlu1 %v1393_v19, %s3120_s7 }
 0xb6d   :  { %1699 = vrot.lane.b32.xlu1 %v1393_v19, %s3125_s12 }
 0xb75   :  { %1697 = vrot.lane.b32.xlu1 %v1390_v16, %s3125_s12 }
 0xb7d   :  { %1595 = vrot.lane.b32.xlu1 %v1393_v19, %s3124_s11 }
 0xba6   :  { %v1494_v36 = vpop.permute.xlu2 %1493 }
 0xbae   :  { %v1598_v21 = vpop.permute.xlu2 %1597 }
 0xbb6   :  { %v1500_v18 = vpop.permute.xlu2 %1499 }
 0xbb7   :  { %2726 = vmatpush.xpose.msk.msra.mxu0 %vm118_vm2, %v1500_v18 }
 0xbbe   :  { %v1398_v22 = vpop.permute.xlu1 %1397  ;;  %v1600_v27 = vpop.permute.xlu2 %1599 }
 0xbc6   :  { %v1400_v23 = vpop.permute.xlu0 %1399 }
 0xbc7   :  { %v1498_v24 = vpop.permute.xlu1 %1497  ;;  %2720 = vmatpush.xpose.msk.msrb.mxu3 %vm118_vm2, %v1400_v23 }
 0xbc8   :  { %2727 = vmatpush.xpose.msk.msra.mxu0 %vm118_vm2, %v1498_v24 }
 0xbcb   :  { %2728 = vmatmul.msk.f32.vlgmr.msra.gmra.mxu0 %vm118_vm2, %v1494_v36  ;;  %2721 = vmatpush.xpose.msk.msrb.mxu3 %vm118_vm2, %v1398_v22 }
 0xbce   :  { %2722 = vmatmul.msk.f32.vlgmr.msrb.gmra.mxu3 %vm118_vm2, %v1390_v16 }
 0xbcf   :  { %v2842_v25 = vpop.permute.xlu1 %2841 }
 0xbd0   :  { %v2843_v42 = vunpack.i.l.bf16 %v2842_v25  ;;  %v2844_v26 = vunpack.i.h.bf16 %v2842_v25 }
 0xbd2   :  { %1474 = vmatpush.msra.mxu1 %v2843_v42 }
 0xbd4   :  { %1475 = vmatpush.msra.mxu1 %v2844_v26 }
 0xbd6   :  { %2732 = vmatpush.xpose.msk.msrb.mxu1 %vm118_vm2, %v1600_v27  ;;  %2723 = vmatmul.msk.f32.gmra.mxu3 %vm118_vm2, %v1393_v19 }
 0xbd7   :  { %v1496_v29 = vpop.permute.xlu1 %1495 }
 0xbd8   :  { %2729 = vmatmul.msk.f32.gmra.mxu0 %vm118_vm2, %v1496_v29 }
 0xbda   :  { %2733 = vmatpush.xpose.msk.msrb.mxu1 %vm118_vm2, %v1598_v21 }
 0xbdf   :  { %v1700_v30 = vpop.permute.xlu1 %1699 }
 0xbe0   :  { %2738 = vmatpush.xpose.msk.msrb.mxu0 %vm118_vm2, %v1700_v30 }
 0xbe7   :  { %v1698_v31 = vpop.permute.xlu1 %1697 }
 0xbe8   :  { %2739 = vmatpush.xpose.msk.msrb.mxu0 %vm118_vm2, %v1698_v31 }
 0xbef   :  { %v1596_v59 = vpop.permute.xlu1 %1595 }
 0xc48   :  { %v1526_v32 = vpop.f32.mrf.mxu0 }
 0xc49   :  { %v1532_v33 = vmul.f32 0.35355338, %v1526_v32 }
 0xc4b   :  { %v1534_v28 = vadd.f32 %v3562_v34, %v1532_v33 }
 0xc4d   :  { %v1536_v35 = vsel %vm46_vm0, %v1534_v28, -inf }
 0xc4e   :  { %1537 = vmax.xlane.f32.xlu1 %v1536_v35 }
 0xc51   :  { %v1426_v37 = vpop.f32.mrf.mxu3 }
 0xc52   :  { %v1432_v38 = vmul.f32 0.35355338, %v1426_v37 }
 0xc54   :  { %v1434_v39 = vadd.f32 %v3562_v34, %v1432_v38 }
 0xc55   :  { %v1529_v47 = vpop.f32.mrf.mxu0 }
 0xc56   :  { %v1436_v40 = vsel %vm46_vm0, %v1434_v39, -inf  ;;  %v1533_v48 = vmul.f32 0.35355338, %v1529_v47 }
 0xc57   :  { %1437 = vmax.xlane.f32.xlu2 %v1436_v40 }
 0xc58   :  { %v1535_v49 = vadd.f32 %v3571_v44, %v1533_v48 }
 0xc59   :  { %v1429_v41 = vpop.f32.mrf.mxu3 }
 0xc5a   :  { %v1433_v43 = vmul.f32 0.35355338, %v1429_v41  ;;  %v1539_v50 = vsel %vm46_vm0, %v1535_v49, -inf }
 0xc5c   :  { %v1435_v45 = vadd.f32 %v3571_v44, %v1433_v43 }
 0xc5e   :  { %v1439_v46 = vsel %vm46_vm0, %v1435_v45, -inf }
 0xc5f   :  { %1440 = vmax.xlane.f32.xlu0 %v1439_v46 }
 0xc6f   :  { %1693 = vrot.lane.b32.xlu2 %v1390_v16, %s3126_s13 }
 0xc73   :  { %1593 = vrot.lane.b32.xlu0 %v1390_v16, %s3124_s11 }
 0xc77   :  { %1695 = vrot.lane.b32.xlu2 %v1393_v19, %s3126_s13 }
 0xc7b   :  { %2846 = vrot.lane.b32.xlu0 %v3537_v20, %s3128_s19 }
 0xca0   :  { %1540 = vmax.xlane.f32.xlu2 %v1539_v50 }
 0xcc1   :  { %v1538_v61 = vpop.xlane.xlu1 %1537 }
 0xcc2   :  { %v1542_v12 = vsub.f32 %v1534_v28, %v1538_v61 }
 0xcc4   :  { %v1544_v63 = vmul.f32 1.442695, %v1542_v12 }
 0xcca   :  { %v1438_v51 = vpop.xlane.xlu2 %1437 }
 0xccb   :  { %v1442_v52 = vsub.f32 %v1434_v39, %v1438_v51 }
 0xccd   :  { %v1444_v53 = vmul.f32 1.442695, %v1442_v52 }
 0xccf   :  { %2983 = vpow2.f32 %v1444_v53 }
 0xcd2   :  { %v1694_v54 = vpop.permute.xlu2 %1693  ;;  %v1441_v55 = vpop.xlane.xlu0 %1440 }
 0xcd3   :  { %v1443_v56 = vsub.f32 %v1435_v45, %v1441_v55  ;;  %2740 = vmatmul.msk.f32.vlgmr.msrb.gmra.mxu0 %vm118_vm2, %v1694_v54 }
 0xcd5   :  { %v3583_v57 = vpop.eup %2983  ;;  %v1446_v58 = vmul.f32 1.442695, %v1443_v56 }
 0xcd6   :  { %2724 = vmatmul.msk.f32.vlgmr.msra.gmra.mxu1 %vm46_vm0, %v3583_v57 }
 0xcd7   :  { %2985 = vpow2.f32 %v1446_v58  ;;  %v1483_v58 = vsel %vm46_vm0, %v3583_v57, 0.0 }
 0xcd8   :  { %2987 = vpow2.f32 %v1544_v63 }
 0xcda   :  { %v1696_v10 = vpop.permute.xlu2 %1695 }
 0xcdb   :  { %2741 = vmatmul.msk.f32.gmra.mxu0 %vm118_vm2, %v1696_v10 }
 0xcdd   :  { %v3588_v60 = vpop.eup %2985 }
 0xcde   :  { %2725 = vmatmul.msk.f32.gmra.mxu1 %vm46_vm0, %v3588_v60  ;;  %v2988_v3 = vpop.eup %2987  ;;  %v1486_v10 = vsel %vm46_vm0, %v3588_v60, 0.0 }
 0xcdf   :  { %v1583_v30 = vsel %vm46_vm0, %v2988_v3, 0.0 }
 0xce5   :  { %v1594_v62 = vpop.permute.xlu0 %1593 }
 0xce6   :  { %2734 = vmatmul.msk.f32.vlgmr.msrb.gmra.mxu1 %vm118_vm2, %v1594_v62 }
 0xced   :  { %v2847_v0 = vpop.permute.xlu0 %2846 }
 0xcee   :  { %v2848_v1 = vunpack.i.l.bf16 %v2847_v0  ;;  %2735 = vmatmul.msk.f32.gmra.mxu1 %vm118_vm2, %v1596_v59  ;;  %v2849_v2 = vunpack.i.h.bf16 %v2847_v0 }
 0xcf0   :  { %1574 = vmatpush.msra.mxu3 %v2848_v1 }
 0xcf2   :  { %1575 = vmatpush.msra.mxu3 %v2849_v2 }
 0xcf3   :  { %2730 = vmatmul.msk.f32.vlgmr.msra.gmra.mxu3 %vm46_vm0, %v2988_v3 }
 0xd13   :  { %v1541_v4 = vpop.xlane.xlu2 %1540 }
 0xd14   :  { %v1543_v6 = vsub.f32 %v1535_v49, %v1541_v4 }
 0xd16   :  { %v1546_v7 = vmul.f32 1.442695, %v1543_v6 }
 0xd18   :  { %2989 = vpow2.f32 %v1546_v7 }
 0xd1e   :  { %v2990_v8 = vpop.eup %2989 }
 0xd1f   :  { %2731 = vmatmul.msk.f32.gmra.mxu3 %vm46_vm0, %v2990_v8  ;;  %v1586_v31 = vsel %vm46_vm0, %v2990_v8, 0.0 }
 0xd50   :  { %v1726_v9 = vpop.f32.mrf.mxu0 }
 0xd51   :  { %v1732_v11 = vmul.f32 0.35355338, %v1726_v9 }
 0xd53   :  { %v3596_v14 = vpop.f32.mrf.mxu1  ;;  %v1734_v15 = vadd.f32 %v3562_v34, %v1732_v11 }
 0xd55   :  { %v1736_v16 = vsel %vm46_vm0, %v1734_v15, -inf }
 0xd56   :  { %1737 = vmax.xlane.f32.xlu1 %v1736_v16 }
 0xd58   :  { %v1729_v24 = vpop.f32.mrf.mxu0 }
 0xd59   :  { %v1733_v42 = vmul.f32 0.35355338, %v1729_v24 }
 0xd5b   :  { %v3600_v17 = vpop.f32.mrf.mxu1  ;;  %v1735_v27 = vadd.f32 %v3571_v44, %v1733_v42  ;;  %v1825_v42 = vld [vmem:[#allocation2 + $0x128] sm:$0xff] }
 0xd5d   :  { %v1739_v29 = vsel %vm46_vm0, %v1735_v27, -inf }
 0xd63   :  { %v1626_v19 = vpop.f32.mrf.mxu1 }
 0xd64   :  { %v1632_v36 = vmul.f32 0.35355338, %v1626_v19 }
 0xd66   :  { %v1634_v21 = vadd.f32 %v3562_v34, %v1632_v36 }
 0xd68   :  { %v1636_v18 = vsel %vm46_vm0, %v1634_v21, -inf }
 0xd69   :  { %1637 = vmax.xlane.f32.xlu0 %v1636_v18 }
 0xd6b   :  { %v1629_v22 = vpop.f32.mrf.mxu1 }
 0xd6c   :  { %v1633_v23 = vmul.f32 0.35355338, %v1629_v22 }
 0xd6e   :  { %v1635_v25 = vadd.f32 %v3571_v44, %v1633_v23 }
 0xd6f   :  { %2851 = vrot.lane.b32.xlu1 %v3537_v20, %s3119_s21 }
 0xd70   :  { %v1639_v26 = vsel %vm46_vm0, %v1635_v25, -inf }
 0xd71   :  { %1640 = vmax.xlane.f32.xlu2 %v1639_v26  ;;  %v1824_v26 = vld [vmem:[#allocation2 + $0xf8] sm:$0xff] }
 0xd76   :  { %v1577_v63 = vpop.f32.mrf.mxu3 }
 0xd79   :  { %1740 = vmax.xlane.f32.xlu2 %v1739_v29 }
 0xd7d   :  { %2856 = vrot.lane.b32.xlu0 %v3537_v20, %s3129_s20 }
 0xd81   :  { %1584 = vadd.xlane.f32.xlu2 %v1583_v30 }
 0xd89   :  { %1587 = vadd.xlane.f32.xlu2 %v1586_v31 }
 0xda2   :  { %v1580_v2 = vpop.f32.mrf.mxu3 }
 0xdc9   :  { %v1738_v32 = vpop.xlane.xlu1 %1737 }
 0xdca   :  { %v1742_v33 = vsub.f32 %v1734_v15, %v1738_v32 }
 0xdcc   :  { %v1744_v34 = vmul.f32 1.442695, %v1742_v33 }
 0xdce   :  { %2991 = vpow2.f32 %v1744_v34 }
 0xdd4   :  { %v2992_v28 = vpop.eup %2991 }
 0xdd5   :  { %v1783_v35 = vsel %vm46_vm0, %v2992_v28, 0.0 }
 0xdd6   :  { %1784 = vadd.xlane.f32.xlu1 %v1783_v35 }
 0xddc   :  { %v1638_v37 = vpop.xlane.xlu0 %1637 }
 0xddd   :  { %v1642_v38 = vsub.f32 %v1634_v21, %v1638_v37 }
 0xddf   :  { %v1644_v39 = vmul.f32 1.442695, %v1642_v38 }
 0xde1   :  { %2993 = vpow2.f32 %v1644_v39  ;;  %v2852_v40 = vpop.permute.xlu1 %2851 }
 0xde2   :  { %v2853_v20 = vunpack.i.l.bf16 %v2852_v40  ;;  %v2854_v41 = vunpack.i.h.bf16 %v2852_v40 }
 0xde4   :  { %1674 = vmatpush.msra.mxu2 %v2853_v20  ;;  %v1641_v43 = vpop.xlane.xlu2 %1640 }
 0xde5   :  { %v1643_v44 = vsub.f32 %v1635_v25, %v1641_v43  ;;  %v1826_v25 = vld [vmem:[#allocation2 + $0x158] sm:$0xff] }
 0xde6   :  { %1675 = vmatpush.msra.mxu2 %v2854_v41  ;;  %1847 = vmatpush.msra.mxu1 %v1826_v25 }
 0xde7   :  { %v2994_v45 = vpop.eup %2993  ;;  %v1646_v46 = vmul.f32 1.442695, %v1643_v44 }
 0xde8   :  { %2736 = vmatmul.msk.f32.vlgmr.msra.gmra.mxu2 %vm46_vm0, %v2994_v45  ;;  %v1683_v59 = vsel %vm46_vm0, %v2994_v45, 0.0  ;;  %1848 = vmatpush.msra.mxu1 %v1825_v42  ;;  %v1954_v45 = vld [vmem:[#allocation2 + $0x168] sm:$0xff] }
 0xde9   :  { %2995 = vpow2.f32 %v1646_v46  ;;  %v1953_v46 = vld [vmem:[#allocation2 + $0x138] sm:$0xff]  ;;  %1969 = vmatpush.msra.mxu0 %v1954_v45 }
 0xdea   :  { %1849 = vmatpush.msra.mxu1 %v1824_v26 }
 0xdeb   :  { %1970 = vmatpush.msra.mxu0 %v1953_v46 }
 0xdec   :  { %v1741_v47 = vpop.xlane.xlu2 %1740 }
 0xded   :  { %v1743_v48 = vsub.f32 %v1735_v27, %v1741_v47  ;;  %v1823_v27 = vld [vmem:[#allocation2 + $0xc8] sm:$0xff] }
 0xdee   :  { %1850 = vmatpush.msra.mxu1 %v1823_v27  ;;  %v1952_v47 = vld [vmem:[#allocation2 + $0x108] sm:$0xff] }
 0xdef   :  { %v2996_v49 = vpop.eup %2995  ;;  %v1746_v50 = vmul.f32 1.442695, %v1743_v48  ;;  %v2857_v51 = vpop.permute.xlu0 %2856  ;;  %v1951_v48 = vld [vmem:[#allocation2 + $0xd8] sm:$0xff]  ;;  %1971 = vmatpush.msra.mxu0 %v1952_v47 }
 0xdf0   :  { %v2858_v52 = vunpack.i.l.bf16 %v2857_v51  ;;  %2737 = vmatmul.msk.f32.gmra.mxu2 %vm46_vm0, %v2996_v49  ;;  %v1686_v53 = vsel %vm46_vm0, %v2996_v49, 0.0  ;;  %v2859_v54 = vunpack.i.h.bf16 %v2857_v51  ;;  %v2895_v49 = vld [vmem:[%s3889_s3 + $0x11] ss:$0 sm:$0xff]  ;;  %v3062_v51 = vld [vmem:[%s3886_s0 + $0x18] sm:$0xff] }
 0xdf1   :  { %2997 = vpow2.f32 %v1746_v50  ;;  %1687 = vadd.xlane.f32.xlu0 %v1686_v53  ;;  %1972 = vmatpush.msra.mxu0 %v1951_v48 }
 0xdf2   :  { %1774 = vmatpush.msrb.mxu3 %v2858_v52 }
 0xdf4   :  { %1775 = vmatpush.msrb.mxu3 %v2859_v54  ;;  %v1585_v61 = vpop.xlane.xlu2 %1584 }
 0xdf5   :  { %2742 = vmatmul.msk.f32.vlgmr.msrb.gmra.mxu3 %vm46_vm0, %v2992_v28  ;;  %2999 = vrcp.f32 %v1585_v61 }
 0xdf7   :  { %v2998_v55 = vpop.eup %2997 }
 0xdf8   :  { %v1786_v56 = vsel %vm46_vm0, %v2998_v55, 0.0 }
 0xdf9   :  { %1787 = vadd.xlane.f32.xlu2 %v1786_v56 }
 0xdfb   :  { %v3000_v62 = vpop.eup %2999 }
 0xdfc   :  { %v1588_v12 = vpop.xlane.xlu2 %1587  ;;  %v1591_v0 = vmul.f32 %v3000_v62, %v1577_v63  ;;  %v1919_v62 = vld [vmem:[#allocation2 + $0x160] sm:$0xff]  ;;  %v1918_v63 = vld [vmem:[#allocation2 + $0x130] sm:$0xff] }
 0xdfd   :  { %2743 = vmatmul.msk.f32.gmra.mxu3 %vm46_vm0, %v2998_v55  ;;  %3001 = vrcp.f32 %v1588_v12  ;;  %1940 = vmatpush.msrb.mxu2 %v1919_v62  ;;  %v3732_v62 = vld [vmem:[%s3886_s0 + $0x30] sm:$0xff] }
 0xdff   :  { %1941 = vmatpush.msrb.mxu2 %v1918_v63 }
 0xe01   :  { %1484 = vadd.xlane.f32.xlu2 %v1483_v58 }
 0xe03   :  { %v3002_v1 = vpop.eup %3001 }
 0xe04   :  { %v1592_v57 = vmul.f32 %v3002_v1, %v1580_v2  ;;  %v1916_v2 = vld [vmem:[#allocation2 + $0xd0] sm:$0xff] }
 0xe09   :  { %1684 = vadd.xlane.f32.xlu2 %v1683_v59 }
 0xe11   :  { %1487 = vadd.xlane.f32.xlu2 %v1486_v10 }
 0xe29   :  { %1795 = vrot.lane.b32.xlu2 %v1591_v0, %s3130_s22  ;;  %v1917_v0 = vld [vmem:[#allocation2 + $0x100] sm:$0xff] }
 0xe2a   :  { %1942 = vmatpush.msrb.mxu2 %v1917_v0 }
 0xe2c   :  { %1943 = vmatpush.msrb.mxu2 %v1916_v2 }
 0xe31   :  { %1797 = vrot.lane.b32.xlu2 %v1592_v57, %s3130_s22 }
 0xe49   :  { %v1785_v4 = vpop.xlane.xlu1 %1784 }
 0xe4a   :  { %3003 = vrcp.f32 %v1785_v4 }
 0xe50   :  { %v3004_v8 = vpop.eup %3003 }
 0xe64   :  { %v1688_v7 = vpop.xlane.xlu0 %1687 }
 0xe65   :  { %3005 = vrcp.f32 %v1688_v7 }
 0xe6b   :  { %v1677_v6 = vpop.f32.mrf.mxu2  ;;  %v3006_v19 = vpop.eup %3005 }
 0xe6c   :  { %v1788_v3 = vpop.xlane.xlu2 %1787 }
 0xe6d   :  { %3007 = vrcp.f32 %v1788_v3 }
 0xe73   :  { %v1680_v16 = vpop.f32.mrf.mxu2  ;;  %v3008_v36 = vpop.eup %3007 }
 0xe74   :  { %v1485_v60 = vpop.xlane.xlu2 %1484  ;;  %v1692_v18 = vmul.f32 %v3006_v19, %v1680_v16 }
 0xe78   :  { %v1777_v9 = vpop.f32.mrf.mxu3 }
 0xe79   :  { %v1791_v11 = vmul.f32 %v3004_v8, %v1777_v9  ;;  %v2898_v9 = vld [vmem:[%s3889_s3 + $0x13] ss:$0 sm:$0xff] }
 0xe7b   :  { %1811 = vrot.lane.b32.xlu0 %v1791_v11, %s3132_s24 }
 0xe7c   :  { %v1685_v15 = vpop.xlane.xlu2 %1684 }
 0xe7d   :  { %3009 = vrcp.f32 %v1685_v15 }
 0xe7e   :  { %3011 = vrcp.f32 %v1485_v60 }
 0xe80   :  { %v1780_v21 = vpop.f32.mrf.mxu3 }
 0xe81   :  { %v1792_v22 = vmul.f32 %v3008_v36, %v1780_v21 }
 0xe83   :  { %v3010_v23 = vpop.eup %3009  ;;  %1805 = vrot.lane.b32.xlu0 %v1692_v18, %s3131_s23  ;;  %1813 = vrot.lane.b32.xlu2 %v1792_v22, %s3132_s24 }
 0xe84   :  { %v1691_v24 = vmul.f32 %v3010_v23, %v1677_v6  ;;  %v1488_v29 = vpop.xlane.xlu2 %1487  ;;  %v3012_v32 = vpop.eup %3011 }
 0xe85   :  { %3013 = vrcp.f32 %v1488_v29  ;;  %v1491_v33 = vmul.f32 %v3012_v32, %v3596_v14 }
 0xe86   :  { %1803 = vrot.lane.b32.xlu1 %v1691_v24, %s3131_s23 }
 0xe8b   :  { %v3014_v35 = vpop.eup %3013 }
 0xe8c   :  { %v1796_v30 = vpop.permute.xlu2 %1795  ;;  %v1492_v40 = vmul.f32 %v3014_v35, %v3600_v17  ;;  %v3061_v17 = vld [vmem:[%s3886_s0 + $0x10] sm:$0xff] }
 0xe8d   :  { %v1817_v34 = vsel %vm118_vm2, %v1491_v33, %v1796_v30  ;;  %2748 = vmatmul.msk.f32.vlgmr.msra.gmra.mxu0 %vm82_vm1, %v3061_v17  ;;  %v2896_v33 = vld [vmem:[%s3889_s3 + $0x17] ss:$0 sm:$0xff]  ;;  %v2899_v17 = vld [vmem:[%s3889_s3 + $0x12] ss:$0 sm:$0xff] }
 0xe94   :  { %v1798_v37 = vpop.permute.xlu2 %1797 }
 0xe95   :  { %v1818_v41 = vsel %vm118_vm2, %v1492_v40, %v1798_v37  ;;  %2749 = vmatmul.msk.f32.gmra.mxu0 %vm82_vm1, %v3062_v51  ;;  %v2897_v37 = vld [vmem:[%s3889_s3 + $0x18] ss:$0 sm:$0xff] }
 0xedd   :  { %v1814_v44 = vpop.permute.xlu2 %1813 }
 0xeed   :  { %v1812_v31 = vpop.permute.xlu0 %1811 }
 0xef5   :  { %v1806_v20 = vpop.permute.xlu0 %1805 }
 0xef6   :  { %v1820_v43 = vsel %vm46_vm0, %v1818_v41, %v1806_v20 }
 0xef7   :  { %v1822_v14 = vsel %vm539_vm3, %v1820_v43, %v1814_v44 }
 0xef8   :  { %v1804_v28 = vpop.permute.xlu1 %1803 }
 0xef9   :  { %v1819_v38 = vsel %vm46_vm0, %v1817_v34, %v1804_v28 }
 0xefa   :  { %v1821_v39 = vsel %vm539_vm3, %v1819_v38, %v1812_v31 }
 0xefb   :  { %2744 = vmatmul.msk.f32.vlgmr.msra.gmra.mxu1 %vm82_vm1, %v1821_v39 }
 0xf03   :  { %2745 = vmatmul.msk.f32.gmra.mxu1 %vm82_vm1, %v1822_v14 }
 0xf0a   :  { %v1974_v11 = vpop.f32.mrf.mxu0 }
 0xf0b   :  { %v3672_v36 = vadd.f32 %v2898_v9, %v1974_v11 }
 0xf12   :  { %v1977_v24 = vpop.f32.mrf.mxu0 }
 0xf13   :  { %v3676_v42 = vadd.f32 %v2898_v9, %v1977_v24 }
 0xf15   :  { %2750 = vmatpush.xpose.msk.msra.mxu3 %vm118_vm2, %v3676_v42 }
 0xf19   :  { %2751 = vmatpush.xpose.msk.msra.mxu3 %vm118_vm2, %v3672_v36 }
 0xf78   :  { %v1852_v50 = vpop.f32.mrf.mxu1 }
 0xf79   :  { %v1853_v52 = vadd.f32 %v2895_v49, %v1852_v50 }
 0xf7b   :  { %v3654_v53 = vadd.f32 %v1853_v52, %v3521_v5 }
 0xf7d   :  { %v1862_v54 = vsel %vm82_vm1, %v3654_v53, 0.0  ;;  %v1870_v55 = vmul.f32 %v3654_v53, %v3654_v53 }
 0xf7e   :  { %1863 = vadd.xlane.f32.xlu1 %v1862_v54 }
 0xf7f   :  { %v1872_v56 = vsel %vm82_vm1, %v1870_v55, 0.0 }
 0xf80   :  { %1873 = vadd.xlane.f32.xlu0 %v1872_v56  ;;  %v1855_v58 = vpop.f32.mrf.mxu1 }
 0xf81   :  { %v1856_v59 = vadd.f32 %v2895_v49, %v1855_v58 }
 0xf83   :  { %v3662_v10 = vadd.f32 %v1856_v59, %v3525_v13 }
 0xf85   :  { %v1865_v61 = vsel %vm82_vm1, %v3662_v10, 0.0  ;;  %v1871_v5 = vmul.f32 %v3662_v10, %v3662_v10 }
 0xf86   :  { %1866 = vadd.xlane.f32.xlu2 %v1865_v61 }
 0xf87   :  { %v1875_v12 = vsel %vm82_vm1, %v1871_v5, 0.0 }
 0xf88   :  { %1876 = vadd.xlane.f32.xlu1 %v1875_v12 }
 0xf94   :  { %2082 = vrot.lane.b32.xlu0 %v3676_v42, %s3120_s7 }
 0xf9c   :  { %2282 = vrot.lane.b32.xlu0 %v3676_v42, %s3126_s13 }
 0xf9e   :  { %2080 = vrot.lane.b32.xlu2 %v3672_v36, %s3120_s7 }
 0xfa6   :  { %2182 = vrot.lane.b32.xlu2 %v3676_v42, %s3124_s11 }
 0xfae   :  { %2280 = vrot.lane.b32.xlu2 %v3672_v36, %s3126_s13 }
 0xff1   :  { %v1864_v1 = vpop.xlane.xlu1 %1863 }
 0xff2   :  { %v1868_v13 = vmul.f32 0.03125, %v1864_v1 }
 0xff3   :  { %v1874_v57 = vpop.xlane.xlu0 %1873 }
 0xff4   :  { %v1880_v3 = vmul.f32 %v1868_v13, %v1868_v13  ;;  %v1878_v4 = vmul.f32 0.03125, %v1874_v57  ;;  %v1884_v32 = vsub.f32 %v3654_v53, %v1868_v13 }
 0xff6   :  { %v1882_v6 = vsub.f32 %v1878_v4, %v1880_v3  ;;  %v3064_v3 = vld [vmem:[%s3886_s0 + $0x38] sm:$0xff] }
 0xff8   :  { %v1886_v60 = vadd.f32 1e-05, %v1882_v6 }
 0xff9   :  { %v1867_v7 = vpop.xlane.xlu2 %1866 }
 0xffa   :  { %3015 = vrsqrt.f32 %v1886_v60  ;;  %v1869_v8 = vmul.f32 0.03125, %v1867_v7  ;;  %vm1894_vm11 = vweird.f32 %v1886_v60 }
 0xffb   :  { %v1877_v15 = vpop.xlane.xlu1 %1876 }
 0xffc   :  { %v1881_v16 = vmul.f32 %v1869_v8, %v1869_v8  ;;  %v1879_v19 = vmul.f32 0.03125, %v1877_v15  ;;  %v1885_v43 = vsub.f32 %v3662_v10, %v1869_v8 }
 0xffe   :  { %v1883_v21 = vsub.f32 %v1879_v19, %v1881_v16 }
0x1000   :  { %v3016_v18 = vpop.eup %3015  ;;  %v1887_v22 = vadd.f32 1e-05, %v1883_v21 }
0x1001   :  { %v1889_v23 = vmul.f32 %v3016_v18, %v1886_v60  ;;  %vm1895_vm10 = vweird.f32 %v3016_v18  ;;  %v2081_v47 = vpop.permute.xlu2 %2080  ;;  %v2860_v60 = vpack.i.bf16 %v3672_v36, %v3676_v42 }
0x1002   :  { %3017 = vrsqrt.f32 %v1887_v22  ;;  %vm1896_vm12 = vmor %vm1894_vm11, %vm1895_vm10  ;;  %vm1904_vm14 = vweird.f32 %v1887_v22 }
0x1003   :  { %v1890_v25 = vmul.f32 %v3016_v18, %v1889_v23 }
0x1005   :  { %v1891_v26 = vmul.f32 0.5, %v1890_v25 }
0x1006   :  { %v2083_v48 = vpop.permute.xlu0 %2082 }
0x1007   :  { %v1892_v27 = vsub.f32 1.5, %v1891_v26  ;;  %2756 = vmatpush.xpose.msk.msra.mxu2 %vm118_vm2, %v2083_v48 }
0x1008   :  { %v3018_v29 = vpop.eup %3017 }
0x1009   :  { %v1893_v30 = vmul.f32 %v3016_v18, %v1892_v27  ;;  %v1899_v31 = vmul.f32 %v3018_v29, %v1887_v22  ;;  %vm1905_vm13 = vweird.f32 %v3018_v29  ;;  %v2183_v51 = vpop.permute.xlu2 %2182 }
0x100a   :  { %vm1906_vm15 = vmor %vm1904_vm14, %vm1905_vm13  ;;  %2762 = vmatpush.xpose.msk.msrb.mxu3 %vm118_vm2, %v2183_v51 }
0x100b   :  { %v1897_v34 = vsel %vm1896_vm12, %v3016_v18, %v1893_v30  ;;  %v1900_v28 = vmul.f32 %v3018_v29, %v1899_v31  ;;  %2757 = vmatpush.xpose.msk.msra.mxu2 %vm118_vm2, %v2081_v47 }
0x100c   :  { %v1908_v35 = vmul.f32 %v1897_v34, %v1884_v32 }
0x100d   :  { %v1901_v38 = vmul.f32 0.5, %v1900_v28 }
0x100e   :  { %v1911_v39 = vmul.f32 %v2896_v33, %v1908_v35  ;;  %v2283_v52 = vpop.permute.xlu0 %2282 }
0x100f   :  { %v1902_v40 = vsub.f32 1.5, %v1901_v38 }
0x1010   :  { %v3697_v20 = vadd.f32 %v2897_v37, %v1911_v39 }
0x1011   :  { %v1903_v41 = vmul.f32 %v3018_v29, %v1902_v40  ;;  %v2281_v55 = vpop.permute.xlu2 %2280 }
0x1012   :  { %2746 = vmatmul.msk.f32.vlgmr.msrb.gmra.mxu2 %vm82_vm1, %v3697_v20 }
0x1013   :  { %v1907_v44 = vsel %vm1906_vm15, %v3018_v29, %v1903_v41  ;;  %2768 = vmatpush.xpose.msk.msrb.mxu2 %vm118_vm2, %v2283_v52 }
0x1014   :  { %v1909_v14 = vmul.f32 %v1907_v44, %v1885_v43 }
0x1016   :  { %v1912_v45 = vmul.f32 %v2896_v33, %v1909_v14 }
0x1017   :  { %2769 = vmatpush.xpose.msk.msrb.mxu2 %vm118_vm2, %v2281_v55 }
0x1018   :  { %v3702_v46 = vadd.f32 %v2897_v37, %v1912_v45 }
0x101a   :  { %2747 = vmatmul.msk.f32.gmra.mxu2 %vm82_vm1, %v3702_v46 }
0x1095   :  { %v1945_v49 = vpop.f32.mrf.mxu2 }
0x1096   :  { %v1946_v50 = vadd.f32 %v2899_v17, %v1945_v49 }
0x1098   :  { %2752 = vmatmul.msk.f32.vlgmr.msra.gmra.mxu3 %vm118_vm2, %v1946_v50  ;;  %2076 = vrot.lane.b32.xlu1 %v1946_v50, %s3120_s7 }
0x109d   :  { %v1948_v53 = vpop.f32.mrf.mxu2 }
0x109e   :  { %v1949_v54 = vadd.f32 %v2899_v17, %v1948_v53 }
0x10a0   :  { %2180 = vrot.lane.b32.xlu1 %v3672_v36, %s3124_s11  ;;  %2178 = vrot.lane.b32.xlu2 %v1949_v54, %s3124_s11 }
0x10a1   :  { %2078 = vrot.lane.b32.xlu0 %v1949_v54, %s3120_s7  ;;  %2753 = vmatmul.msk.f32.gmra.mxu3 %vm118_vm2, %v1949_v54 }
0x10a8   :  { %2276 = vrot.lane.b32.xlu1 %v1946_v50, %s3126_s13 }
0x10a9   :  { %2176 = vrot.lane.b32.xlu0 %v1946_v50, %s3124_s11 }
0x10b1   :  { %2278 = vrot.lane.b32.xlu0 %v1949_v54, %s3126_s13 }
0x10fa   :  { %v2179_v1 = vpop.permute.xlu2 %2178 }
0x110a   :  { %v2077_v56 = vpop.permute.xlu1 %2076 }
0x110b   :  { %2758 = vmatmul.msk.f32.vlgmr.msra.gmra.mxu2 %vm118_vm2, %v2077_v56 }
0x1112   :  { %v2181_v58 = vpop.permute.xlu1 %2180 }
0x1113   :  { %v2079_v59 = vpop.permute.xlu0 %2078  ;;  %2763 = vmatpush.xpose.msk.msrb.mxu3 %vm118_vm2, %v2181_v58 }
0x1114   :  { %2759 = vmatmul.msk.f32.gmra.mxu2 %vm118_vm2, %v2079_v59 }
0x111a   :  { %v2277_v10 = vpop.permute.xlu1 %2276 }
0x111b   :  { %v2177_v61 = vpop.permute.xlu0 %2176  ;;  %v2009_v5 = vpop.f32.mrf.mxu3 }
0x111c   :  { %v2015_v12 = vmul.f32 0.35355338, %v2009_v5  ;;  %2764 = vmatmul.msk.f32.vlgmr.msrb.gmra.mxu3 %vm118_vm2, %v2177_v61  ;;  %2770 = vmatmul.msk.f32.vlgmr.msrb.gmra.mxu2 %vm118_vm2, %v2277_v10 }
0x111e   :  { %v2017_v63 = vadd.f32 %v3732_v62, %v2015_v12 }
0x1120   :  { %v2019_v0 = vsel %vm46_vm0, %v2017_v63, -inf }
0x1121   :  { %2020 = vmax.xlane.f32.xlu1 %v2019_v0 }
0x1123   :  { %v2279_v2 = vpop.permute.xlu0 %2278 }
0x1124   :  { %v2012_v13 = vpop.f32.mrf.mxu3  ;;  %2765 = vmatmul.msk.f32.gmra.mxu3 %vm118_vm2, %v2179_v1  ;;  %2771 = vmatmul.msk.f32.gmra.mxu2 %vm118_vm2, %v2279_v2 }
0x1125   :  { %v2016_v57 = vmul.f32 0.35355338, %v2012_v13 }
0x1127   :  { %v2018_v4 = vadd.f32 %v3064_v3, %v2016_v57 }
0x1129   :  { %v2022_v6 = vsel %vm46_vm0, %v2018_v4, -inf }
0x112a   :  { %2023 = vmax.xlane.f32.xlu0 %v2022_v6 }
0x113a   :  { %2861 = vrot.lane.b32.xlu1 %v2860_v60, %s3122_s9 }
0x113e   :  { %2866 = vrot.lane.b32.xlu0 %v2860_v60, %s3121_s8 }
0x118e   :  { %v2109_v7 = vpop.f32.mrf.mxu2 }
0x118f   :  { %v2115_v8 = vmul.f32 0.35355338, %v2109_v7 }
0x1191   :  { %v2117_v9 = vadd.f32 %v3732_v62, %v2115_v8 }
0x1193   :  { %v2119_v11 = vsel %vm46_vm0, %v2117_v9, -inf }
0x1194   :  { %2120 = vmax.xlane.f32.xlu2 %v2119_v11  ;;  %v2021_v21 = vpop.xlane.xlu1 %2020 }
0x1195   :  { %v2025_v36 = vsub.f32 %v2017_v63, %v2021_v21 }
0x1197   :  { %v2112_v15 = vpop.f32.mrf.mxu2  ;;  %v2027_v26 = vmul.f32 1.442695, %v2025_v36 }
0x1198   :  { %v2116_v24 = vmul.f32 0.35355338, %v2112_v15 }
0x1199   :  { %3019 = vpow2.f32 %v2027_v26 }
0x119a   :  { %v2118_v30 = vadd.f32 %v3064_v3, %v2116_v24 }
0x119c   :  { %v2122_v37 = vsel %vm46_vm0, %v2118_v30, -inf }
0x119d   :  { %v2024_v22 = vpop.xlane.xlu0 %2023 }
0x119e   :  { %v2026_v25 = vsub.f32 %v2018_v4, %v2024_v22 }
0x119f   :  { %v2209_v16 = vpop.f32.mrf.mxu3  ;;  %v2309_v19 = vpop.f32.mrf.mxu2 }
0x11a0   :  { %v2215_v18 = vmul.f32 0.35355338, %v2209_v16  ;;  %v2029_v31 = vmul.f32 1.442695, %v2026_v25  ;;  %v3020_v44 = vpop.eup %3019  ;;  %v2315_v49 = vmul.f32 0.35355338, %v2309_v19 }
0x11a1   :  { %v2066_v48 = vsel %vm46_vm0, %v3020_v44, 0.0 }
0x11a2   :  { %v2217_v23 = vadd.f32 %v3732_v62, %v2215_v18  ;;  %3021 = vpow2.f32 %v2029_v31  ;;  %v2317_v50 = vadd.f32 %v3732_v62, %v2315_v49 }
0x11a4   :  { %v2219_v42 = vsel %vm46_vm0, %v2217_v23, -inf  ;;  %v2319_v51 = vsel %vm46_vm0, %v2317_v50, -inf }
0x11a5   :  { %2220 = vmax.xlane.f32.xlu2 %v2219_v42 }
0x11a7   :  { %v2212_v27 = vpop.f32.mrf.mxu3  ;;  %v2312_v29 = vpop.f32.mrf.mxu2 }
0x11a8   :  { %v2216_v32 = vmul.f32 0.35355338, %v2212_v27  ;;  %v2316_v33 = vmul.f32 0.35355338, %v2312_v29  ;;  %v3022_v45 = vpop.eup %3021 }
0x11a9   :  { %v2069_v17 = vsel %vm46_vm0, %v3022_v45, 0.0 }
0x11aa   :  { %v2218_v34 = vadd.f32 %v3064_v3, %v2216_v32  ;;  %v2318_v28 = vadd.f32 %v3064_v3, %v2316_v33 }
0x11ac   :  { %v2862_v35 = vpop.permute.xlu1 %2861  ;;  %v2322_v38 = vsel %vm46_vm0, %v2318_v28, -inf  ;;  %v2222_v39 = vsel %vm46_vm0, %v2218_v34, -inf }
0x11ad   :  { %v2863_v40 = vunpack.i.l.bf16 %v2862_v35  ;;  %2123 = vmax.xlane.f32.xlu2 %v2122_v37  ;;  %2323 = vmax.xlane.f32.xlu0 %v2322_v38  ;;  %v2864_v41 = vunpack.i.h.bf16 %v2862_v35 }
0x11ae   :  { %2223 = vmax.xlane.f32.xlu1 %v2222_v39 }
0x11af   :  { %2057 = vmatpush.msrb.mxu1 %v2863_v40 }
0x11b0   :  { %v2867_v43 = vpop.permute.xlu0 %2866 }
0x11b1   :  { %v2868_v14 = vunpack.i.l.bf16 %v2867_v43  ;;  %2058 = vmatpush.msrb.mxu1 %v2864_v41  ;;  %v2869_v47 = vunpack.i.h.bf16 %v2867_v43 }
0x11b2   :  { %2754 = vmatmul.msk.f32.vlgmr.msrb.gmra.mxu1 %vm46_vm0, %v3020_v44 }
0x11b3   :  { %2157 = vmatpush.msrb.mxu0 %v2868_v14 }
0x11b5   :  { %2158 = vmatpush.msrb.mxu0 %v2869_v47  ;;  %2067 = vadd.xlane.f32.xlu0 %v2066_v48 }
0x11b6   :  { %2070 = vadd.xlane.f32.xlu1 %v2069_v17 }
0x11ba   :  { %2755 = vmatmul.msk.f32.gmra.mxu1 %vm46_vm0, %v3022_v45 }
0x11c5   :  { %2871 = vrot.lane.b32.xlu2 %v2860_v60, %s3123_s10 }
0x11ee   :  { %2320 = vmax.xlane.f32.xlu2 %v2319_v51 }
0x1206   :  { %2876 = vrot.lane.b32.xlu2 %v2860_v60, %s3125_s12 }
0x1207   :  { %v2121_v52 = vpop.xlane.xlu2 %2120 }
0x1208   :  { %v2125_v53 = vsub.f32 %v2117_v9, %v2121_v52 }
0x120a   :  { %v2127_v54 = vmul.f32 1.442695, %v2125_v53 }
0x120c   :  { %3023 = vpow2.f32 %v2127_v54  ;;  %v2409_v54 = vld [vmem:[#allocation2 + $0x170] sm:$0xff] }
0x120d   :  { %2430 = vmatpush.msra.mxu3 %v2409_v54 }
0x1212   :  { %v3024_v55 = vpop.eup %3023 }
0x1213   :  { %2760 = vmatmul.msk.f32.vlgmr.msrb.gmra.mxu0 %vm46_vm0, %v3024_v55  ;;  %v2166_v11 = vsel %vm46_vm0, %v3024_v55, 0.0  ;;  %v2408_v55 = vld [vmem:[#allocation2 + $0x140] sm:$0xff] }
0x1214   :  { %2431 = vmatpush.msra.mxu3 %v2408_v55  ;;  %v2543_v55 = vld [vmem:[%s3888_s2 + $0xb8] sm:$0xff] }
0x1218   :  { %v2221_v56 = vpop.xlane.xlu2 %2220 }
0x1219   :  { %v2225_v58 = vsub.f32 %v2217_v23, %v2221_v56  ;;  %v2407_v56 = vld [vmem:[#allocation2 + $0x110] sm:$0xff] }
0x121a   :  { %2432 = vmatpush.msra.mxu3 %v2407_v56 }
0x121b   :  { %v2227_v59 = vmul.f32 1.442695, %v2225_v58  ;;  %v2406_v58 = vld [vmem:[#allocation2 + $0xe0] sm:$0xff] }
0x121c   :  { %2433 = vmatpush.msra.mxu3 %v2406_v58 }
0x121d   :  { %3025 = vpow2.f32 %v2227_v59 }
0x1220   :  { %v2124_v10 = vpop.xlane.xlu2 %2123  ;;  %v2324_v12 = vpop.xlane.xlu0 %2323 }
0x1221   :  { %v2224_v61 = vpop.xlane.xlu1 %2223  ;;  %v2126_v5 = vsub.f32 %v2118_v30, %v2124_v10  ;;  %v2326_v13 = vsub.f32 %v2318_v28, %v2324_v12 }
0x1222   :  { %v2226_v62 = vsub.f32 %v2218_v34, %v2224_v61 }
0x1223   :  { %v3026_v63 = vpop.eup %3025  ;;  %v2129_v0 = vmul.f32 1.442695, %v2126_v5  ;;  %v2329_v3 = vmul.f32 1.442695, %v2326_v13 }
0x1224   :  { %v2229_v1 = vmul.f32 1.442695, %v2226_v62  ;;  %v2266_v2 = vsel %vm46_vm0, %v3026_v63, 0.0 }
0x1225   :  { %2267 = vadd.xlane.f32.xlu1 %v2266_v2 }
0x1226   :  { %3027 = vpow2.f32 %v2229_v1 }
0x1227   :  { %3029 = vpow2.f32 %v2129_v0 }
0x1228   :  { %v2872_v57 = vpop.permute.xlu2 %2871  ;;  %3031 = vpow2.f32 %v2329_v3  ;;  %v2068_v32 = vpop.xlane.xlu0 %2067 }
0x1229   :  { %v2873_v4 = vunpack.i.l.bf16 %v2872_v57  ;;  %v2874_v6 = vunpack.i.h.bf16 %v2872_v57  ;;  %v2071_v42 = vpop.xlane.xlu1 %2070 }
0x122b   :  { %2257 = vmatpush.msra.mxu1 %v2873_v4 }
0x122c   :  { %v3028_v60 = vpop.eup %3027 }
0x122d   :  { %v3030_v7 = vpop.eup %3029  ;;  %v2269_v8 = vsel %vm46_vm0, %v3028_v60, 0.0  ;;  %2258 = vmatpush.msra.mxu1 %v2874_v6 }
0x122e   :  { %2761 = vmatmul.msk.f32.gmra.mxu0 %vm46_vm0, %v3030_v7  ;;  %2270 = vadd.xlane.f32.xlu0 %v2269_v8  ;;  %v2169_v9 = vsel %vm46_vm0, %v3030_v7, 0.0  ;;  %v3032_v15 = vpop.eup %3031  ;;  %v2900_v7 = vld [vmem:[%s3889_s3 + $0x14] ss:$0 sm:$0xff] }
0x122f   :  { %2170 = vadd.xlane.f32.xlu1 %v2169_v9  ;;  %2766 = vmatmul.msk.f32.vlgmr.msra.gmra.mxu1 %vm46_vm0, %v3026_v63  ;;  %v2369_v16 = vsel %vm46_vm0, %v3032_v15, 0.0  ;;  %v2060_v26 = vpop.f32.mrf.mxu1 }
0x1230   :  { %2167 = vadd.xlane.f32.xlu2 %v2166_v11 }
0x1237   :  { %2370 = vadd.xlane.f32.xlu1 %v2369_v16  ;;  %2767 = vmatmul.msk.f32.gmra.mxu1 %vm46_vm0, %v3028_v60  ;;  %v2063_v30 = vpop.f32.mrf.mxu1 }
0x1261   :  { %v2321_v19 = vpop.xlane.xlu2 %2320 }
0x1262   :  { %v2325_v21 = vsub.f32 %v2317_v50, %v2321_v19 }
0x1264   :  { %v2327_v18 = vmul.f32 1.442695, %v2325_v21 }
0x1266   :  { %3033 = vpow2.f32 %v2327_v18 }
0x1269   :  { %v2877_v22 = vpop.permute.xlu2 %2876 }
0x126a   :  { %v2878_v23 = vunpack.i.l.bf16 %v2877_v22  ;;  %v2879_v24 = vunpack.i.h.bf16 %v2877_v22 }
0x126c   :  { %v3034_v36 = vpop.eup %3033  ;;  %2357 = vmatpush.msra.mxu0 %v2878_v23 }
0x126d   :  { %v2366_v25 = vsel %vm46_vm0, %v3034_v36, 0.0 }
0x126e   :  { %2367 = vadd.xlane.f32.xlu0 %v2366_v25  ;;  %2358 = vmatpush.msra.mxu0 %v2879_v24  ;;  %v2502_v24 = vld [vmem:[#allocation2 + $0x178] sm:$0xff]  ;;  %v2501_v25 = vld [vmem:[#allocation2 + $0x148] sm:$0xff] }
0x126f   :  { %2772 = vmatmul.msk.f32.vlgmr.msra.gmra.mxu0 %vm46_vm0, %v3034_v36  ;;  %2523 = vmatpush.msrb.mxu1 %v2502_v24 }
0x1271   :  { %2524 = vmatpush.msrb.mxu1 %v2501_v25  ;;  %v2904_v25 = vld [vmem:[%s3889_s3 + $0x16] ss:$0 sm:$0xff] }
0x1277   :  { %2773 = vmatmul.msk.f32.gmra.mxu0 %vm46_vm0, %v3032_v15 }
0x1290   :  { %v2160_v31 = vpop.f32.mrf.mxu0 }
0x1298   :  { %v2268_v27 = vpop.xlane.xlu1 %2267 }
0x12a1   :  { %v2271_v40 = vpop.xlane.xlu0 %2270 }
0x12a2   :  { %v2171_v33 = vpop.xlane.xlu1 %2170 }
0x12a3   :  { %v2168_v29 = vpop.xlane.xlu2 %2167 }
0x12a4   :  { %3035 = vrcp.f32 %v2168_v29 }
0x12a5   :  { %3037 = vrcp.f32 %v2268_v27  ;;  %v2499_v27 = vld [vmem:[#allocation2 + $0xe8] sm:$0xff] }
0x12a6   :  { %3039 = vrcp.f32 %v2171_v33 }
0x12a7   :  { %3041 = vrcp.f32 %v2271_v40 }
0x12aa   :  { %v3036_v34 = vpop.eup %3035  ;;  %v2371_v48 = vpop.xlane.xlu1 %2370 }
0x12ab   :  { %v2174_v28 = vmul.f32 %v3036_v34, %v2160_v31  ;;  %v3038_v35 = vpop.eup %3037  ;;  %v2163_v39 = vpop.f32.mrf.mxu0 }
0x12ac   :  { %v2260_v37 = vpop.f32.mrf.mxu1  ;;  %v3040_v41 = vpop.eup %3039 }
0x12ad   :  { %v2274_v38 = vmul.f32 %v3038_v35, %v2260_v37  ;;  %2378 = vrot.lane.b32.xlu0 %v2174_v28, %s3130_s22  ;;  %v2175_v43 = vmul.f32 %v3040_v41, %v2163_v39  ;;  %v3042_v14 = vpop.eup %3041  ;;  %v2551_v35 = vld [vmem:[%s3888_s2 + $0xf8] sm:$0xff]  ;;  %v2550_v37 = vld [vmem:[%s3888_s2 + $0xf0] sm:$0xff]  ;;  %v2549_v41 = vld [vmem:[%s3888_s2 + $0xe8] sm:$0xff] }
0x12ae   :  { %2554 = vmatpush.msra.mxu2 %v2551_v35 }
0x12af   :  { %2386 = vrot.lane.b32.xlu1 %v2274_v38, %s3131_s23 }
0x12b0   :  { %2555 = vmatpush.msra.mxu2 %v2550_v37 }
0x12b2   :  { %2556 = vmatpush.msra.mxu2 %v2549_v41 }
0x12b4   :  { %v2263_v44 = vpop.f32.mrf.mxu1 }
0x12b5   :  { %2380 = vrot.lane.b32.xlu0 %v2175_v43, %s3130_s22  ;;  %v2275_v45 = vmul.f32 %v3042_v14, %v2263_v44  ;;  %v2548_v44 = vld [vmem:[%s3888_s2 + $0xe0] sm:$0xff] }
0x12b6   :  { %2557 = vmatpush.msra.mxu2 %v2548_v44 }
0x12bd   :  { %2388 = vrot.lane.b32.xlu0 %v2275_v45, %s3131_s23 }
0x12e1   :  { %v2368_v47 = vpop.xlane.xlu0 %2367 }
0x12e2   :  { %3043 = vrcp.f32 %v2368_v47  ;;  %v2547_v47 = vld [vmem:[%s3888_s2 + $0xd8] sm:$0xff] }
0x12e3   :  { %3045 = vrcp.f32 %v2371_v48  ;;  %2558 = vmatpush.msra.mxu2 %v2547_v47 }
0x12e4   :  { %3047 = vrcp.f32 %v2068_v32 }
0x12e5   :  { %3049 = vrcp.f32 %v2071_v42  ;;  %v2500_v42 = vld [vmem:[#allocation2 + $0x118] sm:$0xff] }
0x12e6   :  { %2525 = vmatpush.msrb.mxu1 %v2500_v42 }
0x12e8   :  { %v3044_v17 = vpop.eup %3043  ;;  %2526 = vmatpush.msrb.mxu1 %v2499_v27 }
0x12e9   :  { %v3046_v51 = vpop.eup %3045 }
0x12ea   :  { %v3048_v10 = vpop.eup %3047 }
0x12eb   :  { %v2074_v61 = vmul.f32 %v3048_v10, %v2060_v26  ;;  %v3050_v2 = vpop.eup %3049  ;;  %v2901_v10 = vld [vmem:[%s3889_s3 + $0x19] ss:$0 sm:$0xff] }
0x12ec   :  { %v2360_v49 = vpop.f32.mrf.mxu0  ;;  %v2075_v13 = vmul.f32 %v3050_v2, %v2063_v30 }
0x12ed   :  { %v2374_v50 = vmul.f32 %v3044_v17, %v2360_v49  ;;  %v2546_v17 = vld [vmem:[%s3888_s2 + $0xd0] sm:$0xff] }
0x12ee   :  { %2559 = vmatpush.msra.mxu2 %v2546_v17 }
0x12ef   :  { %2394 = vrot.lane.b32.xlu2 %v2374_v50, %s3132_s24  ;;  %v2545_v50 = vld [vmem:[%s3888_s2 + $0xc8] sm:$0xff] }
0x12f0   :  { %2560 = vmatpush.msra.mxu2 %v2545_v50 }
0x12f4   :  { %v2363_v52 = vpop.f32.mrf.mxu0 }
0x12f5   :  { %v2375_v53 = vmul.f32 %v3046_v51, %v2363_v52  ;;  %v2544_v52 = vld [vmem:[%s3888_s2 + $0xc0] sm:$0xff] }
0x12f6   :  { %2561 = vmatpush.msra.mxu2 %v2544_v52 }
0x12f7   :  { %2396 = vrot.lane.b32.xlu2 %v2375_v53, %s3132_s24 }
0x12f8   :  { %2562 = vmatpush.msra.mxu2 %v2543_v55 }
0x131f   :  { %v2379_v59 = vpop.permute.xlu0 %2378 }
0x1320   :  { %v2400_v12 = vsel %vm118_vm2, %v2074_v61, %v2379_v59  ;;  %v2542_v61 = vld [vmem:[%s3888_s2 + $0xb0] sm:$0xff] }
0x1321   :  { %v2387_v62 = vpop.permute.xlu1 %2386  ;;  %2563 = vmatpush.msra.mxu2 %v2542_v61  ;;  %v2905_v61 = vld [vmem:[%s3889_s3 + $0x1b] ss:$0 sm:$0xff] }
0x1322   :  { %v2402_v63 = vsel %vm46_vm0, %v2400_v12, %v2387_v62 }
0x1327   :  { %v2381_v5 = vpop.permute.xlu0 %2380 }
0x1328   :  { %v2401_v3 = vsel %vm118_vm2, %v2075_v13, %v2381_v5  ;;  %v2540_v13 = vld [vmem:[%s3888_s2 + $0xa0] sm:$0xff] }
0x132f   :  { %v2389_v57 = vpop.permute.xlu0 %2388 }
0x1330   :  { %v2403_v4 = vsel %vm46_vm0, %v2401_v3, %v2389_v57 }
0x1349   :  { %v2395_v0 = vpop.permute.xlu2 %2394 }
0x134a   :  { %v2404_v1 = vsel %vm539_vm3, %v2402_v63, %v2395_v0  ;;  %v2902_v63 = vld [vmem:[%s3889_s3 + $0x1a] ss:$0 sm:$0xff]  ;;  %v2541_v0 = vld [vmem:[%s3888_s2 + $0xa8] sm:$0xff] }
0x134b   :  { %2774 = vmatmul.msk.f32.vlgmr.msra.gmra.mxu3 %vm82_vm1, %v2404_v1  ;;  %2564 = vmatpush.msra.mxu2 %v2541_v0 }
0x134d   :  { %2565 = vmatpush.msra.mxu2 %v2540_v13 }
0x1351   :  { %v2397_v6 = vpop.permute.xlu2 %2396 }
0x1352   :  { %v2405_v60 = vsel %vm539_vm3, %v2403_v4, %v2397_v6  ;;  %v2539_v4 = vld [vmem:[%s3888_s2 + $0x98] sm:$0xff] }
0x1353   :  { %2775 = vmatmul.msk.f32.gmra.mxu3 %vm82_vm1, %v2405_v60  ;;  %2566 = vmatpush.msra.mxu2 %v2539_v4 }
0x13ce   :  { %v2435_v8 = vpop.f32.mrf.mxu3 }
0x13cf   :  { %v2436_v9 = vadd.f32 %v2900_v7, %v2435_v8 }
0x13d1   :  { %v3791_v11 = vadd.f32 %v2436_v9, %v3697_v20 }
0x13d3   :  { %v2445_v15 = vsel %vm82_vm1, %v3791_v11, 0.0  ;;  %v2453_v16 = vmul.f32 %v3791_v11, %v3791_v11 }
0x13d4   :  { %2446 = vadd.xlane.f32.xlu1 %v2445_v15  ;;  %v2538_v15 = vld [vmem:[%s3888_s2 + $0x90] sm:$0xff] }
0x13d5   :  { %v2455_v19 = vsel %vm82_vm1, %v2453_v16, 0.0  ;;  %2567 = vmatpush.msra.mxu2 %v2538_v15  ;;  %v2537_v16 = vld [vmem:[%s3888_s2 + $0x88] sm:$0xff] }
0x13d6   :  { %2456 = vadd.xlane.f32.xlu0 %v2455_v19  ;;  %v2438_v21 = vpop.f32.mrf.mxu3  ;;  %v2536_v19 = vld [vmem:[%s3888_s2 + $0x80] sm:$0xff] }
0x13d7   :  { %v2439_v18 = vadd.f32 %v2900_v7, %v2438_v21  ;;  %2568 = vmatpush.msra.mxu2 %v2537_v16  ;;  %v2903_v21 = vld [vmem:[%s3889_s3 + $0x15] ss:$0 sm:$0xff] }
0x13d9   :  { %v3799_v22 = vadd.f32 %v2439_v18, %v3702_v46  ;;  %2569 = vmatpush.msra.mxu2 %v2536_v19 }
0x13db   :  { %v2448_v23 = vsel %vm82_vm1, %v3799_v22, 0.0  ;;  %v2454_v20 = vmul.f32 %v3799_v22, %v3799_v22 }
0x13dc   :  { %2449 = vadd.xlane.f32.xlu2 %v2448_v23 }
0x13dd   :  { %v2458_v36 = vsel %vm82_vm1, %v2454_v20, 0.0 }
0x13de   :  { %2459 = vadd.xlane.f32.xlu1 %v2458_v36 }
0x1447   :  { %v2447_v26 = vpop.xlane.xlu1 %2446 }
0x1448   :  { %v2451_v46 = vmul.f32 0.03125, %v2447_v26 }
0x1449   :  { %v2457_v29 = vpop.xlane.xlu0 %2456 }
0x144a   :  { %v2463_v30 = vmul.f32 %v2451_v46, %v2451_v46  ;;  %v2461_v31 = vmul.f32 0.03125, %v2457_v29  ;;  %v2467_v59 = vsub.f32 %v3791_v11, %v2451_v46 }
0x144c   :  { %v2465_v32 = vsub.f32 %v2461_v31, %v2463_v30 }
0x144e   :  { %v2469_v33 = vadd.f32 1e-05, %v2465_v32 }
0x144f   :  { %v2450_v34 = vpop.xlane.xlu2 %2449 }
0x1450   :  { %3051 = vrsqrt.f32 %v2469_v33  ;;  %v2452_v28 = vmul.f32 0.03125, %v2450_v34  ;;  %vm2477_vm2 = vweird.f32 %v2469_v33 }
0x1451   :  { %v2460_v38 = vpop.xlane.xlu1 %2459 }
0x1452   :  { %v2464_v39 = vmul.f32 %v2452_v28, %v2452_v28  ;;  %v2462_v40 = vmul.f32 0.03125, %v2460_v38  ;;  %v2468_v60 = vsub.f32 %v3799_v22, %v2452_v28 }
0x1454   :  { %v2466_v43 = vsub.f32 %v2462_v40, %v2464_v39 }
0x1456   :  { %v3052_v14 = vpop.eup %3051  ;;  %v2470_v45 = vadd.f32 1e-05, %v2466_v43 }
0x1457   :  { %v2472_v48 = vmul.f32 %v3052_v14, %v2469_v33  ;;  %vm2478_vm0 = vweird.f32 %v3052_v14 }
0x1458   :  { %3053 = vrsqrt.f32 %v2470_v45  ;;  %vm2479_vm3 = vmor %vm2477_vm2, %vm2478_vm0  ;;  %vm2487_vm5 = vweird.f32 %v2470_v45 }
0x1459   :  { %v2473_v49 = vmul.f32 %v3052_v14, %v2472_v48 }
0x145b   :  { %v2474_v51 = vmul.f32 0.5, %v2473_v49 }
0x145d   :  { %v2475_v53 = vsub.f32 1.5, %v2474_v51 }
0x145e   :  { %v3054_v54 = vpop.eup %3053 }
0x145f   :  { %v2476_v56 = vmul.f32 %v3052_v14, %v2475_v53  ;;  %v2482_v58 = vmul.f32 %v3054_v54, %v2470_v45  ;;  %vm2488_vm4 = vweird.f32 %v3054_v54 }
0x1460   :  { %vm2489_vm6 = vmor %vm2487_vm5, %vm2488_vm4 }
0x1461   :  { %v2480_v5 = vsel %vm2479_vm3, %v3052_v14, %v2476_v56  ;;  %v2483_v12 = vmul.f32 %v3054_v54, %v2482_v58 }
0x1462   :  { %v2491_v62 = vmul.f32 %v2480_v5, %v2467_v59 }
0x1463   :  { %v2484_v1 = vmul.f32 0.5, %v2483_v12 }
0x1464   :  { %v2494_v2 = vmul.f32 %v2901_v10, %v2491_v62  ;;  %v2906_v62 = vld [vmem:[%s3889_s3 + $0x1c] ss:$0 sm:$0xff]  ;;  %s2641_s3 = sshll.u32 %s3133_s25, 4  ;;  %s2642_s3 = int_to_ptr.vmem [resolvable:$true] %s2641_s3 }
0x1465   :  { %v2485_v57 = vsub.f32 1.5, %v2484_v1 }
0x1466   :  { %v2497_v3 = vadd.f32 %v2902_v63, %v2494_v2 }
0x1467   :  { %v2486_v6 = vmul.f32 %v3054_v54, %v2485_v57 }
0x1468   :  { %2776 = vmatmul.msk.f32.vlgmr.msrb.gmra.mxu1 %vm82_vm1, %v2497_v3 }
0x1469   :  { %v2490_v7 = vsel %vm2489_vm6, %v3054_v54, %v2486_v6 }
0x146a   :  { %v2492_v8 = vmul.f32 %v2490_v7, %v2468_v60 }
0x146c   :  { %v2495_v9 = vmul.f32 %v2901_v10, %v2492_v8 }
0x146e   :  { %v2498_v11 = vadd.f32 %v2902_v63, %v2495_v9 }
0x1470   :  { %2777 = vmatmul.msk.f32.gmra.mxu1 %vm82_vm1, %v2498_v11 }
0x14e5   :  { %v2528_v18 = vpop.f32.mrf.mxu1 }
0x14e6   :  { %v2529_v22 = vadd.f32 %v2903_v21, %v2528_v18 }
0x14e8   :  { %v2534_v23 = vmax.f32 %v2529_v22, 0.0 }
0x14ea   :  { %2570 = vmatmul.f32.vlgmr.msra.gmra.mxu2 %v2534_v23 }
0x14ed   :  { %v2531_v20 = vpop.f32.mrf.mxu1 }
0x14ee   :  { %v2532_v36 = vadd.f32 %v2903_v21, %v2531_v20 }
0x14f0   :  { %v2535_v24 = vmax.f32 %v2532_v36, 0.0 }
0x14f2   :  { %2573 = vmatmul.f32.gmra.mxu2 %v2535_v24 }
0x156d   :  { %v2571_v42 = vpop.f32.mrf.mxu2 }
0x156e   :  { %v2572_v26 = vadd.f32 %v2904_v25, %v2571_v42 }
0x1570   :  { %v2577_v27 = vadd.f32 %v2572_v26, %v2497_v3 }
0x1572   :  { %v2581_v46 = vsel %vm82_vm1, %v2577_v27, 0.0  ;;  %v2589_v29 = vmul.f32 %v2577_v27, %v2577_v27 }
0x1573   :  { %2582 = vadd.xlane.f32.xlu0 %v2581_v46 }
0x1574   :  { %v2591_v30 = vsel %vm82_vm1, %v2589_v29, 0.0 }
0x1575   :  { %v2574_v31 = vpop.f32.mrf.mxu2  ;;  %2592 = vadd.xlane.f32.xlu1 %v2591_v30 }
0x1576   :  { %v2575_v32 = vadd.f32 %v2904_v25, %v2574_v31 }
0x1578   :  { %v2578_v33 = vadd.f32 %v2575_v32, %v2498_v11 }
0x157a   :  { %v2584_v34 = vsel %vm82_vm1, %v2578_v33, 0.0  ;;  %v2590_v28 = vmul.f32 %v2578_v33, %v2578_v33 }
0x157b   :  { %2585 = vadd.xlane.f32.xlu2 %v2584_v34 }
0x157c   :  { %v2594_v35 = vsel %vm82_vm1, %v2590_v28, 0.0 }
0x157d   :  { %2595 = vadd.xlane.f32.xlu0 %v2594_v35 }
0x15e6   :  { %v2583_v37 = vpop.xlane.xlu0 %2582 }
0x15e7   :  { %v2587_v38 = vmul.f32 0.03125, %v2583_v37 }
0x15e8   :  { %v2593_v39 = vpop.xlane.xlu1 %2592 }
0x15e9   :  { %v2599_v40 = vmul.f32 %v2587_v38, %v2587_v38  ;;  %v2597_v41 = vmul.f32 0.03125, %v2593_v39  ;;  %v2603_v10 = vsub.f32 %v2577_v27, %v2587_v38 }
0x15eb   :  { %v2601_v43 = vsub.f32 %v2597_v41, %v2599_v40 }
0x15ed   :  { %v2605_v44 = vadd.f32 1e-05, %v2601_v43 }
0x15ee   :  { %v2586_v14 = vpop.xlane.xlu2 %2585 }
0x15ef   :  { %3055 = vrsqrt.f32 %v2605_v44  ;;  %v2588_v45 = vmul.f32 0.03125, %v2586_v14  ;;  %vm2613_vm8 = vweird.f32 %v2605_v44 }
0x15f0   :  { %v2596_v47 = vpop.xlane.xlu0 %2595 }
0x15f1   :  { %v2600_v48 = vmul.f32 %v2588_v45, %v2588_v45  ;;  %v2598_v17 = vmul.f32 0.03125, %v2596_v47  ;;  %v2604_v3 = vsub.f32 %v2578_v33, %v2588_v45 }
0x15f3   :  { %v2602_v49 = vsub.f32 %v2598_v17, %v2600_v48 }
0x15f5   :  { %v3056_v50 = vpop.eup %3055  ;;  %v2606_v51 = vadd.f32 1e-05, %v2602_v49 }
0x15f6   :  { %v2608_v52 = vmul.f32 %v3056_v50, %v2605_v44  ;;  %vm2614_vm7 = vweird.f32 %v3056_v50 }
0x15f7   :  { %3057 = vrsqrt.f32 %v2606_v51  ;;  %vm2615_vm9 = vmor %vm2613_vm8, %vm2614_vm7  ;;  %vm2623_vm11 = vweird.f32 %v2606_v51 }
0x15f8   :  { %v2609_v53 = vmul.f32 %v3056_v50, %v2608_v52 }
0x15fa   :  { %v2610_v54 = vmul.f32 0.5, %v2609_v53 }
0x15fc   :  { %v2611_v55 = vsub.f32 1.5, %v2610_v54 }
0x15fd   :  { %v3058_v56 = vpop.eup %3057 }
0x15fe   :  { %v2612_v58 = vmul.f32 %v3056_v50, %v2611_v55  ;;  %v2618_v59 = vmul.f32 %v3058_v56, %v2606_v51  ;;  %vm2624_vm10 = vweird.f32 %v3058_v56 }
0x15ff   :  { %vm2625_vm12 = vmor %vm2623_vm11, %vm2624_vm10 }
0x1600   :  { %v2616_v5 = vsel %vm2615_vm9, %v3056_v50, %v2612_v58  ;;  %v2619_v12 = vmul.f32 %v3058_v56, %v2618_v59 }
0x1601   :  { %v2627_v63 = vmul.f32 %v2616_v5, %v2603_v10 }
0x1602   :  { %v2620_v0 = vmul.f32 0.5, %v2619_v12 }
0x1603   :  { %v2630_v1 = vmul.f32 %v2905_v61, %v2627_v63 }
0x1604   :  { %v2621_v2 = vsub.f32 1.5, %v2620_v0 }
0x1605   :  { %v2633_v13 = vadd.f32 %v2906_v62, %v2630_v1 }
0x1606   :  { %v2622_v57 = vmul.f32 %v3058_v56, %v2621_v2 }
0x1607   :  { %2635 = vst.msk [vmem:[#allocation5] sm:$0xff] %vm82_vm1, %v2633_v13 }
0x1608   :  { %v2626_v4 = vsel %vm2625_vm12, %v3058_v56, %v2622_v57 }
0x1609   :  { %v2628_v6 = vmul.f32 %v2626_v4, %v2604_v3 }
0x160b   :  { %v2631_v60 = vmul.f32 %v2905_v61, %v2628_v6 }
0x160d   :  { %v2634_v7 = vadd.f32 %v2906_v62, %v2631_v60 }
0x160f   :  { %2636 = vst.msk [vmem:[#allocation5 + $0x8] sm:$0xff] %vm82_vm1, %v2634_v7 }
0x1610   :  { %2649 = dma.vmem_to_hbm [thread:$0]  %s2642_s3, 256, %s2644_s18, [#allocation4], %s3134_s14, %s3134_s14, %s3130_s22  }
0x1611   :  { %3115 = dma.done.wait [#allocation4], 256  }
0x1612   :  { %3116 = vsyncadd [#allocation4], 4294967040 }
0x1613   :  { %2654 = vsyncpa [#allocation3], 1 }
0x1614   :  { %2655 = vsyncpa [#allocation4], 1 }

</bundles_post_ra>
